<compile_context>
chip_gen: v6e
topology: v6e:2x2x1
jax: 0.10.0
libtpu: 0.0.40
codegen_flags: <defaults>
</compile_context>

<pallas_src>
import jax
import jax.numpy as jnp
from jax import lax
from jax.experimental import pallas as pl
from jax.experimental.pallas import tpu as pltpu


# ---------------------------------------------------------------------------
# Conv3d(k=3, p=1) + fused BN statistics (+ optionally folded BN/ReLU on input)
# ---------------------------------------------------------------------------
def _make_conv_kernel(D, H, W, Cin, Cout, fuse_bn_relu):
    LIN = (W + 2) * Cin          # lane width of one padded input depth plane
    LOUT = W * Cout              # lane width of one output depth plane
    taps = [(kd, kh, kw) for kd in range(3) for kh in range(3) for kw in range(3)]

    def body(x_refs, w_ref, b_ref, scale_ref, shift_ref, out_ref, stats_ref, pbuf):
        d = pl.program_id(1)

        # Stage the three padded depth planes (d, d+1, d+2) into VMEM scratch,
        # applying the folded BN+ReLU of the previous layer if requested.
        for kd in range(3):
            p = x_refs[kd][0, 0]                       # (H+2, (W+2)*Cin) bf16
            if fuse_bn_relu:
                pf = p.astype(jnp.float32)             # keep BN math in f32
                pf = jnp.maximum(pf * scale_ref[...] + shift_ref[...], 0.0)
                # the spatial zero-padding must stay exactly 0 after the folded
                # affine+ReLU -> mask the border (and full depth-pad planes).
                row = lax.broadcasted_iota(jnp.int32, (H + 2, LIN), 0)
                col = lax.broadcasted_iota(jnp.int32, (H + 2, LIN), 1)
                interior = ((row >= 1) & (row <= H) &
                            (col >= Cin) & (col < (W + 1) * Cin))
                depth_ok = jnp.logical_and(d + kd >= 1, d + kd <= D)
                pf = jnp.where(jnp.logical_and(interior, depth_ok), pf, 0.0)
                p = pf.astype(jnp.bfloat16)
            pbuf[kd, :, :] = p

        # 27 taps: (H, W*Cin) @ (W*Cin, W*Cout) bf16 matmuls, f32 accumulator.
        acc = jnp.zeros((H, LOUT), jnp.float32)
        for t, (kd, kh, kw) in enumerate(taps):
            a = pbuf[kd, kh:kh + H, kw * Cin:(kw + W) * Cin]
            acc = acc + jnp.dot(a, w_ref[t], preferred_element_type=jnp.float32)
        out = acc + b_ref[...]                         # bias (1, W*Cout) f32

        # fused BatchNorm statistics of the pre-BN conv output.
        stats_ref[0, 0, 0:1, :] = jnp.sum(out, axis=0, keepdims=True)
        stats_ref[0, 0, 1:2, :] = jnp.sum(out * out, axis=0, keepdims=True)
        out_ref[0, 0] = out.astype(out_ref.dtype)

    if fuse_bn_relu:
        def kernel(x0, x1, x2, w, b, sc, sh, out, stats, pbuf):
            body((x0, x1, x2), w, b, sc, sh, out, stats, pbuf)
    else:
        def kernel(x0, x1, x2, w, b, out, stats, pbuf):
            body((x0, x1, x2), w, b, None, None, out, stats, pbuf)
    return kernel


def _conv3x3_bn_stats(x_pad2, w_big, bias_row, *, N, D, H, W, Cin, Cout,
                      fuse_bn_relu=False, scale_row=None, shift_row=None):
    """x_pad2: (N, D+2, H+2, (W+2)*Cin) bf16 padded, channels-last input.
       w_big:  (27, W*Cin, W*Cout) bf16 block-diagonal per-tap weights.
       bias_row: (1, W*Cout) f32.
       Returns y (N, D, H, W*Cout) bf16 pre-BN conv output and
               stats (N, D, 2, W*Cout) f32 per-step partial (sum, sum^2)."""
    LIN = (W + 2) * Cin
    LOUT = W * Cout
    kernel = _make_conv_kernel(D, H, W, Cin, Cout, fuse_bn_relu)

    # the same padded input is passed 3x with depth offsets 0/1/2 so the
    # kernel sees its 3 halo depth planes without an overlapping BlockSpec.
    in_specs = [pl.BlockSpec((1, 1, H + 2, LIN),
                             (lambda n, d, kd=kd: (n, d + kd, 0, 0)))
                for kd in range(3)]
    in_specs += [pl.BlockSpec((27, W * Cin, LOUT), lambda n, d: (0, 0, 0)),
                 pl.BlockSpec((1, LOUT), lambda n, d: (0, 0))]
    args = [x_pad2, x_pad2, x_pad2, w_big, bias_row]
    if fuse_bn_relu:
        in_specs += [pl.BlockSpec((1, LIN), lambda n, d: (0, 0)),
                     pl.BlockSpec((1, LIN), lambda n, d: (0, 0))]
        args += [scale_row, shift_row]

    y, stats = pl.pallas_call(
        kernel,
        out_shape=(jax.ShapeDtypeStruct((N, D, H, LOUT), jnp.bfloat16),
                   jax.ShapeDtypeStruct((N, D, 2, LOUT), jnp.float32)),
        grid=(N, D),
        in_specs=in_specs,
        out_specs=(pl.BlockSpec((1, 1, H, LOUT), lambda n, d: (n, d, 0, 0)),
                   pl.BlockSpec((1, 1, 2, LOUT), lambda n, d: (n, d, 0, 0))),
        scratch_shapes=[pltpu.VMEM((3, H + 2, LIN), jnp.bfloat16)],
        compiler_params=pltpu.CompilerParams(
            dimension_semantics=("parallel", "parallel")),
    )(*args)
    return y, stats


# ---------------------------------------------------------------------------
# Final standalone BN + ReLU (lane-dense elementwise pass)
# ---------------------------------------------------------------------------
def _bn_relu_kernel(x_ref, scale_ref, shift_ref, o_ref):
    x = x_ref[...].astype(jnp.float32)
    o_ref[...] = jnp.maximum(x * scale_ref[...] + shift_ref[...], 0.0)


def _bn_relu(x2d, scale_row, shift_row, tp=512):
    P, C = x2d.shape
    Pp = ((P + tp - 1) // tp) * tp
    xp = jnp.pad(x2d, ((0, Pp - P), (0, 0))) if Pp != P else x2d
    out = pl.pallas_call(
        _bn_relu_kernel,
        out_shape=jax.ShapeDtypeStruct((Pp, C), jnp.float32),
        grid=(Pp // tp,),
        in_specs=[pl.BlockSpec((tp, C), lambda i: (i, 0)),
                  pl.BlockSpec((1, C), lambda i: (0, 0)),
                  pl.BlockSpec((1, C), lambda i: (0, 0))],
        out_specs=pl.BlockSpec((tp, C), lambda i: (i, 0)),
        compiler_params=pltpu.CompilerParams(dimension_semantics=("parallel",)),
    )(xp, scale_row, shift_row)
    return out[:P]


# ---------------------------------------------------------------------------
# Host-side (glue) helpers
# ---------------------------------------------------------------------------
def _blockdiag_weight(w, W):
    """PyTorch (Cout, Cin, 3,3,3) -> (27, W*Cin, W*Cout) bf16 block-diagonal."""
    Cout, Cin = w.shape[0], w.shape[1]
    wt = jnp.transpose(w, (2, 3, 4, 1, 0)).reshape(27, Cin, Cout)
    eye = jnp.eye(W, dtype=w.dtype)
    big = jnp.einsum('ab,tio->taibo', eye, wt).reshape(27, W * Cin, W * Cout)
    return big.astype(jnp.bfloat16)


def _bn_scale_shift(stats, gamma, beta, count, W, Cout, eps=1e-5):
    s = stats.sum(axis=(0, 1)).reshape(2, W, Cout).sum(axis=1)   # (2, Cout)
    mean = s[0] / count
    var = jnp.maximum(s[1] / count - mean * mean, 0.0)           # biased, clamped
    scale = gamma / jnp.sqrt(var + eps)
    shift = beta - mean * scale
    return scale, shift


def _pad_flat(x_cl):
    """(N, D, H, W, C) -> (N, D+2, H+2, (W+2)*C), spatial zero-pad of 1."""
    N, D, H, W, C = x_cl.shape
    xp = jnp.pad(x_cl, ((0, 0), (1, 1), (1, 1), (1, 1), (0, 0)))
    return xp.reshape(N, D + 2, H + 2, (W + 2) * C)


def double3dconv(x, params, eps=1e-5):
    """x: (N, Cin, D, H, W) float32 (PyTorch NCDHW). Returns (N, Cout, D, H, W)."""
    N, Cin, D, H, W = x.shape
    Cout = params["c1_b"].shape[0]
    count = N * D * H * W

    # single NCDHW -> NDHWC transpose; bf16 activations for DMA.
    x_cl = jnp.transpose(x, (0, 2, 3, 4, 1)).astype(jnp.bfloat16)

    # conv1 (+ fused BN1 statistics)
    w1_big = _blockdiag_weight(params["c1_w"], W)
    b1_row = jnp.tile(params["c1_b"], W).reshape(1, W * Cout).astype(jnp.float32)
    y1, st1 = _conv3x3_bn_stats(_pad_flat(x_cl), w1_big, b1_row,
                                N=N, D=D, H=H, W=W, Cin=Cin, Cout=Cout)
    scale1, shift1 = _bn_scale_shift(st1, params["bn1_g"], params["bn1_b"],
                                     count, W, Cout, eps)

    # conv2 with BN1 + ReLU folded into its input load (+ fused BN2 statistics)
    y1_pad2 = _pad_flat(y1.reshape(N, D, H, W, Cout))
    sc1_row = jnp.tile(scale1, W + 2).reshape(1, (W + 2) * Cout).astype(jnp.float32)
    sh1_row = jnp.tile(shift1, W + 2).reshape(1, (W + 2) * Cout).astype(jnp.float32)
    w2_big = _blockdiag_weight(params["c2_w"], W)
    b2_row = jnp.tile(params["c2_b"], W).reshape(1, W * Cout).astype(jnp.float32)
    y2, st2 = _conv3x3_bn_stats(y1_pad2, w2_big, b2_row,
                                N=N, D=D, H=H, W=W, Cin=Cout, Cout=Cout,
                                fuse_bn_relu=True,
                                scale_row=sc1_row, shift_row=sh1_row)
    scale2, shift2 = _bn_scale_shift(st2, params["bn2_g"], params["bn2_b"],
                                     count, W, Cout, eps)

    # final BN2 + ReLU (lane-dense elementwise pass)
    sc2_row = jnp.tile(scale2, W).reshape(1, W * Cout).astype(jnp.float32)
    sh2_row = jnp.tile(shift2, W).reshape(1, W * Cout).astype(jnp.float32)
    out = _bn_relu(y2.reshape(N * D * H, W * Cout), sc2_row, sh2_row)
    out = out.reshape(N, D, H, W, Cout)
    return jnp.transpose(out, (0, 4, 1, 2, 3))        # back to NCDHW


# ---------------------------------------------------------------------------
# Pure-JAX reference (f32) for a sanity check, and parameter init
# ---------------------------------------------------------------------------
def _reference(x, params, eps=1e-5):
    def conv(x, w, b):
        y = lax.conv_general_dilated(
            x, w, window_strides=(1, 1, 1), padding=((1, 1),) * 3,
            dimension_numbers=('NCDHW', 'OIDHW', 'NCDHW'))
        return y + b.reshape(1, -1, 1, 1, 1)

    def bn_relu(y, g, bta):
        mean = y.mean(axis=(0, 2, 3, 4), keepdims=True)
        var = y.var(axis=(0, 2, 3, 4), keepdims=True)
        yn = (y - mean) / jnp.sqrt(var + eps)
        return jnp.maximum(yn * g.reshape(1, -1, 1, 1, 1)
                           + bta.reshape(1, -1, 1, 1, 1), 0.0)

    y = bn_relu(conv(x, params["c1_w"], params["c1_b"]),
                params["bn1_g"], params["bn1_b"])
    y = bn_relu(conv(y, params["c2_w"], params["c2_b"]),
                params["bn2_g"], params["bn2_b"])
    return y


def init_params(key, in_channels, out_channels):
    ks = jax.random.split(key, 4)
    return {
        "c1_w": 0.1 * jax.random.normal(
            ks[0], (out_channels, in_channels, 3, 3, 3), jnp.float32),
        "c1_b": 0.1 * jax.random.normal(ks[1], (out_channels,), jnp.float32),
        "bn1_g": jnp.ones((out_channels,), jnp.float32),
        "bn1_b": jnp.zeros((out_channels,), jnp.float32),
        "c2_w": 0.1 * jax.random.normal(
            ks[2], (out_channels, out_channels, 3, 3, 3), jnp.float32),
        "c2_b": 0.1 * jax.random.normal(ks[3], (out_channels,), jnp.float32),
        "bn2_g": jnp.ones((out_channels,), jnp.float32),
        "bn2_b": jnp.zeros((out_channels,), jnp.float32),
    }


if __name__ == "__main__":
    key = jax.random.PRNGKey(0)
    kx, kp = jax.random.split(key)

    N, Cin, Cout = 2, 4, 8
    D = H = W = 16                    # W * Cout = 128 -> lane-dense stores
    x = jax.random.normal(kx, (N, Cin, D, H, W), jnp.float32)
    params = init_params(kp, Cin, Cout)

    out = jax.jit(double3dconv)(x, params)
    jax.block_until_ready(out)

    assert out.shape == (N, Cout, D, H, W)
    assert bool(jnp.all(jnp.isfinite(out)))
    assert bool(jnp.all(out >= 0.0))                  # ReLU output

    ref = _reference(x, params)
    max_err = float(jnp.max(jnp.abs(out - ref)))
    assert max_err < 0.25, f"max abs error vs reference too large: {max_err}"

    print("KERNEL_OK")
</pallas_src>

<mosaic_0001>
module attributes {stable_mosaic.version = 11 : i64} {
  func.func @kernel(%arg0: i32, %arg1: i32, %arg2: memref<1x1x18x72xbf16, #tpu.memory_space<vmem>>, %arg3: memref<1x1x18x72xbf16, #tpu.memory_space<vmem>>, %arg4: memref<1x1x18x72xbf16, #tpu.memory_space<vmem>>, %arg5: memref<27x64x128xbf16, #tpu.memory_space<vmem>>, %arg6: memref<1x128xf32, #tpu.memory_space<vmem>>, %arg7: memref<1x1x16x128xbf16, #tpu.memory_space<vmem>>, %arg8: memref<1x1x2x128xf32, #tpu.memory_space<vmem>>, %arg9: memref<3x18x72xbf16, #tpu.memory_space<vmem>>) attributes {dimension_semantics = [#tpu.dimension_semantics<parallel>, #tpu.dimension_semantics<parallel>], iteration_bounds = array<i64: 2, 16>, scalar_prefetch = 0 : i64, scratch_operands = 1 : i64, tpu.core_type = #tpu.core_type<tc>, window_params = [{transform_indices = @transform_0, window_bounds = array<i64: 1, 1, 18, 72>}, {transform_indices = @transform_1, window_bounds = array<i64: 1, 1, 18, 72>}, {transform_indices = @transform_2, window_bounds = array<i64: 1, 1, 18, 72>}, {pipeline_mode = #tpu.pipeline_mode<synchronous>, transform_indices = @transform_3, window_bounds = array<i64: 27, 64, 128>}, {pipeline_mode = #tpu.pipeline_mode<synchronous>, transform_indices = @transform_4, window_bounds = array<i64: 1, 128>}, {transform_indices = @transform_5, window_bounds = array<i64: 1, 1, 16, 128>}, {transform_indices = @transform_6, window_bounds = array<i64: 1, 1, 2, 128>}]} {
    %c0 = arith.constant 0 : index
    %c0_0 = arith.constant 0 : index
    %c0_1 = arith.constant 0 : index
    %c0_2 = arith.constant 0 : index
    %0 = vector.load %arg2[%c0, %c0_0, %c0_1, %c0_2] : memref<1x1x18x72xbf16, #tpu.memory_space<vmem>>, vector<1x1x18x72xbf16>
    %1 = vector.shape_cast %0 : vector<1x1x18x72xbf16> to vector<18x72xbf16>
    %c0_3 = arith.constant 0 : index
    %c0_4 = arith.constant 0 : index
    %c0_5 = arith.constant 0 : index
    %2 = vector.load %arg9[%c0_3, %c0_4, %c0_5] : memref<3x18x72xbf16, #tpu.memory_space<vmem>>, vector<1x18x72xbf16>
    %3 = vector.shape_cast %2 : vector<1x18x72xbf16> to vector<18x72xbf16>
    %4 = vector.shape_cast %1 : vector<18x72xbf16> to vector<1x18x72xbf16>
    tpu.vector_store %arg9[%c0_3, %c0_4, %c0_5], %4 {strides = array<i32>} : memref<3x18x72xbf16, #tpu.memory_space<vmem>>, vector<1x18x72xbf16>,
    %c0_6 = arith.constant 0 : index
    %c0_7 = arith.constant 0 : index
    %c0_8 = arith.constant 0 : index
    %c0_9 = arith.constant 0 : index
    %5 = vector.load %arg3[%c0_6, %c0_7, %c0_8, %c0_9] : memref<1x1x18x72xbf16, #tpu.memory_space<vmem>>, vector<1x1x18x72xbf16>
    %6 = vector.shape_cast %5 : vector<1x1x18x72xbf16> to vector<18x72xbf16>
    %c1 = arith.constant 1 : index
    %c0_10 = arith.constant 0 : index
    %c0_11 = arith.constant 0 : index
    %7 = vector.load %arg9[%c1, %c0_10, %c0_11] : memref<3x18x72xbf16, #tpu.memory_space<vmem>>, vector<1x18x72xbf16>
    %8 = vector.shape_cast %7 : vector<1x18x72xbf16> to vector<18x72xbf16>
    %9 = vector.shape_cast %6 : vector<18x72xbf16> to vector<1x18x72xbf16>
    tpu.vector_store %arg9[%c1, %c0_10, %c0_11], %9 {strides = array<i32>} : memref<3x18x72xbf16, #tpu.memory_space<vmem>>, vector<1x18x72xbf16>,
    %c0_12 = arith.constant 0 : index
    %c0_13 = arith.constant 0 : index
    %c0_14 = arith.constant 0 : index
    %c0_15 = arith.constant 0 : index
    %10 = vector.load %arg4[%c0_12, %c0_13, %c0_14, %c0_15] : memref<1x1x18x72xbf16, #tpu.memory_space<vmem>>, vector<1x1x18x72xbf16>
    %11 = vector.shape_cast %10 : vector<1x1x18x72xbf16> to vector<18x72xbf16>
    %c2 = arith.constant 2 : index
    %c0_16 = arith.constant 0 : index
    %c0_17 = arith.constant 0 : index
    %12 = vector.load %arg9[%c2, %c0_16, %c0_17] : memref<3x18x72xbf16, #tpu.memory_space<vmem>>, vector<1x18x72xbf16>
    %13 = vector.shape_cast %12 : vector<1x18x72xbf16> to vector<18x72xbf16>
    %14 = vector.shape_cast %11 : vector<18x72xbf16> to vector<1x18x72xbf16>
    tpu.vector_store %arg9[%c2, %c0_16, %c0_17], %14 {strides = array<i32>} : memref<3x18x72xbf16, #tpu.memory_space<vmem>>, vector<1x18x72xbf16>,
    %cst = arith.constant 0.000000e+00 : f32
    %15 = vector.broadcast %cst : f32 to vector<16x128xf32>
    %c0_18 = arith.constant 0 : index
    %c0_19 = arith.constant 0 : index
    %c0_20 = arith.constant 0 : index
    %16 = vector.load %arg9[%c0_18, %c0_19, %c0_20] : memref<3x18x72xbf16, #tpu.memory_space<vmem>>, vector<1x16x64xbf16>
    %17 = vector.shape_cast %16 : vector<1x16x64xbf16> to vector<16x64xbf16>
    %c0_21 = arith.constant 0 : index
    %c0_22 = arith.constant 0 : index
    %c0_23 = arith.constant 0 : index
    %18 = vector.load %arg5[%c0_21, %c0_22, %c0_23] : memref<27x64x128xbf16, #tpu.memory_space<vmem>>, vector<1x64x128xbf16>
    %19 = vector.shape_cast %18 : vector<1x64x128xbf16> to vector<64x128xbf16>
    %cst_24 = arith.constant dense<0.000000e+00> : vector<16x128xf32>
    %20 = tpu.matmul %17, %19, %cst_24 {dimension_numbers = #tpu.dot_dimension_numbers<[1], [0], [0], [1], [0, 0, 1, 1], [], []>} : vector<16x64xbf16>, vector<64x128xbf16>, vector<16x128xf32> -> vector<16x128xf32>
    %21 = arith.addf %15, %20 : vector<16x128xf32>
    %c0_25 = arith.constant 0 : index
    %c0_26 = arith.constant 0 : index
    %c4 = arith.constant 4 : index
    %22 = vector.load %arg9[%c0_25, %c0_26, %c4] : memref<3x18x72xbf16, #tpu.memory_space<vmem>>, vector<1x16x64xbf16>
    %23 = vector.shape_cast %22 : vector<1x16x64xbf16> to vector<16x64xbf16>
    %c1_27 = arith.constant 1 : index
    %c0_28 = arith.constant 0 : index
    %c0_29 = arith.constant 0 : index
    %24 = vector.load %arg5[%c1_27, %c0_28, %c0_29] : memref<27x64x128xbf16, #tpu.memory_space<vmem>>, vector<1x64x128xbf16>
    %25 = vector.shape_cast %24 : vector<1x64x128xbf16> to vector<64x128xbf16>
    %cst_30 = arith.constant dense<0.000000e+00> : vector<16x128xf32>
    %26 = tpu.matmul %23, %25, %cst_30 {dimension_numbers = #tpu.dot_dimension_numbers<[1], [0], [0], [1], [0, 0, 1, 1], [], []>} : vector<16x64xbf16>, vector<64x128xbf16>, vector<16x128xf32> -> vector<16x128xf32>
    %27 = arith.addf %21, %26 : vector<16x128xf32>
    %c0_31 = arith.constant 0 : index
    %c0_32 = arith.constant 0 : index
    %c8 = arith.constant 8 : index
    %28 = vector.load %arg9[%c0_31, %c0_32, %c8] : memref<3x18x72xbf16, #tpu.memory_space<vmem>>, vector<1x16x64xbf16>
    %29 = vector.shape_cast %28 : vector<1x16x64xbf16> to vector<16x64xbf16>
    %c2_33 = arith.constant 2 : index
    %c0_34 = arith.constant 0 : index
    %c0_35 = arith.constant 0 : index
    %30 = vector.load %arg5[%c2_33, %c0_34, %c0_35] : memref<27x64x128xbf16, #tpu.memory_space<vmem>>, vector<1x64x128xbf16>
    %31 = vector.shape_cast %30 : vector<1x64x128xbf16> to vector<64x128xbf16>
    %cst_36 = arith.constant dense<0.000000e+00> : vector<16x128xf32>
    %32 = tpu.matmul %29, %31, %cst_36 {dimension_numbers = #tpu.dot_dimension_numbers<[1], [0], [0], [1], [0, 0, 1, 1], [], []>} : vector<16x64xbf16>, vector<64x128xbf16>, vector<16x128xf32> -> vector<16x128xf32>
    %33 = arith.addf %27, %32 : vector<16x128xf32>
    %c0_37 = arith.constant 0 : index
    %c1_38 = arith.constant 1 : index
    %c0_39 = arith.constant 0 : index
    %34 = vector.load %arg9[%c0_37, %c1_38, %c0_39] : memref<3x18x72xbf16, #tpu.memory_space<vmem>>, vector<1x16x64xbf16>
    %35 = vector.shape_cast %34 : vector<1x16x64xbf16> to vector<16x64xbf16>
    %c3 = arith.constant 3 : index
    %c0_40 = arith.constant 0 : index
    %c0_41 = arith.constant 0 : index
    %36 = vector.load %arg5[%c3, %c0_40, %c0_41] : memref<27x64x128xbf16, #tpu.memory_space<vmem>>, vector<1x64x128xbf16>
    %37 = vector.shape_cast %36 : vector<1x64x128xbf16> to vector<64x128xbf16>
    %cst_42 = arith.constant dense<0.000000e+00> : vector<16x128xf32>
    %38 = tpu.matmul %35, %37, %cst_42 {dimension_numbers = #tpu.dot_dimension_numbers<[1], [0], [0], [1], [0, 0, 1, 1], [], []>} : vector<16x64xbf16>, vector<64x128xbf16>, vector<16x128xf32> -> vector<16x128xf32>
    %39 = arith.addf %33, %38 : vector<16x128xf32>
    %c0_43 = arith.constant 0 : index
    %c1_44 = arith.constant 1 : index
    %c4_45 = arith.constant 4 : index
    %40 = vector.load %arg9[%c0_43, %c1_44, %c4_45] : memref<3x18x72xbf16, #tpu.memory_space<vmem>>, vector<1x16x64xbf16>
    %41 = vector.shape_cast %40 : vector<1x16x64xbf16> to vector<16x64xbf16>
    %c4_46 = arith.constant 4 : index
    %c0_47 = arith.constant 0 : index
    %c0_48 = arith.constant 0 : index
    %42 = vector.load %arg5[%c4_46, %c0_47, %c0_48] : memref<27x64x128xbf16, #tpu.memory_space<vmem>>, vector<1x64x128xbf16>
    %43 = vector.shape_cast %42 : vector<1x64x128xbf16> to vector<64x128xbf16>
    %cst_49 = arith.constant dense<0.000000e+00> : vector<16x128xf32>
    %44 = tpu.matmul %41, %43, %cst_49 {dimension_numbers = #tpu.dot_dimension_numbers<[1], [0], [0], [1], [0, 0, 1, 1], [], []>} : vector<16x64xbf16>, vector<64x128xbf16>, vector<16x128xf32> -> vector<16x128xf32>
    %45 = arith.addf %39, %44 : vector<16x128xf32>
    %c0_50 = arith.constant 0 : index
    %c1_51 = arith.constant 1 : index
    %c8_52 = arith.constant 8 : index
    %46 = vector.load %arg9[%c0_50, %c1_51, %c8_52] : memref<3x18x72xbf16, #tpu.memory_space<vmem>>, vector<1x16x64xbf16>
    %47 = vector.shape_cast %46 : vector<1x16x64xbf16> to vector<16x64xbf16>
    %c5 = arith.constant 5 : index
    %c0_53 = arith.constant 0 : index
    %c0_54 = arith.constant 0 : index
    %48 = vector.load %arg5[%c5, %c0_53, %c0_54] : memref<27x64x128xbf16, #tpu.memory_space<vmem>>, vector<1x64x128xbf16>
    %49 = vector.shape_cast %48 : vector<1x64x128xbf16> to vector<64x128xbf16>
    %cst_55 = arith.constant dense<0.000000e+00> : vector<16x128xf32>
    %50 = tpu.matmul %47, %49, %cst_55 {dimension_numbers = #tpu.dot_dimension_numbers<[1], [0], [0], [1], [0, 0, 1, 1], [], []>} : vector<16x64xbf16>, vector<64x128xbf16>, vector<16x128xf32> -> vector<16x128xf32>
    %51 = arith.addf %45, %50 : vector<16x128xf32>
    %c0_56 = arith.constant 0 : index
    %c2_57 = arith.constant 2 : index
    %c0_58 = arith.constant 0 : index
    %52 = vector.load %arg9[%c0_56, %c2_57, %c0_58] : memref<3x18x72xbf16, #tpu.memory_space<vmem>>, vector<1x16x64xbf16>
    %53 = vector.shape_cast %52 : vector<1x16x64xbf16> to vector<16x64xbf16>
    %c6 = arith.constant 6 : index
    %c0_59 = arith.constant 0 : index
    %c0_60 = arith.constant 0 : index
    %54 = vector.load %arg5[%c6, %c0_59, %c0_60] : memref<27x64x128xbf16, #tpu.memory_space<vmem>>, vector<1x64x128xbf16>
    %55 = vector.shape_cast %54 : vector<1x64x128xbf16> to vector<64x128xbf16>
    %cst_61 = arith.constant dense<0.000000e+00> : vector<16x128xf32>
    %56 = tpu.matmul %53, %55, %cst_61 {dimension_numbers = #tpu.dot_dimension_numbers<[1], [0], [0], [1], [0, 0, 1, 1], [], []>} : vector<16x64xbf16>, vector<64x128xbf16>, vector<16x128xf32> -> vector<16x128xf32>
    %57 = arith.addf %51, %56 : vector<16x128xf32>
    %c0_62 = arith.constant 0 : index
    %c2_63 = arith.constant 2 : index
    %c4_64 = arith.constant 4 : index
    %58 = vector.load %arg9[%c0_62, %c2_63, %c4_64] : memref<3x18x72xbf16, #tpu.memory_space<vmem>>, vector<1x16x64xbf16>
    %59 = vector.shape_cast %58 : vector<1x16x64xbf16> to vector<16x64xbf16>
    %c7 = arith.constant 7 : index
    %c0_65 = arith.constant 0 : index
    %c0_66 = arith.constant 0 : index
    %60 = vector.load %arg5[%c7, %c0_65, %c0_66] : memref<27x64x128xbf16, #tpu.memory_space<vmem>>, vector<1x64x128xbf16>
    %61 = vector.shape_cast %60 : vector<1x64x128xbf16> to vector<64x128xbf16>
    %cst_67 = arith.constant dense<0.000000e+00> : vector<16x128xf32>
    %62 = tpu.matmul %59, %61, %cst_67 {dimension_numbers = #tpu.dot_dimension_numbers<[1], [0], [0], [1], [0, 0, 1, 1], [], []>} : vector<16x64xbf16>, vector<64x128xbf16>, vector<16x128xf32> -> vector<16x128xf32>
    %63 = arith.addf %57, %62 : vector<16x128xf32>
    %c0_68 = arith.constant 0 : index
    %c2_69 = arith.constant 2 : index
    %c8_70 = arith.constant 8 : index
    %64 = vector.load %arg9[%c0_68, %c2_69, %c8_70] : memref<3x18x72xbf16, #tpu.memory_space<vmem>>, vector<1x16x64xbf16>
    %65 = vector.shape_cast %64 : vector<1x16x64xbf16> to vector<16x64xbf16>
    %c8_71 = arith.constant 8 : index
    %c0_72 = arith.constant 0 : index
    %c0_73 = arith.constant 0 : index
    %66 = vector.load %arg5[%c8_71, %c0_72, %c0_73] : memref<27x64x128xbf16, #tpu.memory_space<vmem>>, vector<1x64x128xbf16>
    %67 = vector.shape_cast %66 : vector<1x64x128xbf16> to vector<64x128xbf16>
    %cst_74 = arith.constant dense<0.000000e+00> : vector<16x128xf32>
    %68 = tpu.matmul %65, %67, %cst_74 {dimension_numbers = #tpu.dot_dimension_numbers<[1], [0], [0], [1], [0, 0, 1, 1], [], []>} : vector<16x64xbf16>, vector<64x128xbf16>, vector<16x128xf32> -> vector<16x128xf32>
    %69 = arith.addf %63, %68 : vector<16x128xf32>
    %c1_75 = arith.constant 1 : index
    %c0_76 = arith.constant 0 : index
    %c0_77 = arith.constant 0 : index
    %70 = vector.load %arg9[%c1_75, %c0_76, %c0_77] : memref<3x18x72xbf16, #tpu.memory_space<vmem>>, vector<1x16x64xbf16>
    %71 = vector.shape_cast %70 : vector<1x16x64xbf16> to vector<16x64xbf16>
    %c9 = arith.constant 9 : index
    %c0_78 = arith.constant 0 : index
    %c0_79 = arith.constant 0 : index
    %72 = vector.load %arg5[%c9, %c0_78, %c0_79] : memref<27x64x128xbf16, #tpu.memory_space<vmem>>, vector<1x64x128xbf16>
    %73 = vector.shape_cast %72 : vector<1x64x128xbf16> to vector<64x128xbf16>
    %cst_80 = arith.constant dense<0.000000e+00> : vector<16x128xf32>
    %74 = tpu.matmul %71, %73, %cst_80 {dimension_numbers = #tpu.dot_dimension_numbers<[1], [0], [0], [1], [0, 0, 1, 1], [], []>} : vector<16x64xbf16>, vector<64x128xbf16>, vector<16x128xf32> -> vector<16x128xf32>
    %75 = arith.addf %69, %74 : vector<16x128xf32>
    %c1_81 = arith.constant 1 : index
    %c0_82 = arith.constant 0 : index
    %c4_83 = arith.constant 4 : index
    %76 = vector.load %arg9[%c1_81, %c0_82, %c4_83] : memref<3x18x72xbf16, #tpu.memory_space<vmem>>, vector<1x16x64xbf16>
    %77 = vector.shape_cast %76 : vector<1x16x64xbf16> to vector<16x64xbf16>
    %c10 = arith.constant 10 : index
    %c0_84 = arith.constant 0 : index
    %c0_85 = arith.constant 0 : index
    %78 = vector.load %arg5[%c10, %c0_84, %c0_85] : memref<27x64x128xbf16, #tpu.memory_space<vmem>>, vector<1x64x128xbf16>
    %79 = vector.shape_cast %78 : vector<1x64x128xbf16> to vector<64x128xbf16>
    %cst_86 = arith.constant dense<0.000000e+00> : vector<16x128xf32>
    %80 = tpu.matmul %77, %79, %cst_86 {dimension_numbers = #tpu.dot_dimension_numbers<[1], [0], [0], [1], [0, 0, 1, 1], [], []>} : vector<16x64xbf16>, vector<64x128xbf16>, vector<16x128xf32> -> vector<16x128xf32>
    %81 = arith.addf %75, %80 : vector<16x128xf32>
    %c1_87 = arith.constant 1 : index
    %c0_88 = arith.constant 0 : index
    %c8_89 = arith.constant 8 : index
    %82 = vector.load %arg9[%c1_87, %c0_88, %c8_89] : memref<3x18x72xbf16, #tpu.memory_space<vmem>>, vector<1x16x64xbf16>
    %83 = vector.shape_cast %82 : vector<1x16x64xbf16> to vector<16x64xbf16>
    %c11 = arith.constant 11 : index
    %c0_90 = arith.constant 0 : index
    %c0_91 = arith.constant 0 : index
    %84 = vector.load %arg5[%c11, %c0_90, %c0_91] : memref<27x64x128xbf16, #tpu.memory_space<vmem>>, vector<1x64x128xbf16>
    %85 = vector.shape_cast %84 : vector<1x64x128xbf16> to vector<64x128xbf16>
    %cst_92 = arith.constant dense<0.000000e+00> : vector<16x128xf32>
    %86 = tpu.matmul %83, %85, %cst_92 {dimension_numbers = #tpu.dot_dimension_numbers<[1], [0], [0], [1], [0, 0, 1, 1], [], []>} : vector<16x64xbf16>, vector<64x128xbf16>, vector<16x128xf32> -> vector<16x128xf32>
    %87 = arith.addf %81, %86 : vector<16x128xf32>
    %c1_93 = arith.constant 1 : index
    %c1_94 = arith.constant 1 : index
    %c0_95 = arith.constant 0 : index
    %88 = vector.load %arg9[%c1_93, %c1_94, %c0_95] : memref<3x18x72xbf16, #tpu.memory_space<vmem>>, vector<1x16x64xbf16>
    %89 = vector.shape_cast %88 : vector<1x16x64xbf16> to vector<16x64xbf16>
    %c12 = arith.constant 12 : index
    %c0_96 = arith.constant 0 : index
    %c0_97 = arith.constant 0 : index
    %90 = vector.load %arg5[%c12, %c0_96, %c0_97] : memref<27x64x128xbf16, #tpu.memory_space<vmem>>, vector<1x64x128xbf16>
    %91 = vector.shape_cast %90 : vector<1x64x128xbf16> to vector<64x128xbf16>
    %cst_98 = arith.constant dense<0.000000e+00> : vector<16x128xf32>
    %92 = tpu.matmul %89, %91, %cst_98 {dimension_numbers = #tpu.dot_dimension_numbers<[1], [0], [0], [1], [0, 0, 1, 1], [], []>} : vector<16x64xbf16>, vector<64x128xbf16>, vector<16x128xf32> -> vector<16x128xf32>
    %93 = arith.addf %87, %92 : vector<16x128xf32>
    %c1_99 = arith.constant 1 : index
    %c1_100 = arith.constant 1 : index
    %c4_101 = arith.constant 4 : index
    %94 = vector.load %arg9[%c1_99, %c1_100, %c4_101] : memref<3x18x72xbf16, #tpu.memory_space<vmem>>, vector<1x16x64xbf16>
    %95 = vector.shape_cast %94 : vector<1x16x64xbf16> to vector<16x64xbf16>
    %c13 = arith.constant 13 : index
    %c0_102 = arith.constant 0 : index
    %c0_103 = arith.constant 0 : index
    %96 = vector.load %arg5[%c13, %c0_102, %c0_103] : memref<27x64x128xbf16, #tpu.memory_space<vmem>>, vector<1x64x128xbf16>
    %97 = vector.shape_cast %96 : vector<1x64x128xbf16> to vector<64x128xbf16>
    %cst_104 = arith.constant dense<0.000000e+00> : vector<16x128xf32>
    %98 = tpu.matmul %95, %97, %cst_104 {dimension_numbers = #tpu.dot_dimension_numbers<[1], [0], [0], [1], [0, 0, 1, 1], [], []>} : vector<16x64xbf16>, vector<64x128xbf16>, vector<16x128xf32> -> vector<16x128xf32>
    %99 = arith.addf %93, %98 : vector<16x128xf32>
    %c1_105 = arith.constant 1 : index
    %c1_106 = arith.constant 1 : index
    %c8_107 = arith.constant 8 : index
    %100 = vector.load %arg9[%c1_105, %c1_106, %c8_107] : memref<3x18x72xbf16, #tpu.memory_space<vmem>>, vector<1x16x64xbf16>
    %101 = vector.shape_cast %100 : vector<1x16x64xbf16> to vector<16x64xbf16>
    %c14 = arith.constant 14 : index
    %c0_108 = arith.constant 0 : index
    %c0_109 = arith.constant 0 : index
    %102 = vector.load %arg5[%c14, %c0_108, %c0_109] : memref<27x64x128xbf16, #tpu.memory_space<vmem>>, vector<1x64x128xbf16>
    %103 = vector.shape_cast %102 : vector<1x64x128xbf16> to vector<64x128xbf16>
    %cst_110 = arith.constant dense<0.000000e+00> : vector<16x128xf32>
    %104 = tpu.matmul %101, %103, %cst_110 {dimension_numbers = #tpu.dot_dimension_numbers<[1], [0], [0], [1], [0, 0, 1, 1], [], []>} : vector<16x64xbf16>, vector<64x128xbf16>, vector<16x128xf32> -> vector<16x128xf32>
    %105 = arith.addf %99, %104 : vector<16x128xf32>
    %c1_111 = arith.constant 1 : index
    %c2_112 = arith.constant 2 : index
    %c0_113 = arith.constant 0 : index
    %106 = vector.load %arg9[%c1_111, %c2_112, %c0_113] : memref<3x18x72xbf16, #tpu.memory_space<vmem>>, vector<1x16x64xbf16>
    %107 = vector.shape_cast %106 : vector<1x16x64xbf16> to vector<16x64xbf16>
    %c15 = arith.constant 15 : index
    %c0_114 = arith.constant 0 : index
    %c0_115 = arith.constant 0 : index
    %108 = vector.load %arg5[%c15, %c0_114, %c0_115] : memref<27x64x128xbf16, #tpu.memory_space<vmem>>, vector<1x64x128xbf16>
    %109 = vector.shape_cast %108 : vector<1x64x128xbf16> to vector<64x128xbf16>
    %cst_116 = arith.constant dense<0.000000e+00> : vector<16x128xf32>
    %110 = tpu.matmul %107, %109, %cst_116 {dimension_numbers = #tpu.dot_dimension_numbers<[1], [0], [0], [1], [0, 0, 1, 1], [], []>} : vector<16x64xbf16>, vector<64x128xbf16>, vector<16x128xf32> -> vector<16x128xf32>
    %111 = arith.addf %105, %110 : vector<16x128xf32>
    %c1_117 = arith.constant 1 : index
    %c2_118 = arith.constant 2 : index
    %c4_119 = arith.constant 4 : index
    %112 = vector.load %arg9[%c1_117, %c2_118, %c4_119] : memref<3x18x72xbf16, #tpu.memory_space<vmem>>, vector<1x16x64xbf16>
    %113 = vector.shape_cast %112 : vector<1x16x64xbf16> to vector<16x64xbf16>
    %c16 = arith.constant 16 : index
    %c0_120 = arith.constant 0 : index
    %c0_121 = arith.constant 0 : index
    %114 = vector.load %arg5[%c16, %c0_120, %c0_121] : memref<27x64x128xbf16, #tpu.memory_space<vmem>>, vector<1x64x128xbf16>
    %115 = vector.shape_cast %114 : vector<1x64x128xbf16> to vector<64x128xbf16>
    %cst_122 = arith.constant dense<0.000000e+00> : vector<16x128xf32>
    %116 = tpu.matmul %113, %115, %cst_122 {dimension_numbers = #tpu.dot_dimension_numbers<[1], [0], [0], [1], [0, 0, 1, 1], [], []>} : vector<16x64xbf16>, vector<64x128xbf16>, vector<16x128xf32> -> vector<16x128xf32>
    %117 = arith.addf %111, %116 : vector<16x128xf32>
    %c1_123 = arith.constant 1 : index
    %c2_124 = arith.constant 2 : index
    %c8_125 = arith.constant 8 : index
    %118 = vector.load %arg9[%c1_123, %c2_124, %c8_125] : memref<3x18x72xbf16, #tpu.memory_space<vmem>>, vector<1x16x64xbf16>
    %119 = vector.shape_cast %118 : vector<1x16x64xbf16> to vector<16x64xbf16>
    %c17 = arith.constant 17 : index
    %c0_126 = arith.constant 0 : index
    %c0_127 = arith.constant 0 : index
    %120 = vector.load %arg5[%c17, %c0_126, %c0_127] : memref<27x64x128xbf16, #tpu.memory_space<vmem>>, vector<1x64x128xbf16>
    %121 = vector.shape_cast %120 : vector<1x64x128xbf16> to vector<64x128xbf16>
    %cst_128 = arith.constant dense<0.000000e+00> : vector<16x128xf32>
    %122 = tpu.matmul %119, %121, %cst_128 {dimension_numbers = #tpu.dot_dimension_numbers<[1], [0], [0], [1], [0, 0, 1, 1], [], []>} : vector<16x64xbf16>, vector<64x128xbf16>, vector<16x128xf32> -> vector<16x128xf32>
    %123 = arith.addf %117, %122 : vector<16x128xf32>
    %c2_129 = arith.constant 2 : index
    %c0_130 = arith.constant 0 : index
    %c0_131 = arith.constant 0 : index
    %124 = vector.load %arg9[%c2_129, %c0_130, %c0_131] : memref<3x18x72xbf16, #tpu.memory_space<vmem>>, vector<1x16x64xbf16>
    %125 = vector.shape_cast %124 : vector<1x16x64xbf16> to vector<16x64xbf16>
    %c18 = arith.constant 18 : index
    %c0_132 = arith.constant 0 : index
    %c0_133 = arith.constant 0 : index
    %126 = vector.load %arg5[%c18, %c0_132, %c0_133] : memref<27x64x128xbf16, #tpu.memory_space<vmem>>, vector<1x64x128xbf16>
    %127 = vector.shape_cast %126 : vector<1x64x128xbf16> to vector<64x128xbf16>
    %cst_134 = arith.constant dense<0.000000e+00> : vector<16x128xf32>
    %128 = tpu.matmul %125, %127, %cst_134 {dimension_numbers = #tpu.dot_dimension_numbers<[1], [0], [0], [1], [0, 0, 1, 1], [], []>} : vector<16x64xbf16>, vector<64x128xbf16>, vector<16x128xf32> -> vector<16x128xf32>
    %129 = arith.addf %123, %128 : vector<16x128xf32>
    %c2_135 = arith.constant 2 : index
    %c0_136 = arith.constant 0 : index
    %c4_137 = arith.constant 4 : index
    %130 = vector.load %arg9[%c2_135, %c0_136, %c4_137] : memref<3x18x72xbf16, #tpu.memory_space<vmem>>, vector<1x16x64xbf16>
    %131 = vector.shape_cast %130 : vector<1x16x64xbf16> to vector<16x64xbf16>
    %c19 = arith.constant 19 : index
    %c0_138 = arith.constant 0 : index
    %c0_139 = arith.constant 0 : index
    %132 = vector.load %arg5[%c19, %c0_138, %c0_139] : memref<27x64x128xbf16, #tpu.memory_space<vmem>>, vector<1x64x128xbf16>
    %133 = vector.shape_cast %132 : vector<1x64x128xbf16> to vector<64x128xbf16>
    %cst_140 = arith.constant dense<0.000000e+00> : vector<16x128xf32>
    %134 = tpu.matmul %131, %133, %cst_140 {dimension_numbers = #tpu.dot_dimension_numbers<[1], [0], [0], [1], [0, 0, 1, 1], [], []>} : vector<16x64xbf16>, vector<64x128xbf16>, vector<16x128xf32> -> vector<16x128xf32>
    %135 = arith.addf %129, %134 : vector<16x128xf32>
    %c2_141 = arith.constant 2 : index
    %c0_142 = arith.constant 0 : index
    %c8_143 = arith.constant 8 : index
    %136 = vector.load %arg9[%c2_141, %c0_142, %c8_143] : memref<3x18x72xbf16, #tpu.memory_space<vmem>>, vector<1x16x64xbf16>
    %137 = vector.shape_cast %136 : vector<1x16x64xbf16> to vector<16x64xbf16>
    %c20 = arith.constant 20 : index
    %c0_144 = arith.constant 0 : index
    %c0_145 = arith.constant 0 : index
    %138 = vector.load %arg5[%c20, %c0_144, %c0_145] : memref<27x64x128xbf16, #tpu.memory_space<vmem>>, vector<1x64x128xbf16>
    %139 = vector.shape_cast %138 : vector<1x64x128xbf16> to vector<64x128xbf16>
    %cst_146 = arith.constant dense<0.000000e+00> : vector<16x128xf32>
    %140 = tpu.matmul %137, %139, %cst_146 {dimension_numbers = #tpu.dot_dimension_numbers<[1], [0], [0], [1], [0, 0, 1, 1], [], []>} : vector<16x64xbf16>, vector<64x128xbf16>, vector<16x128xf32> -> vector<16x128xf32>
    %141 = arith.addf %135, %140 : vector<16x128xf32>
    %c2_147 = arith.constant 2 : index
    %c1_148 = arith.constant 1 : index
    %c0_149 = arith.constant 0 : index
    %142 = vector.load %arg9[%c2_147, %c1_148, %c0_149] : memref<3x18x72xbf16, #tpu.memory_space<vmem>>, vector<1x16x64xbf16>
    %143 = vector.shape_cast %142 : vector<1x16x64xbf16> to vector<16x64xbf16>
    %c21 = arith.constant 21 : index
    %c0_150 = arith.constant 0 : index
    %c0_151 = arith.constant 0 : index
    %144 = vector.load %arg5[%c21, %c0_150, %c0_151] : memref<27x64x128xbf16, #tpu.memory_space<vmem>>, vector<1x64x128xbf16>
    %145 = vector.shape_cast %144 : vector<1x64x128xbf16> to vector<64x128xbf16>
    %cst_152 = arith.constant dense<0.000000e+00> : vector<16x128xf32>
    %146 = tpu.matmul %143, %145, %cst_152 {dimension_numbers = #tpu.dot_dimension_numbers<[1], [0], [0], [1], [0, 0, 1, 1], [], []>} : vector<16x64xbf16>, vector<64x128xbf16>, vector<16x128xf32> -> vector<16x128xf32>
    %147 = arith.addf %141, %146 : vector<16x128xf32>
    %c2_153 = arith.constant 2 : index
    %c1_154 = arith.constant 1 : index
    %c4_155 = arith.constant 4 : index
    %148 = vector.load %arg9[%c2_153, %c1_154, %c4_155] : memref<3x18x72xbf16, #tpu.memory_space<vmem>>, vector<1x16x64xbf16>
    %149 = vector.shape_cast %148 : vector<1x16x64xbf16> to vector<16x64xbf16>
    %c22 = arith.constant 22 : index
    %c0_156 = arith.constant 0 : index
    %c0_157 = arith.constant 0 : index
    %150 = vector.load %arg5[%c22, %c0_156, %c0_157] : memref<27x64x128xbf16, #tpu.memory_space<vmem>>, vector<1x64x128xbf16>
    %151 = vector.shape_cast %150 : vector<1x64x128xbf16> to vector<64x128xbf16>
    %cst_158 = arith.constant dense<0.000000e+00> : vector<16x128xf32>
    %152 = tpu.matmul %149, %151, %cst_158 {dimension_numbers = #tpu.dot_dimension_numbers<[1], [0], [0], [1], [0, 0, 1, 1], [], []>} : vector<16x64xbf16>, vector<64x128xbf16>, vector<16x128xf32> -> vector<16x128xf32>
    %153 = arith.addf %147, %152 : vector<16x128xf32>
    %c2_159 = arith.constant 2 : index
    %c1_160 = arith.constant 1 : index
    %c8_161 = arith.constant 8 : index
    %154 = vector.load %arg9[%c2_159, %c1_160, %c8_161] : memref<3x18x72xbf16, #tpu.memory_space<vmem>>, vector<1x16x64xbf16>
    %155 = vector.shape_cast %154 : vector<1x16x64xbf16> to vector<16x64xbf16>
    %c23 = arith.constant 23 : index
    %c0_162 = arith.constant 0 : index
    %c0_163 = arith.constant 0 : index
    %156 = vector.load %arg5[%c23, %c0_162, %c0_163] : memref<27x64x128xbf16, #tpu.memory_space<vmem>>, vector<1x64x128xbf16>
    %157 = vector.shape_cast %156 : vector<1x64x128xbf16> to vector<64x128xbf16>
    %cst_164 = arith.constant dense<0.000000e+00> : vector<16x128xf32>
    %158 = tpu.matmul %155, %157, %cst_164 {dimension_numbers = #tpu.dot_dimension_numbers<[1], [0], [0], [1], [0, 0, 1, 1], [], []>} : vector<16x64xbf16>, vector<64x128xbf16>, vector<16x128xf32> -> vector<16x128xf32>
    %159 = arith.addf %153, %158 : vector<16x128xf32>
    %c2_165 = arith.constant 2 : index
    %c2_166 = arith.constant 2 : index
    %c0_167 = arith.constant 0 : index
    %160 = vector.load %arg9[%c2_165, %c2_166, %c0_167] : memref<3x18x72xbf16, #tpu.memory_space<vmem>>, vector<1x16x64xbf16>
    %161 = vector.shape_cast %160 : vector<1x16x64xbf16> to vector<16x64xbf16>
    %c24 = arith.constant 24 : index
    %c0_168 = arith.constant 0 : index
    %c0_169 = arith.constant 0 : index
    %162 = vector.load %arg5[%c24, %c0_168, %c0_169] : memref<27x64x128xbf16, #tpu.memory_space<vmem>>, vector<1x64x128xbf16>
    %163 = vector.shape_cast %162 : vector<1x64x128xbf16> to vector<64x128xbf16>
    %cst_170 = arith.constant dense<0.000000e+00> : vector<16x128xf32>
    %164 = tpu.matmul %161, %163, %cst_170 {dimension_numbers = #tpu.dot_dimension_numbers<[1], [0], [0], [1], [0, 0, 1, 1], [], []>} : vector<16x64xbf16>, vector<64x128xbf16>, vector<16x128xf32> -> vector<16x128xf32>
    %165 = arith.addf %159, %164 : vector<16x128xf32>
    %c2_171 = arith.constant 2 : index
    %c2_172 = arith.constant 2 : index
    %c4_173 = arith.constant 4 : index
    %166 = vector.load %arg9[%c2_171, %c2_172, %c4_173] : memref<3x18x72xbf16, #tpu.memory_space<vmem>>, vector<1x16x64xbf16>
    %167 = vector.shape_cast %166 : vector<1x16x64xbf16> to vector<16x64xbf16>
    %c25 = arith.constant 25 : index
    %c0_174 = arith.constant 0 : index
    %c0_175 = arith.constant 0 : index
    %168 = vector.load %arg5[%c25, %c0_174, %c0_175] : memref<27x64x128xbf16, #tpu.memory_space<vmem>>, vector<1x64x128xbf16>
    %169 = vector.shape_cast %168 : vector<1x64x128xbf16> to vector<64x128xbf16>
    %cst_176 = arith.constant dense<0.000000e+00> : vector<16x128xf32>
    %170 = tpu.matmul %167, %169, %cst_176 {dimension_numbers = #tpu.dot_dimension_numbers<[1], [0], [0], [1], [0, 0, 1, 1], [], []>} : vector<16x64xbf16>, vector<64x128xbf16>, vector<16x128xf32> -> vector<16x128xf32>
    %171 = arith.addf %165, %170 : vector<16x128xf32>
    %c2_177 = arith.constant 2 : index
    %c2_178 = arith.constant 2 : index
    %c8_179 = arith.constant 8 : index
    %172 = vector.load %arg9[%c2_177, %c2_178, %c8_179] : memref<3x18x72xbf16, #tpu.memory_space<vmem>>, vector<1x16x64xbf16>
    %173 = vector.shape_cast %172 : vector<1x16x64xbf16> to vector<16x64xbf16>
    %c26 = arith.constant 26 : index
    %c0_180 = arith.constant 0 : index
    %c0_181 = arith.constant 0 : index
    %174 = vector.load %arg5[%c26, %c0_180, %c0_181] : memref<27x64x128xbf16, #tpu.memory_space<vmem>>, vector<1x64x128xbf16>
    %175 = vector.shape_cast %174 : vector<1x64x128xbf16> to vector<64x128xbf16>
    %cst_182 = arith.constant dense<0.000000e+00> : vector<16x128xf32>
    %176 = tpu.matmul %173, %175, %cst_182 {dimension_numbers = #tpu.dot_dimension_numbers<[1], [0], [0], [1], [0, 0, 1, 1], [], []>} : vector<16x64xbf16>, vector<64x128xbf16>, vector<16x128xf32> -> vector<16x128xf32>
    %177 = arith.addf %171, %176 : vector<16x128xf32>
    %c0_183 = arith.constant 0 : index
    %c0_184 = arith.constant 0 : index
    %178 = vector.load %arg6[%c0_183, %c0_184] : memref<1x128xf32, #tpu.memory_space<vmem>>, vector<1x128xf32>
    %179 = vector.broadcast %178 : vector<1x128xf32> to vector<16x128xf32>
    %180 = arith.addf %177, %179 : vector<16x128xf32>
    %cst_185 = arith.constant dense<0.000000e+00> : vector<128xf32>
    %181 = vector.multi_reduction <add>, %180, %cst_185 [0] : vector<16x128xf32> to vector<128xf32>
    %182 = vector.shape_cast %181 : vector<128xf32> to vector<1x128xf32>
    %c0_186 = arith.constant 0 : index
    %c0_187 = arith.constant 0 : index
    %c0_188 = arith.constant 0 : index
    %c0_189 = arith.constant 0 : index
    %183 = vector.load %arg8[%c0_186, %c0_187, %c0_188, %c0_189] : memref<1x1x2x128xf32, #tpu.memory_space<vmem>>, vector<1x1x1x128xf32>
    %184 = vector.shape_cast %183 : vector<1x1x1x128xf32> to vector<1x128xf32>
    %185 = vector.shape_cast %182 : vector<1x128xf32> to vector<1x1x1x128xf32>
    tpu.vector_store %arg8[%c0_186, %c0_187, %c0_188, %c0_189], %185 {strides = array<i32>} : memref<1x1x2x128xf32, #tpu.memory_space<vmem>>, vector<1x1x1x128xf32>,
    %186 = arith.mulf %180, %180 : vector<16x128xf32>
    %cst_190 = arith.constant dense<0.000000e+00> : vector<128xf32>
    %187 = vector.multi_reduction <add>, %186, %cst_190 [0] : vector<16x128xf32> to vector<128xf32>
    %188 = vector.shape_cast %187 : vector<128xf32> to vector<1x128xf32>
    %c0_191 = arith.constant 0 : index
    %c0_192 = arith.constant 0 : index
    %c1_193 = arith.constant 1 : index
    %c0_194 = arith.constant 0 : index
    %189 = vector.load %arg8[%c0_191, %c0_192, %c1_193, %c0_194] : memref<1x1x2x128xf32, #tpu.memory_space<vmem>>, vector<1x1x1x128xf32>
    %190 = vector.shape_cast %189 : vector<1x1x1x128xf32> to vector<1x128xf32>
    %191 = vector.shape_cast %188 : vector<1x128xf32> to vector<1x1x1x128xf32>
    tpu.vector_store %arg8[%c0_191, %c0_192, %c1_193, %c0_194], %191 {strides = array<i32>} : memref<1x1x2x128xf32, #tpu.memory_space<vmem>>, vector<1x1x1x128xf32>,
    %192 = arith.truncf %180 : vector<16x128xf32> to vector<16x128xbf16>
    %c0_195 = arith.constant 0 : index
    %c0_196 = arith.constant 0 : index
    %c0_197 = arith.constant 0 : index
    %c0_198 = arith.constant 0 : index
    %193 = vector.load %arg7[%c0_195, %c0_196, %c0_197, %c0_198] : memref<1x1x16x128xbf16, #tpu.memory_space<vmem>>, vector<1x1x16x128xbf16>
    %194 = vector.shape_cast %193 : vector<1x1x16x128xbf16> to vector<16x128xbf16>
    %195 = vector.shape_cast %192 : vector<16x128xbf16> to vector<1x1x16x128xbf16>
    tpu.vector_store %arg7[%c0_195, %c0_196, %c0_197, %c0_198], %195 {strides = array<i32>} : memref<1x1x16x128xbf16, #tpu.memory_space<vmem>>, vector<1x1x16x128xbf16>,
    return
  }
  func.func @transform_0(%arg0: i32, %arg1: i32) -> (i32, i32, i32, i32) {
    %c0_i32 = arith.constant 0 : i32
    %0 = arith.addi %arg1, %c0_i32 : i32
    %c0_i32_0 = arith.constant 0 : i32
    %c0_i32_1 = arith.constant 0 : i32
    %c0_i32_2 = arith.constant 0 : i32
    return %arg0, %0, %c0_i32_0, %c0_i32_1 : i32, i32, i32, i32
  }
  func.func @transform_1(%arg0: i32, %arg1: i32) -> (i32, i32, i32, i32) {
    %c1_i32 = arith.constant 1 : i32
    %0 = arith.addi %arg1, %c1_i32 : i32
    %c0_i32 = arith.constant 0 : i32
    %c0_i32_0 = arith.constant 0 : i32
    %c0_i32_1 = arith.constant 0 : i32
    return %arg0, %0, %c0_i32, %c0_i32_0 : i32, i32, i32, i32
  }
  func.func @transform_2(%arg0: i32, %arg1: i32) -> (i32, i32, i32, i32) {
    %c2_i32 = arith.constant 2 : i32
    %0 = arith.addi %arg1, %c2_i32 : i32
    %c0_i32 = arith.constant 0 : i32
    %c0_i32_0 = arith.constant 0 : i32
    %c0_i32_1 = arith.constant 0 : i32
    return %arg0, %0, %c0_i32, %c0_i32_0 : i32, i32, i32, i32
  }
  func.func @transform_3(%arg0: i32, %arg1: i32) -> (i32, i32, i32) {
    %c0_i32 = arith.constant 0 : i32
    %c0_i32_0 = arith.constant 0 : i32
    %c0_i32_1 = arith.constant 0 : i32
    %c0_i32_2 = arith.constant 0 : i32
    return %c0_i32, %c0_i32_0, %c0_i32_1 : i32, i32, i32
  }
  func.func @transform_4(%arg0: i32, %arg1: i32) -> (i32, i32) {
    %c0_i32 = arith.constant 0 : i32
    %c0_i32_0 = arith.constant 0 : i32
    %c0_i32_1 = arith.constant 0 : i32
    return %c0_i32, %c0_i32_0 : i32, i32
  }
  func.func @transform_5(%arg0: i32, %arg1: i32) -> (i32, i32, i32, i32) {
    %c0_i32 = arith.constant 0 : i32
    %c0_i32_0 = arith.constant 0 : i32
    %c0_i32_1 = arith.constant 0 : i32
    return %arg0, %arg1, %c0_i32, %c0_i32_0 : i32, i32, i32, i32
  }
  func.func @transform_6(%arg0: i32, %arg1: i32) -> (i32, i32, i32, i32) {
    %c0_i32 = arith.constant 0 : i32
    %c0_i32_0 = arith.constant 0 : i32
    %c0_i32_1 = arith.constant 0 : i32
    return %arg0, %arg1, %c0_i32, %c0_i32_0 : i32, i32, i32, i32
  }
}

module attributes {stable_mosaic.version = 11 : i64} {
  func.func @kernel(%arg0: i32, %arg1: i32, %arg2: memref<1x1x18x144xbf16, #tpu.memory_space<vmem>>, %arg3: memref<1x1x18x144xbf16, #tpu.memory_space<vmem>>, %arg4: memref<1x1x18x144xbf16, #tpu.memory_space<vmem>>, %arg5: memref<27x128x128xbf16, #tpu.memory_space<vmem>>, %arg6: memref<1x128xf32, #tpu.memory_space<vmem>>, %arg7: memref<1x144xf32, #tpu.memory_space<vmem>>, %arg8: memref<1x144xf32, #tpu.memory_space<vmem>>, %arg9: memref<1x1x16x128xbf16, #tpu.memory_space<vmem>>, %arg10: memref<1x1x2x128xf32, #tpu.memory_space<vmem>>, %arg11: memref<3x18x144xbf16, #tpu.memory_space<vmem>>) attributes {dimension_semantics = [#tpu.dimension_semantics<parallel>, #tpu.dimension_semantics<parallel>], iteration_bounds = array<i64: 2, 16>, scalar_prefetch = 0 : i64, scratch_operands = 1 : i64, tpu.core_type = #tpu.core_type<tc>, window_params = [{transform_indices = @transform_0, window_bounds = array<i64: 1, 1, 18, 144>}, {transform_indices = @transform_1, window_bounds = array<i64: 1, 1, 18, 144>}, {transform_indices = @transform_2, window_bounds = array<i64: 1, 1, 18, 144>}, {pipeline_mode = #tpu.pipeline_mode<synchronous>, transform_indices = @transform_3, window_bounds = array<i64: 27, 128, 128>}, {pipeline_mode = #tpu.pipeline_mode<synchronous>, transform_indices = @transform_4, window_bounds = array<i64: 1, 128>}, {pipeline_mode = #tpu.pipeline_mode<synchronous>, transform_indices = @transform_5, window_bounds = array<i64: 1, 144>}, {pipeline_mode = #tpu.pipeline_mode<synchronous>, transform_indices = @transform_6, window_bounds = array<i64: 1, 144>}, {transform_indices = @transform_7, window_bounds = array<i64: 1, 1, 16, 128>}, {transform_indices = @transform_8, window_bounds = array<i64: 1, 1, 2, 128>}]} {
    %c0 = arith.constant 0 : index
    %c0_0 = arith.constant 0 : index
    %c0_1 = arith.constant 0 : index
    %c0_2 = arith.constant 0 : index
    %0 = vector.load %arg2[%c0, %c0_0, %c0_1, %c0_2] : memref<1x1x18x144xbf16, #tpu.memory_space<vmem>>, vector<1x1x18x144xbf16>
    %1 = vector.shape_cast %0 : vector<1x1x18x144xbf16> to vector<18x144xbf16>
    %2 = arith.extf %1 : vector<18x144xbf16> to vector<18x144xf32>
    %c0_3 = arith.constant 0 : index
    %c0_4 = arith.constant 0 : index
    %3 = vector.load %arg7[%c0_3, %c0_4] : memref<1x144xf32, #tpu.memory_space<vmem>>, vector<1x144xf32>
    %4 = vector.broadcast %3 : vector<1x144xf32> to vector<18x144xf32>
    %5 = arith.mulf %2, %4 : vector<18x144xf32>
    %c0_5 = arith.constant 0 : index
    %c0_6 = arith.constant 0 : index
    %6 = vector.load %arg8[%c0_5, %c0_6] : memref<1x144xf32, #tpu.memory_space<vmem>>, vector<1x144xf32>
    %7 = vector.broadcast %6 : vector<1x144xf32> to vector<18x144xf32>
    %8 = arith.addf %5, %7 : vector<18x144xf32>
    %cst = arith.constant 0.000000e+00 : f32
    %9 = vector.broadcast %cst : f32 to vector<18x144xf32>
    %10 = arith.maximumf %8, %9 : vector<18x144xf32>
    %11 = tpu.iota {dimensions = array<i32: 0>} : vector<18x144xi32>
    %12 = tpu.iota {dimensions = array<i32: 1>} : vector<18x144xi32>
    %c1_i32 = arith.constant 1 : i32
    %13 = vector.broadcast %c1_i32 : i32 to vector<18x144xi32>
    %14 = arith.cmpi sge, %11, %13 : vector<18x144xi32>
    %c16_i32 = arith.constant 16 : i32
    %15 = vector.broadcast %c16_i32 : i32 to vector<18x144xi32>
    %16 = arith.cmpi sle, %11, %15 : vector<18x144xi32>
    %17 = arith.andi %14, %16 : vector<18x144xi1>
    %c8_i32 = arith.constant 8 : i32
    %18 = vector.broadcast %c8_i32 : i32 to vector<18x144xi32>
    %19 = arith.cmpi sge, %12, %18 : vector<18x144xi32>
    %20 = arith.andi %17, %19 : vector<18x144xi1>
    %c136_i32 = arith.constant 136 : i32
    %21 = vector.broadcast %c136_i32 : i32 to vector<18x144xi32>
    %22 = arith.cmpi slt, %12, %21 : vector<18x144xi32>
    %23 = arith.andi %20, %22 : vector<18x144xi1>
    %c0_i32 = arith.constant 0 : i32
    %24 = arith.addi %arg1, %c0_i32 : i32
    %c1_i32_7 = arith.constant 1 : i32
    %25 = arith.cmpi sge, %24, %c1_i32_7 : i32
    %c0_i32_8 = arith.constant 0 : i32
    %26 = arith.addi %arg1, %c0_i32_8 : i32
    %c16_i32_9 = arith.constant 16 : i32
    %27 = arith.cmpi sle, %26, %c16_i32_9 : i32
    %28 = arith.andi %25, %27 : i1
    %29 = vector.broadcast %28 : i1 to vector<18x144xi1>
    %30 = arith.andi %23, %29 : vector<18x144xi1>
    %cst_10 = arith.constant 0.000000e+00 : f32
    %31 = vector.broadcast %cst_10 : f32 to vector<18x144xf32>
    %32 = arith.select %30, %10, %31 : vector<18x144xi1>, vector<18x144xf32>
    %33 = arith.truncf %32 : vector<18x144xf32> to vector<18x144xbf16>
    %c0_11 = arith.constant 0 : index
    %c0_12 = arith.constant 0 : index
    %c0_13 = arith.constant 0 : index
    %34 = vector.load %arg11[%c0_11, %c0_12, %c0_13] : memref<3x18x144xbf16, #tpu.memory_space<vmem>>, vector<1x18x144xbf16>
    %35 = vector.shape_cast %34 : vector<1x18x144xbf16> to vector<18x144xbf16>
    %36 = vector.shape_cast %33 : vector<18x144xbf16> to vector<1x18x144xbf16>
    tpu.vector_store %arg11[%c0_11, %c0_12, %c0_13], %36 {strides = array<i32>} : memref<3x18x144xbf16, #tpu.memory_space<vmem>>, vector<1x18x144xbf16>,
    %c0_14 = arith.constant 0 : index
    %c0_15 = arith.constant 0 : index
    %c0_16 = arith.constant 0 : index
    %c0_17 = arith.constant 0 : index
    %37 = vector.load %arg3[%c0_14, %c0_15, %c0_16, %c0_17] : memref<1x1x18x144xbf16, #tpu.memory_space<vmem>>, vector<1x1x18x144xbf16>
    %38 = vector.shape_cast %37 : vector<1x1x18x144xbf16> to vector<18x144xbf16>
    %39 = arith.extf %38 : vector<18x144xbf16> to vector<18x144xf32>
    %c0_18 = arith.constant 0 : index
    %c0_19 = arith.constant 0 : index
    %40 = vector.load %arg7[%c0_18, %c0_19] : memref<1x144xf32, #tpu.memory_space<vmem>>, vector<1x144xf32>
    %41 = vector.broadcast %40 : vector<1x144xf32> to vector<18x144xf32>
    %42 = arith.mulf %39, %41 : vector<18x144xf32>
    %c0_20 = arith.constant 0 : index
    %c0_21 = arith.constant 0 : index
    %43 = vector.load %arg8[%c0_20, %c0_21] : memref<1x144xf32, #tpu.memory_space<vmem>>, vector<1x144xf32>
    %44 = vector.broadcast %43 : vector<1x144xf32> to vector<18x144xf32>
    %45 = arith.addf %42, %44 : vector<18x144xf32>
    %cst_22 = arith.constant 0.000000e+00 : f32
    %46 = vector.broadcast %cst_22 : f32 to vector<18x144xf32>
    %47 = arith.maximumf %45, %46 : vector<18x144xf32>
    %48 = tpu.iota {dimensions = array<i32: 0>} : vector<18x144xi32>
    %49 = tpu.iota {dimensions = array<i32: 1>} : vector<18x144xi32>
    %c1_i32_23 = arith.constant 1 : i32
    %50 = vector.broadcast %c1_i32_23 : i32 to vector<18x144xi32>
    %51 = arith.cmpi sge, %48, %50 : vector<18x144xi32>
    %c16_i32_24 = arith.constant 16 : i32
    %52 = vector.broadcast %c16_i32_24 : i32 to vector<18x144xi32>
    %53 = arith.cmpi sle, %48, %52 : vector<18x144xi32>
    %54 = arith.andi %51, %53 : vector<18x144xi1>
    %c8_i32_25 = arith.constant 8 : i32
    %55 = vector.broadcast %c8_i32_25 : i32 to vector<18x144xi32>
    %56 = arith.cmpi sge, %49, %55 : vector<18x144xi32>
    %57 = arith.andi %54, %56 : vector<18x144xi1>
    %c136_i32_26 = arith.constant 136 : i32
    %58 = vector.broadcast %c136_i32_26 : i32 to vector<18x144xi32>
    %59 = arith.cmpi slt, %49, %58 : vector<18x144xi32>
    %60 = arith.andi %57, %59 : vector<18x144xi1>
    %c1_i32_27 = arith.constant 1 : i32
    %61 = arith.addi %arg1, %c1_i32_27 : i32
    %c1_i32_28 = arith.constant 1 : i32
    %62 = arith.cmpi sge, %61, %c1_i32_28 : i32
    %c1_i32_29 = arith.constant 1 : i32
    %63 = arith.addi %arg1, %c1_i32_29 : i32
    %c16_i32_30 = arith.constant 16 : i32
    %64 = arith.cmpi sle, %63, %c16_i32_30 : i32
    %65 = arith.andi %62, %64 : i1
    %66 = vector.broadcast %65 : i1 to vector<18x144xi1>
    %67 = arith.andi %60, %66 : vector<18x144xi1>
    %cst_31 = arith.constant 0.000000e+00 : f32
    %68 = vector.broadcast %cst_31 : f32 to vector<18x144xf32>
    %69 = arith.select %67, %47, %68 : vector<18x144xi1>, vector<18x144xf32>
    %70 = arith.truncf %69 : vector<18x144xf32> to vector<18x144xbf16>
    %c1 = arith.constant 1 : index
    %c0_32 = arith.constant 0 : index
    %c0_33 = arith.constant 0 : index
    %71 = vector.load %arg11[%c1, %c0_32, %c0_33] : memref<3x18x144xbf16, #tpu.memory_space<vmem>>, vector<1x18x144xbf16>
    %72 = vector.shape_cast %71 : vector<1x18x144xbf16> to vector<18x144xbf16>
    %73 = vector.shape_cast %70 : vector<18x144xbf16> to vector<1x18x144xbf16>
    tpu.vector_store %arg11[%c1, %c0_32, %c0_33], %73 {strides = array<i32>} : memref<3x18x144xbf16, #tpu.memory_space<vmem>>, vector<1x18x144xbf16>,
    %c0_34 = arith.constant 0 : index
    %c0_35 = arith.constant 0 : index
    %c0_36 = arith.constant 0 : index
    %c0_37 = arith.constant 0 : index
    %74 = vector.load %arg4[%c0_34, %c0_35, %c0_36, %c0_37] : memref<1x1x18x144xbf16, #tpu.memory_space<vmem>>, vector<1x1x18x144xbf16>
    %75 = vector.shape_cast %74 : vector<1x1x18x144xbf16> to vector<18x144xbf16>
    %76 = arith.extf %75 : vector<18x144xbf16> to vector<18x144xf32>
    %c0_38 = arith.constant 0 : index
    %c0_39 = arith.constant 0 : index
    %77 = vector.load %arg7[%c0_38, %c0_39] : memref<1x144xf32, #tpu.memory_space<vmem>>, vector<1x144xf32>
    %78 = vector.broadcast %77 : vector<1x144xf32> to vector<18x144xf32>
    %79 = arith.mulf %76, %78 : vector<18x144xf32>
    %c0_40 = arith.constant 0 : index
    %c0_41 = arith.constant 0 : index
    %80 = vector.load %arg8[%c0_40, %c0_41] : memref<1x144xf32, #tpu.memory_space<vmem>>, vector<1x144xf32>
    %81 = vector.broadcast %80 : vector<1x144xf32> to vector<18x144xf32>
    %82 = arith.addf %79, %81 : vector<18x144xf32>
    %cst_42 = arith.constant 0.000000e+00 : f32
    %83 = vector.broadcast %cst_42 : f32 to vector<18x144xf32>
    %84 = arith.maximumf %82, %83 : vector<18x144xf32>
    %85 = tpu.iota {dimensions = array<i32: 0>} : vector<18x144xi32>
    %86 = tpu.iota {dimensions = array<i32: 1>} : vector<18x144xi32>
    %c1_i32_43 = arith.constant 1 : i32
    %87 = vector.broadcast %c1_i32_43 : i32 to vector<18x144xi32>
    %88 = arith.cmpi sge, %85, %87 : vector<18x144xi32>
    %c16_i32_44 = arith.constant 16 : i32
    %89 = vector.broadcast %c16_i32_44 : i32 to vector<18x144xi32>
    %90 = arith.cmpi sle, %85, %89 : vector<18x144xi32>
    %91 = arith.andi %88, %90 : vector<18x144xi1>
    %c8_i32_45 = arith.constant 8 : i32
    %92 = vector.broadcast %c8_i32_45 : i32 to vector<18x144xi32>
    %93 = arith.cmpi sge, %86, %92 : vector<18x144xi32>
    %94 = arith.andi %91, %93 : vector<18x144xi1>
    %c136_i32_46 = arith.constant 136 : i32
    %95 = vector.broadcast %c136_i32_46 : i32 to vector<18x144xi32>
    %96 = arith.cmpi slt, %86, %95 : vector<18x144xi32>
    %97 = arith.andi %94, %96 : vector<18x144xi1>
    %c2_i32 = arith.constant 2 : i32
    %98 = arith.addi %arg1, %c2_i32 : i32
    %c1_i32_47 = arith.constant 1 : i32
    %99 = arith.cmpi sge, %98, %c1_i32_47 : i32
    %c2_i32_48 = arith.constant 2 : i32
    %100 = arith.addi %arg1, %c2_i32_48 : i32
    %c16_i32_49 = arith.constant 16 : i32
    %101 = arith.cmpi sle, %100, %c16_i32_49 : i32
    %102 = arith.andi %99, %101 : i1
    %103 = vector.broadcast %102 : i1 to vector<18x144xi1>
    %104 = arith.andi %97, %103 : vector<18x144xi1>
    %cst_50 = arith.constant 0.000000e+00 : f32
    %105 = vector.broadcast %cst_50 : f32 to vector<18x144xf32>
    %106 = arith.select %104, %84, %105 : vector<18x144xi1>, vector<18x144xf32>
    %107 = arith.truncf %106 : vector<18x144xf32> to vector<18x144xbf16>
    %c2 = arith.constant 2 : index
    %c0_51 = arith.constant 0 : index
    %c0_52 = arith.constant 0 : index
    %108 = vector.load %arg11[%c2, %c0_51, %c0_52] : memref<3x18x144xbf16, #tpu.memory_space<vmem>>, vector<1x18x144xbf16>
    %109 = vector.shape_cast %108 : vector<1x18x144xbf16> to vector<18x144xbf16>
    %110 = vector.shape_cast %107 : vector<18x144xbf16> to vector<1x18x144xbf16>
    tpu.vector_store %arg11[%c2, %c0_51, %c0_52], %110 {strides = array<i32>} : memref<3x18x144xbf16, #tpu.memory_space<vmem>>, vector<1x18x144xbf16>,
    %cst_53 = arith.constant 0.000000e+00 : f32
    %111 = vector.broadcast %cst_53 : f32 to vector<16x128xf32>
    %c0_54 = arith.constant 0 : index
    %c0_55 = arith.constant 0 : index
    %c0_56 = arith.constant 0 : index
    %112 = vector.load %arg11[%c0_54, %c0_55, %c0_56] : memref<3x18x144xbf16, #tpu.memory_space<vmem>>, vector<1x16x128xbf16>
    %113 = vector.shape_cast %112 : vector<1x16x128xbf16> to vector<16x128xbf16>
    %c0_57 = arith.constant 0 : index
    %c0_58 = arith.constant 0 : index
    %c0_59 = arith.constant 0 : index
    %114 = vector.load %arg5[%c0_57, %c0_58, %c0_59] : memref<27x128x128xbf16, #tpu.memory_space<vmem>>, vector<1x128x128xbf16>
    %115 = vector.shape_cast %114 : vector<1x128x128xbf16> to vector<128x128xbf16>
    %cst_60 = arith.constant dense<0.000000e+00> : vector<16x128xf32>
    %116 = tpu.matmul %113, %115, %cst_60 {dimension_numbers = #tpu.dot_dimension_numbers<[1], [0], [0], [1], [0, 0, 1, 1], [], []>} : vector<16x128xbf16>, vector<128x128xbf16>, vector<16x128xf32> -> vector<16x128xf32>
    %117 = arith.addf %111, %116 : vector<16x128xf32>
    %c0_61 = arith.constant 0 : index
    %c0_62 = arith.constant 0 : index
    %c8 = arith.constant 8 : index
    %118 = vector.load %arg11[%c0_61, %c0_62, %c8] : memref<3x18x144xbf16, #tpu.memory_space<vmem>>, vector<1x16x128xbf16>
    %119 = vector.shape_cast %118 : vector<1x16x128xbf16> to vector<16x128xbf16>
    %c1_63 = arith.constant 1 : index
    %c0_64 = arith.constant 0 : index
    %c0_65 = arith.constant 0 : index
    %120 = vector.load %arg5[%c1_63, %c0_64, %c0_65] : memref<27x128x128xbf16, #tpu.memory_space<vmem>>, vector<1x128x128xbf16>
    %121 = vector.shape_cast %120 : vector<1x128x128xbf16> to vector<128x128xbf16>
    %cst_66 = arith.constant dense<0.000000e+00> : vector<16x128xf32>
    %122 = tpu.matmul %119, %121, %cst_66 {dimension_numbers = #tpu.dot_dimension_numbers<[1], [0], [0], [1], [0, 0, 1, 1], [], []>} : vector<16x128xbf16>, vector<128x128xbf16>, vector<16x128xf32> -> vector<16x128xf32>
    %123 = arith.addf %117, %122 : vector<16x128xf32>
    %c0_67 = arith.constant 0 : index
    %c0_68 = arith.constant 0 : index
    %c16 = arith.constant 16 : index
    %124 = vector.load %arg11[%c0_67, %c0_68, %c16] : memref<3x18x144xbf16, #tpu.memory_space<vmem>>, vector<1x16x128xbf16>
    %125 = vector.shape_cast %124 : vector<1x16x128xbf16> to vector<16x128xbf16>
    %c2_69 = arith.constant 2 : index
    %c0_70 = arith.constant 0 : index
    %c0_71 = arith.constant 0 : index
    %126 = vector.load %arg5[%c2_69, %c0_70, %c0_71] : memref<27x128x128xbf16, #tpu.memory_space<vmem>>, vector<1x128x128xbf16>
    %127 = vector.shape_cast %126 : vector<1x128x128xbf16> to vector<128x128xbf16>
    %cst_72 = arith.constant dense<0.000000e+00> : vector<16x128xf32>
    %128 = tpu.matmul %125, %127, %cst_72 {dimension_numbers = #tpu.dot_dimension_numbers<[1], [0], [0], [1], [0, 0, 1, 1], [], []>} : vector<16x128xbf16>, vector<128x128xbf16>, vector<16x128xf32> -> vector<16x128xf32>
    %129 = arith.addf %123, %128 : vector<16x128xf32>
    %c0_73 = arith.constant 0 : index
    %c1_74 = arith.constant 1 : index
    %c0_75 = arith.constant 0 : index
    %130 = vector.load %arg11[%c0_73, %c1_74, %c0_75] : memref<3x18x144xbf16, #tpu.memory_space<vmem>>, vector<1x16x128xbf16>
    %131 = vector.shape_cast %130 : vector<1x16x128xbf16> to vector<16x128xbf16>
    %c3 = arith.constant 3 : index
    %c0_76 = arith.constant 0 : index
    %c0_77 = arith.constant 0 : index
    %132 = vector.load %arg5[%c3, %c0_76, %c0_77] : memref<27x128x128xbf16, #tpu.memory_space<vmem>>, vector<1x128x128xbf16>
    %133 = vector.shape_cast %132 : vector<1x128x128xbf16> to vector<128x128xbf16>
    %cst_78 = arith.constant dense<0.000000e+00> : vector<16x128xf32>
    %134 = tpu.matmul %131, %133, %cst_78 {dimension_numbers = #tpu.dot_dimension_numbers<[1], [0], [0], [1], [0, 0, 1, 1], [], []>} : vector<16x128xbf16>, vector<128x128xbf16>, vector<16x128xf32> -> vector<16x128xf32>
    %135 = arith.addf %129, %134 : vector<16x128xf32>
    %c0_79 = arith.constant 0 : index
    %c1_80 = arith.constant 1 : index
    %c8_81 = arith.constant 8 : index
    %136 = vector.load %arg11[%c0_79, %c1_80, %c8_81] : memref<3x18x144xbf16, #tpu.memory_space<vmem>>, vector<1x16x128xbf16>
    %137 = vector.shape_cast %136 : vector<1x16x128xbf16> to vector<16x128xbf16>
    %c4 = arith.constant 4 : index
    %c0_82 = arith.constant 0 : index
    %c0_83 = arith.constant 0 : index
    %138 = vector.load %arg5[%c4, %c0_82, %c0_83] : memref<27x128x128xbf16, #tpu.memory_space<vmem>>, vector<1x128x128xbf16>
    %139 = vector.shape_cast %138 : vector<1x128x128xbf16> to vector<128x128xbf16>
    %cst_84 = arith.constant dense<0.000000e+00> : vector<16x128xf32>
    %140 = tpu.matmul %137, %139, %cst_84 {dimension_numbers = #tpu.dot_dimension_numbers<[1], [0], [0], [1], [0, 0, 1, 1], [], []>} : vector<16x128xbf16>, vector<128x128xbf16>, vector<16x128xf32> -> vector<16x128xf32>
    %141 = arith.addf %135, %140 : vector<16x128xf32>
    %c0_85 = arith.constant 0 : index
    %c1_86 = arith.constant 1 : index
    %c16_87 = arith.constant 16 : index
    %142 = vector.load %arg11[%c0_85, %c1_86, %c16_87] : memref<3x18x144xbf16, #tpu.memory_space<vmem>>, vector<1x16x128xbf16>
    %143 = vector.shape_cast %142 : vector<1x16x128xbf16> to vector<16x128xbf16>
    %c5 = arith.constant 5 : index
    %c0_88 = arith.constant 0 : index
    %c0_89 = arith.constant 0 : index
    %144 = vector.load %arg5[%c5, %c0_88, %c0_89] : memref<27x128x128xbf16, #tpu.memory_space<vmem>>, vector<1x128x128xbf16>
    %145 = vector.shape_cast %144 : vector<1x128x128xbf16> to vector<128x128xbf16>
    %cst_90 = arith.constant dense<0.000000e+00> : vector<16x128xf32>
    %146 = tpu.matmul %143, %145, %cst_90 {dimension_numbers = #tpu.dot_dimension_numbers<[1], [0], [0], [1], [0, 0, 1, 1], [], []>} : vector<16x128xbf16>, vector<128x128xbf16>, vector<16x128xf32> -> vector<16x128xf32>
    %147 = arith.addf %141, %146 : vector<16x128xf32>
    %c0_91 = arith.constant 0 : index
    %c2_92 = arith.constant 2 : index
    %c0_93 = arith.constant 0 : index
    %148 = vector.load %arg11[%c0_91, %c2_92, %c0_93] : memref<3x18x144xbf16, #tpu.memory_space<vmem>>, vector<1x16x128xbf16>
    %149 = vector.shape_cast %148 : vector<1x16x128xbf16> to vector<16x128xbf16>
    %c6 = arith.constant 6 : index
    %c0_94 = arith.constant 0 : index
    %c0_95 = arith.constant 0 : index
    %150 = vector.load %arg5[%c6, %c0_94, %c0_95] : memref<27x128x128xbf16, #tpu.memory_space<vmem>>, vector<1x128x128xbf16>
    %151 = vector.shape_cast %150 : vector<1x128x128xbf16> to vector<128x128xbf16>
    %cst_96 = arith.constant dense<0.000000e+00> : vector<16x128xf32>
    %152 = tpu.matmul %149, %151, %cst_96 {dimension_numbers = #tpu.dot_dimension_numbers<[1], [0], [0], [1], [0, 0, 1, 1], [], []>} : vector<16x128xbf16>, vector<128x128xbf16>, vector<16x128xf32> -> vector<16x128xf32>
    %153 = arith.addf %147, %152 : vector<16x128xf32>
    %c0_97 = arith.constant 0 : index
    %c2_98 = arith.constant 2 : index
    %c8_99 = arith.constant 8 : index
    %154 = vector.load %arg11[%c0_97, %c2_98, %c8_99] : memref<3x18x144xbf16, #tpu.memory_space<vmem>>, vector<1x16x128xbf16>
    %155 = vector.shape_cast %154 : vector<1x16x128xbf16> to vector<16x128xbf16>
    %c7 = arith.constant 7 : index
    %c0_100 = arith.constant 0 : index
    %c0_101 = arith.constant 0 : index
    %156 = vector.load %arg5[%c7, %c0_100, %c0_101] : memref<27x128x128xbf16, #tpu.memory_space<vmem>>, vector<1x128x128xbf16>
    %157 = vector.shape_cast %156 : vector<1x128x128xbf16> to vector<128x128xbf16>
    %cst_102 = arith.constant dense<0.000000e+00> : vector<16x128xf32>
    %158 = tpu.matmul %155, %157, %cst_102 {dimension_numbers = #tpu.dot_dimension_numbers<[1], [0], [0], [1], [0, 0, 1, 1], [], []>} : vector<16x128xbf16>, vector<128x128xbf16>, vector<16x128xf32> -> vector<16x128xf32>
    %159 = arith.addf %153, %158 : vector<16x128xf32>
    %c0_103 = arith.constant 0 : index
    %c2_104 = arith.constant 2 : index
    %c16_105 = arith.constant 16 : index
    %160 = vector.load %arg11[%c0_103, %c2_104, %c16_105] : memref<3x18x144xbf16, #tpu.memory_space<vmem>>, vector<1x16x128xbf16>
    %161 = vector.shape_cast %160 : vector<1x16x128xbf16> to vector<16x128xbf16>
    %c8_106 = arith.constant 8 : index
    %c0_107 = arith.constant 0 : index
    %c0_108 = arith.constant 0 : index
    %162 = vector.load %arg5[%c8_106, %c0_107, %c0_108] : memref<27x128x128xbf16, #tpu.memory_space<vmem>>, vector<1x128x128xbf16>
    %163 = vector.shape_cast %162 : vector<1x128x128xbf16> to vector<128x128xbf16>
    %cst_109 = arith.constant dense<0.000000e+00> : vector<16x128xf32>
    %164 = tpu.matmul %161, %163, %cst_109 {dimension_numbers = #tpu.dot_dimension_numbers<[1], [0], [0], [1], [0, 0, 1, 1], [], []>} : vector<16x128xbf16>, vector<128x128xbf16>, vector<16x128xf32> -> vector<16x128xf32>
    %165 = arith.addf %159, %164 : vector<16x128xf32>
    %c1_110 = arith.constant 1 : index
    %c0_111 = arith.constant 0 : index
    %c0_112 = arith.constant 0 : index
    %166 = vector.load %arg11[%c1_110, %c0_111, %c0_112] : memref<3x18x144xbf16, #tpu.memory_space<vmem>>, vector<1x16x128xbf16>
    %167 = vector.shape_cast %166 : vector<1x16x128xbf16> to vector<16x128xbf16>
    %c9 = arith.constant 9 : index
    %c0_113 = arith.constant 0 : index
    %c0_114 = arith.constant 0 : index
    %168 = vector.load %arg5[%c9, %c0_113, %c0_114] : memref<27x128x128xbf16, #tpu.memory_space<vmem>>, vector<1x128x128xbf16>
    %169 = vector.shape_cast %168 : vector<1x128x128xbf16> to vector<128x128xbf16>
    %cst_115 = arith.constant dense<0.000000e+00> : vector<16x128xf32>
    %170 = tpu.matmul %167, %169, %cst_115 {dimension_numbers = #tpu.dot_dimension_numbers<[1], [0], [0], [1], [0, 0, 1, 1], [], []>} : vector<16x128xbf16>, vector<128x128xbf16>, vector<16x128xf32> -> vector<16x128xf32>
    %171 = arith.addf %165, %170 : vector<16x128xf32>
    %c1_116 = arith.constant 1 : index
    %c0_117 = arith.constant 0 : index
    %c8_118 = arith.constant 8 : index
    %172 = vector.load %arg11[%c1_116, %c0_117, %c8_118] : memref<3x18x144xbf16, #tpu.memory_space<vmem>>, vector<1x16x128xbf16>
    %173 = vector.shape_cast %172 : vector<1x16x128xbf16> to vector<16x128xbf16>
    %c10 = arith.constant 10 : index
    %c0_119 = arith.constant 0 : index
    %c0_120 = arith.constant 0 : index
    %174 = vector.load %arg5[%c10, %c0_119, %c0_120] : memref<27x128x128xbf16, #tpu.memory_space<vmem>>, vector<1x128x128xbf16>
    %175 = vector.shape_cast %174 : vector<1x128x128xbf16> to vector<128x128xbf16>
    %cst_121 = arith.constant dense<0.000000e+00> : vector<16x128xf32>
    %176 = tpu.matmul %173, %175, %cst_121 {dimension_numbers = #tpu.dot_dimension_numbers<[1], [0], [0], [1], [0, 0, 1, 1], [], []>} : vector<16x128xbf16>, vector<128x128xbf16>, vector<16x128xf32> -> vector<16x128xf32>
    %177 = arith.addf %171, %176 : vector<16x128xf32>
    %c1_122 = arith.constant 1 : index
    %c0_123 = arith.constant 0 : index
    %c16_124 = arith.constant 16 : index
    %178 = vector.load %arg11[%c1_122, %c0_123, %c16_124] : memref<3x18x144xbf16, #tpu.memory_space<vmem>>, vector<1x16x128xbf16>
    %179 = vector.shape_cast %178 : vector<1x16x128xbf16> to vector<16x128xbf16>
    %c11 = arith.constant 11 : index
    %c0_125 = arith.constant 0 : index
    %c0_126 = arith.constant 0 : index
    %180 = vector.load %arg5[%c11, %c0_125, %c0_126] : memref<27x128x128xbf16, #tpu.memory_space<vmem>>, vector<1x128x128xbf16>
    %181 = vector.shape_cast %180 : vector<1x128x128xbf16> to vector<128x128xbf16>
    %cst_127 = arith.constant dense<0.000000e+00> : vector<16x128xf32>
    %182 = tpu.matmul %179, %181, %cst_127 {dimension_numbers = #tpu.dot_dimension_numbers<[1], [0], [0], [1], [0, 0, 1, 1], [], []>} : vector<16x128xbf16>, vector<128x128xbf16>, vector<16x128xf32> -> vector<16x128xf32>
    %183 = arith.addf %177, %182 : vector<16x128xf32>
    %c1_128 = arith.constant 1 : index
    %c1_129 = arith.constant 1 : index
    %c0_130 = arith.constant 0 : index
    %184 = vector.load %arg11[%c1_128, %c1_129, %c0_130] : memref<3x18x144xbf16, #tpu.memory_space<vmem>>, vector<1x16x128xbf16>
    %185 = vector.shape_cast %184 : vector<1x16x128xbf16> to vector<16x128xbf16>
    %c12 = arith.constant 12 : index
    %c0_131 = arith.constant 0 : index
    %c0_132 = arith.constant 0 : index
    %186 = vector.load %arg5[%c12, %c0_131, %c0_132] : memref<27x128x128xbf16, #tpu.memory_space<vmem>>, vector<1x128x128xbf16>
    %187 = vector.shape_cast %186 : vector<1x128x128xbf16> to vector<128x128xbf16>
    %cst_133 = arith.constant dense<0.000000e+00> : vector<16x128xf32>
    %188 = tpu.matmul %185, %187, %cst_133 {dimension_numbers = #tpu.dot_dimension_numbers<[1], [0], [0], [1], [0, 0, 1, 1], [], []>} : vector<16x128xbf16>, vector<128x128xbf16>, vector<16x128xf32> -> vector<16x128xf32>
    %189 = arith.addf %183, %188 : vector<16x128xf32>
    %c1_134 = arith.constant 1 : index
    %c1_135 = arith.constant 1 : index
    %c8_136 = arith.constant 8 : index
    %190 = vector.load %arg11[%c1_134, %c1_135, %c8_136] : memref<3x18x144xbf16, #tpu.memory_space<vmem>>, vector<1x16x128xbf16>
    %191 = vector.shape_cast %190 : vector<1x16x128xbf16> to vector<16x128xbf16>
    %c13 = arith.constant 13 : index
    %c0_137 = arith.constant 0 : index
    %c0_138 = arith.constant 0 : index
    %192 = vector.load %arg5[%c13, %c0_137, %c0_138] : memref<27x128x128xbf16, #tpu.memory_space<vmem>>, vector<1x128x128xbf16>
    %193 = vector.shape_cast %192 : vector<1x128x128xbf16> to vector<128x128xbf16>
    %cst_139 = arith.constant dense<0.000000e+00> : vector<16x128xf32>
    %194 = tpu.matmul %191, %193, %cst_139 {dimension_numbers = #tpu.dot_dimension_numbers<[1], [0], [0], [1], [0, 0, 1, 1], [], []>} : vector<16x128xbf16>, vector<128x128xbf16>, vector<16x128xf32> -> vector<16x128xf32>
    %195 = arith.addf %189, %194 : vector<16x128xf32>
    %c1_140 = arith.constant 1 : index
    %c1_141 = arith.constant 1 : index
    %c16_142 = arith.constant 16 : index
    %196 = vector.load %arg11[%c1_140, %c1_141, %c16_142] : memref<3x18x144xbf16, #tpu.memory_space<vmem>>, vector<1x16x128xbf16>
    %197 = vector.shape_cast %196 : vector<1x16x128xbf16> to vector<16x128xbf16>
    %c14 = arith.constant 14 : index
    %c0_143 = arith.constant 0 : index
    %c0_144 = arith.constant 0 : index
    %198 = vector.load %arg5[%c14, %c0_143, %c0_144] : memref<27x128x128xbf16, #tpu.memory_space<vmem>>, vector<1x128x128xbf16>
    %199 = vector.shape_cast %198 : vector<1x128x128xbf16> to vector<128x128xbf16>
    %cst_145 = arith.constant dense<0.000000e+00> : vector<16x128xf32>
    %200 = tpu.matmul %197, %199, %cst_145 {dimension_numbers = #tpu.dot_dimension_numbers<[1], [0], [0], [1], [0, 0, 1, 1], [], []>} : vector<16x128xbf16>, vector<128x128xbf16>, vector<16x128xf32> -> vector<16x128xf32>
    %201 = arith.addf %195, %200 : vector<16x128xf32>
    %c1_146 = arith.constant 1 : index
    %c2_147 = arith.constant 2 : index
    %c0_148 = arith.constant 0 : index
    %202 = vector.load %arg11[%c1_146, %c2_147, %c0_148] : memref<3x18x144xbf16, #tpu.memory_space<vmem>>, vector<1x16x128xbf16>
    %203 = vector.shape_cast %202 : vector<1x16x128xbf16> to vector<16x128xbf16>
    %c15 = arith.constant 15 : index
    %c0_149 = arith.constant 0 : index
    %c0_150 = arith.constant 0 : index
    %204 = vector.load %arg5[%c15, %c0_149, %c0_150] : memref<27x128x128xbf16, #tpu.memory_space<vmem>>, vector<1x128x128xbf16>
    %205 = vector.shape_cast %204 : vector<1x128x128xbf16> to vector<128x128xbf16>
    %cst_151 = arith.constant dense<0.000000e+00> : vector<16x128xf32>
    %206 = tpu.matmul %203, %205, %cst_151 {dimension_numbers = #tpu.dot_dimension_numbers<[1], [0], [0], [1], [0, 0, 1, 1], [], []>} : vector<16x128xbf16>, vector<128x128xbf16>, vector<16x128xf32> -> vector<16x128xf32>
    %207 = arith.addf %201, %206 : vector<16x128xf32>
    %c1_152 = arith.constant 1 : index
    %c2_153 = arith.constant 2 : index
    %c8_154 = arith.constant 8 : index
    %208 = vector.load %arg11[%c1_152, %c2_153, %c8_154] : memref<3x18x144xbf16, #tpu.memory_space<vmem>>, vector<1x16x128xbf16>
    %209 = vector.shape_cast %208 : vector<1x16x128xbf16> to vector<16x128xbf16>
    %c16_155 = arith.constant 16 : index
    %c0_156 = arith.constant 0 : index
    %c0_157 = arith.constant 0 : index
    %210 = vector.load %arg5[%c16_155, %c0_156, %c0_157] : memref<27x128x128xbf16, #tpu.memory_space<vmem>>, vector<1x128x128xbf16>
    %211 = vector.shape_cast %210 : vector<1x128x128xbf16> to vector<128x128xbf16>
    %cst_158 = arith.constant dense<0.000000e+00> : vector<16x128xf32>
    %212 = tpu.matmul %209, %211, %cst_158 {dimension_numbers = #tpu.dot_dimension_numbers<[1], [0], [0], [1], [0, 0, 1, 1], [], []>} : vector<16x128xbf16>, vector<128x128xbf16>, vector<16x128xf32> -> vector<16x128xf32>
    %213 = arith.addf %207, %212 : vector<16x128xf32>
    %c1_159 = arith.constant 1 : index
    %c2_160 = arith.constant 2 : index
    %c16_161 = arith.constant 16 : index
    %214 = vector.load %arg11[%c1_159, %c2_160, %c16_161] : memref<3x18x144xbf16, #tpu.memory_space<vmem>>, vector<1x16x128xbf16>
    %215 = vector.shape_cast %214 : vector<1x16x128xbf16> to vector<16x128xbf16>
    %c17 = arith.constant 17 : index
    %c0_162 = arith.constant 0 : index
    %c0_163 = arith.constant 0 : index
    %216 = vector.load %arg5[%c17, %c0_162, %c0_163] : memref<27x128x128xbf16, #tpu.memory_space<vmem>>, vector<1x128x128xbf16>
    %217 = vector.shape_cast %216 : vector<1x128x128xbf16> to vector<128x128xbf16>
    %cst_164 = arith.constant dense<0.000000e+00> : vector<16x128xf32>
    %218 = tpu.matmul %215, %217, %cst_164 {dimension_numbers = #tpu.dot_dimension_numbers<[1], [0], [0], [1], [0, 0, 1, 1], [], []>} : vector<16x128xbf16>, vector<128x128xbf16>, vector<16x128xf32> -> vector<16x128xf32>
    %219 = arith.addf %213, %218 : vector<16x128xf32>
    %c2_165 = arith.constant 2 : index
    %c0_166 = arith.constant 0 : index
    %c0_167 = arith.constant 0 : index
    %220 = vector.load %arg11[%c2_165, %c0_166, %c0_167] : memref<3x18x144xbf16, #tpu.memory_space<vmem>>, vector<1x16x128xbf16>
    %221 = vector.shape_cast %220 : vector<1x16x128xbf16> to vector<16x128xbf16>
    %c18 = arith.constant 18 : index
    %c0_168 = arith.constant 0 : index
    %c0_169 = arith.constant 0 : index
    %222 = vector.load %arg5[%c18, %c0_168, %c0_169] : memref<27x128x128xbf16, #tpu.memory_space<vmem>>, vector<1x128x128xbf16>
    %223 = vector.shape_cast %222 : vector<1x128x128xbf16> to vector<128x128xbf16>
    %cst_170 = arith.constant dense<0.000000e+00> : vector<16x128xf32>
    %224 = tpu.matmul %221, %223, %cst_170 {dimension_numbers = #tpu.dot_dimension_numbers<[1], [0], [0], [1], [0, 0, 1, 1], [], []>} : vector<16x128xbf16>, vector<128x128xbf16>, vector<16x128xf32> -> vector<16x128xf32>
    %225 = arith.addf %219, %224 : vector<16x128xf32>
    %c2_171 = arith.constant 2 : index
    %c0_172 = arith.constant 0 : index
    %c8_173 = arith.constant 8 : index
    %226 = vector.load %arg11[%c2_171, %c0_172, %c8_173] : memref<3x18x144xbf16, #tpu.memory_space<vmem>>, vector<1x16x128xbf16>
    %227 = vector.shape_cast %226 : vector<1x16x128xbf16> to vector<16x128xbf16>
    %c19 = arith.constant 19 : index
    %c0_174 = arith.constant 0 : index
    %c0_175 = arith.constant 0 : index
    %228 = vector.load %arg5[%c19, %c0_174, %c0_175] : memref<27x128x128xbf16, #tpu.memory_space<vmem>>, vector<1x128x128xbf16>
    %229 = vector.shape_cast %228 : vector<1x128x128xbf16> to vector<128x128xbf16>
    %cst_176 = arith.constant dense<0.000000e+00> : vector<16x128xf32>
    %230 = tpu.matmul %227, %229, %cst_176 {dimension_numbers = #tpu.dot_dimension_numbers<[1], [0], [0], [1], [0, 0, 1, 1], [], []>} : vector<16x128xbf16>, vector<128x128xbf16>, vector<16x128xf32> -> vector<16x128xf32>
    %231 = arith.addf %225, %230 : vector<16x128xf32>
    %c2_177 = arith.constant 2 : index
    %c0_178 = arith.constant 0 : index
    %c16_179 = arith.constant 16 : index
    %232 = vector.load %arg11[%c2_177, %c0_178, %c16_179] : memref<3x18x144xbf16, #tpu.memory_space<vmem>>, vector<1x16x128xbf16>
    %233 = vector.shape_cast %232 : vector<1x16x128xbf16> to vector<16x128xbf16>
    %c20 = arith.constant 20 : index
    %c0_180 = arith.constant 0 : index
    %c0_181 = arith.constant 0 : index
    %234 = vector.load %arg5[%c20, %c0_180, %c0_181] : memref<27x128x128xbf16, #tpu.memory_space<vmem>>, vector<1x128x128xbf16>
    %235 = vector.shape_cast %234 : vector<1x128x128xbf16> to vector<128x128xbf16>
    %cst_182 = arith.constant dense<0.000000e+00> : vector<16x128xf32>
    %236 = tpu.matmul %233, %235, %cst_182 {dimension_numbers = #tpu.dot_dimension_numbers<[1], [0], [0], [1], [0, 0, 1, 1], [], []>} : vector<16x128xbf16>, vector<128x128xbf16>, vector<16x128xf32> -> vector<16x128xf32>
    %237 = arith.addf %231, %236 : vector<16x128xf32>
    %c2_183 = arith.constant 2 : index
    %c1_184 = arith.constant 1 : index
    %c0_185 = arith.constant 0 : index
    %238 = vector.load %arg11[%c2_183, %c1_184, %c0_185] : memref<3x18x144xbf16, #tpu.memory_space<vmem>>, vector<1x16x128xbf16>
    %239 = vector.shape_cast %238 : vector<1x16x128xbf16> to vector<16x128xbf16>
    %c21 = arith.constant 21 : index
    %c0_186 = arith.constant 0 : index
    %c0_187 = arith.constant 0 : index
    %240 = vector.load %arg5[%c21, %c0_186, %c0_187] : memref<27x128x128xbf16, #tpu.memory_space<vmem>>, vector<1x128x128xbf16>
    %241 = vector.shape_cast %240 : vector<1x128x128xbf16> to vector<128x128xbf16>
    %cst_188 = arith.constant dense<0.000000e+00> : vector<16x128xf32>
    %242 = tpu.matmul %239, %241, %cst_188 {dimension_numbers = #tpu.dot_dimension_numbers<[1], [0], [0], [1], [0, 0, 1, 1], [], []>} : vector<16x128xbf16>, vector<128x128xbf16>, vector<16x128xf32> -> vector<16x128xf32>
    %243 = arith.addf %237, %242 : vector<16x128xf32>
    %c2_189 = arith.constant 2 : index
    %c1_190 = arith.constant 1 : index
    %c8_191 = arith.constant 8 : index
    %244 = vector.load %arg11[%c2_189, %c1_190, %c8_191] : memref<3x18x144xbf16, #tpu.memory_space<vmem>>, vector<1x16x128xbf16>
    %245 = vector.shape_cast %244 : vector<1x16x128xbf16> to vector<16x128xbf16>
    %c22 = arith.constant 22 : index
    %c0_192 = arith.constant 0 : index
    %c0_193 = arith.constant 0 : index
    %246 = vector.load %arg5[%c22, %c0_192, %c0_193] : memref<27x128x128xbf16, #tpu.memory_space<vmem>>, vector<1x128x128xbf16>
    %247 = vector.shape_cast %246 : vector<1x128x128xbf16> to vector<128x128xbf16>
    %cst_194 = arith.constant dense<0.000000e+00> : vector<16x128xf32>
    %248 = tpu.matmul %245, %247, %cst_194 {dimension_numbers = #tpu.dot_dimension_numbers<[1], [0], [0], [1], [0, 0, 1, 1], [], []>} : vector<16x128xbf16>, vector<128x128xbf16>, vector<16x128xf32> -> vector<16x128xf32>
    %249 = arith.addf %243, %248 : vector<16x128xf32>
    %c2_195 = arith.constant 2 : index
    %c1_196 = arith.constant 1 : index
    %c16_197 = arith.constant 16 : index
    %250 = vector.load %arg11[%c2_195, %c1_196, %c16_197] : memref<3x18x144xbf16, #tpu.memory_space<vmem>>, vector<1x16x128xbf16>
    %251 = vector.shape_cast %250 : vector<1x16x128xbf16> to vector<16x128xbf16>
    %c23 = arith.constant 23 : index
    %c0_198 = arith.constant 0 : index
    %c0_199 = arith.constant 0 : index
    %252 = vector.load %arg5[%c23, %c0_198, %c0_199] : memref<27x128x128xbf16, #tpu.memory_space<vmem>>, vector<1x128x128xbf16>
    %253 = vector.shape_cast %252 : vector<1x128x128xbf16> to vector<128x128xbf16>
    %cst_200 = arith.constant dense<0.000000e+00> : vector<16x128xf32>
    %254 = tpu.matmul %251, %253, %cst_200 {dimension_numbers = #tpu.dot_dimension_numbers<[1], [0], [0], [1], [0, 0, 1, 1], [], []>} : vector<16x128xbf16>, vector<128x128xbf16>, vector<16x128xf32> -> vector<16x128xf32>
    %255 = arith.addf %249, %254 : vector<16x128xf32>
    %c2_201 = arith.constant 2 : index
    %c2_202 = arith.constant 2 : index
    %c0_203 = arith.constant 0 : index
    %256 = vector.load %arg11[%c2_201, %c2_202, %c0_203] : memref<3x18x144xbf16, #tpu.memory_space<vmem>>, vector<1x16x128xbf16>
    %257 = vector.shape_cast %256 : vector<1x16x128xbf16> to vector<16x128xbf16>
    %c24 = arith.constant 24 : index
    %c0_204 = arith.constant 0 : index
    %c0_205 = arith.constant 0 : index
    %258 = vector.load %arg5[%c24, %c0_204, %c0_205] : memref<27x128x128xbf16, #tpu.memory_space<vmem>>, vector<1x128x128xbf16>
    %259 = vector.shape_cast %258 : vector<1x128x128xbf16> to vector<128x128xbf16>
    %cst_206 = arith.constant dense<0.000000e+00> : vector<16x128xf32>
    %260 = tpu.matmul %257, %259, %cst_206 {dimension_numbers = #tpu.dot_dimension_numbers<[1], [0], [0], [1], [0, 0, 1, 1], [], []>} : vector<16x128xbf16>, vector<128x128xbf16>, vector<16x128xf32> -> vector<16x128xf32>
    %261 = arith.addf %255, %260 : vector<16x128xf32>
    %c2_207 = arith.constant 2 : index
    %c2_208 = arith.constant 2 : index
    %c8_209 = arith.constant 8 : index
    %262 = vector.load %arg11[%c2_207, %c2_208, %c8_209] : memref<3x18x144xbf16, #tpu.memory_space<vmem>>, vector<1x16x128xbf16>
    %263 = vector.shape_cast %262 : vector<1x16x128xbf16> to vector<16x128xbf16>
    %c25 = arith.constant 25 : index
    %c0_210 = arith.constant 0 : index
    %c0_211 = arith.constant 0 : index
    %264 = vector.load %arg5[%c25, %c0_210, %c0_211] : memref<27x128x128xbf16, #tpu.memory_space<vmem>>, vector<1x128x128xbf16>
    %265 = vector.shape_cast %264 : vector<1x128x128xbf16> to vector<128x128xbf16>
    %cst_212 = arith.constant dense<0.000000e+00> : vector<16x128xf32>
    %266 = tpu.matmul %263, %265, %cst_212 {dimension_numbers = #tpu.dot_dimension_numbers<[1], [0], [0], [1], [0, 0, 1, 1], [], []>} : vector<16x128xbf16>, vector<128x128xbf16>, vector<16x128xf32> -> vector<16x128xf32>
    %267 = arith.addf %261, %266 : vector<16x128xf32>
    %c2_213 = arith.constant 2 : index
    %c2_214 = arith.constant 2 : index
    %c16_215 = arith.constant 16 : index
    %268 = vector.load %arg11[%c2_213, %c2_214, %c16_215] : memref<3x18x144xbf16, #tpu.memory_space<vmem>>, vector<1x16x128xbf16>
    %269 = vector.shape_cast %268 : vector<1x16x128xbf16> to vector<16x128xbf16>
    %c26 = arith.constant 26 : index
    %c0_216 = arith.constant 0 : index
    %c0_217 = arith.constant 0 : index
    %270 = vector.load %arg5[%c26, %c0_216, %c0_217] : memref<27x128x128xbf16, #tpu.memory_space<vmem>>, vector<1x128x128xbf16>
    %271 = vector.shape_cast %270 : vector<1x128x128xbf16> to vector<128x128xbf16>
    %cst_218 = arith.constant dense<0.000000e+00> : vector<16x128xf32>
    %272 = tpu.matmul %269, %271, %cst_218 {dimension_numbers = #tpu.dot_dimension_numbers<[1], [0], [0], [1], [0, 0, 1, 1], [], []>} : vector<16x128xbf16>, vector<128x128xbf16>, vector<16x128xf32> -> vector<16x128xf32>
    %273 = arith.addf %267, %272 : vector<16x128xf32>
    %c0_219 = arith.constant 0 : index
    %c0_220 = arith.constant 0 : index
    %274 = vector.load %arg6[%c0_219, %c0_220] : memref<1x128xf32, #tpu.memory_space<vmem>>, vector<1x128xf32>
    %275 = vector.broadcast %274 : vector<1x128xf32> to vector<16x128xf32>
    %276 = arith.addf %273, %275 : vector<16x128xf32>
    %cst_221 = arith.constant dense<0.000000e+00> : vector<128xf32>
    %277 = vector.multi_reduction <add>, %276, %cst_221 [0] : vector<16x128xf32> to vector<128xf32>
    %278 = vector.shape_cast %277 : vector<128xf32> to vector<1x128xf32>
    %c0_222 = arith.constant 0 : index
    %c0_223 = arith.constant 0 : index
    %c0_224 = arith.constant 0 : index
    %c0_225 = arith.constant 0 : index
    %279 = vector.load %arg10[%c0_222, %c0_223, %c0_224, %c0_225] : memref<1x1x2x128xf32, #tpu.memory_space<vmem>>, vector<1x1x1x128xf32>
    %280 = vector.shape_cast %279 : vector<1x1x1x128xf32> to vector<1x128xf32>
    %281 = vector.shape_cast %278 : vector<1x128xf32> to vector<1x1x1x128xf32>
    tpu.vector_store %arg10[%c0_222, %c0_223, %c0_224, %c0_225], %281 {strides = array<i32>} : memref<1x1x2x128xf32, #tpu.memory_space<vmem>>, vector<1x1x1x128xf32>,
    %282 = arith.mulf %276, %276 : vector<16x128xf32>
    %cst_226 = arith.constant dense<0.000000e+00> : vector<128xf32>
    %283 = vector.multi_reduction <add>, %282, %cst_226 [0] : vector<16x128xf32> to vector<128xf32>
    %284 = vector.shape_cast %283 : vector<128xf32> to vector<1x128xf32>
    %c0_227 = arith.constant 0 : index
    %c0_228 = arith.constant 0 : index
    %c1_229 = arith.constant 1 : index
    %c0_230 = arith.constant 0 : index
    %285 = vector.load %arg10[%c0_227, %c0_228, %c1_229, %c0_230] : memref<1x1x2x128xf32, #tpu.memory_space<vmem>>, vector<1x1x1x128xf32>
    %286 = vector.shape_cast %285 : vector<1x1x1x128xf32> to vector<1x128xf32>
    %287 = vector.shape_cast %284 : vector<1x128xf32> to vector<1x1x1x128xf32>
    tpu.vector_store %arg10[%c0_227, %c0_228, %c1_229, %c0_230], %287 {strides = array<i32>} : memref<1x1x2x128xf32, #tpu.memory_space<vmem>>, vector<1x1x1x128xf32>,
    %288 = arith.truncf %276 : vector<16x128xf32> to vector<16x128xbf16>
    %c0_231 = arith.constant 0 : index
    %c0_232 = arith.constant 0 : index
    %c0_233 = arith.constant 0 : index
    %c0_234 = arith.constant 0 : index
    %289 = vector.load %arg9[%c0_231, %c0_232, %c0_233, %c0_234] : memref<1x1x16x128xbf16, #tpu.memory_space<vmem>>, vector<1x1x16x128xbf16>
    %290 = vector.shape_cast %289 : vector<1x1x16x128xbf16> to vector<16x128xbf16>
    %291 = vector.shape_cast %288 : vector<16x128xbf16> to vector<1x1x16x128xbf16>
    tpu.vector_store %arg9[%c0_231, %c0_232, %c0_233, %c0_234], %291 {strides = array<i32>} : memref<1x1x16x128xbf16, #tpu.memory_space<vmem>>, vector<1x1x16x128xbf16>,
    return
  }
  func.func @transform_0(%arg0: i32, %arg1: i32) -> (i32, i32, i32, i32) {
    %c0_i32 = arith.constant 0 : i32
    %0 = arith.addi %arg1, %c0_i32 : i32
    %c0_i32_0 = arith.constant 0 : i32
    %c0_i32_1 = arith.constant 0 : i32
    %c0_i32_2 = arith.constant 0 : i32
    return %arg0, %0, %c0_i32_0, %c0_i32_1 : i32, i32, i32, i32
  }
  func.func @transform_1(%arg0: i32, %arg1: i32) -> (i32, i32, i32, i32) {
    %c1_i32 = arith.constant 1 : i32
    %0 = arith.addi %arg1, %c1_i32 : i32
    %c0_i32 = arith.constant 0 : i32
    %c0_i32_0 = arith.constant 0 : i32
    %c0_i32_1 = arith.constant 0 : i32
    return %arg0, %0, %c0_i32, %c0_i32_0 : i32, i32, i32, i32
  }
  func.func @transform_2(%arg0: i32, %arg1: i32) -> (i32, i32, i32, i32) {
    %c2_i32 = arith.constant 2 : i32
    %0 = arith.addi %arg1, %c2_i32 : i32
    %c0_i32 = arith.constant 0 : i32
    %c0_i32_0 = arith.constant 0 : i32
    %c0_i32_1 = arith.constant 0 : i32
    return %arg0, %0, %c0_i32, %c0_i32_0 : i32, i32, i32, i32
  }
  func.func @transform_3(%arg0: i32, %arg1: i32) -> (i32, i32, i32) {
    %c0_i32 = arith.constant 0 : i32
    %c0_i32_0 = arith.constant 0 : i32
    %c0_i32_1 = arith.constant 0 : i32
    %c0_i32_2 = arith.constant 0 : i32
    return %c0_i32, %c0_i32_0, %c0_i32_1 : i32, i32, i32
  }
  func.func @transform_4(%arg0: i32, %arg1: i32) -> (i32, i32) {
    %c0_i32 = arith.constant 0 : i32
    %c0_i32_0 = arith.constant 0 : i32
    %c0_i32_1 = arith.constant 0 : i32
    return %c0_i32, %c0_i32_0 : i32, i32
  }
  func.func @transform_5(%arg0: i32, %arg1: i32) -> (i32, i32) {
    %c0_i32 = arith.constant 0 : i32
    %c0_i32_0 = arith.constant 0 : i32
    %c0_i32_1 = arith.constant 0 : i32
    return %c0_i32, %c0_i32_0 : i32, i32
  }
  func.func @transform_6(%arg0: i32, %arg1: i32) -> (i32, i32) {
    %c0_i32 = arith.constant 0 : i32
    %c0_i32_0 = arith.constant 0 : i32
    %c0_i32_1 = arith.constant 0 : i32
    return %c0_i32, %c0_i32_0 : i32, i32
  }
  func.func @transform_7(%arg0: i32, %arg1: i32) -> (i32, i32, i32, i32) {
    %c0_i32 = arith.constant 0 : i32
    %c0_i32_0 = arith.constant 0 : i32
    %c0_i32_1 = arith.constant 0 : i32
    return %arg0, %arg1, %c0_i32, %c0_i32_0 : i32, i32, i32, i32
  }
  func.func @transform_8(%arg0: i32, %arg1: i32) -> (i32, i32, i32, i32) {
    %c0_i32 = arith.constant 0 : i32
    %c0_i32_0 = arith.constant 0 : i32
    %c0_i32_1 = arith.constant 0 : i32
    return %arg0, %arg1, %c0_i32, %c0_i32_0 : i32, i32, i32, i32
  }
}

module attributes {stable_mosaic.version = 11 : i64} {
  func.func @_bn_relu_kernel(%arg0: i32, %arg1: memref<512x128xbf16, #tpu.memory_space<vmem>>, %arg2: memref<1x128xf32, #tpu.memory_space<vmem>>, %arg3: memref<1x128xf32, #tpu.memory_space<vmem>>, %arg4: memref<512x128xf32, #tpu.memory_space<vmem>>) attributes {dimension_semantics = [#tpu.dimension_semantics<parallel>], iteration_bounds = array<i64: 1>, scalar_prefetch = 0 : i64, scratch_operands = 0 : i64, tpu.core_type = #tpu.core_type<tc>, window_params = [{transform_indices = @transform_0, window_bounds = array<i64: 512, 128>}, {pipeline_mode = #tpu.pipeline_mode<synchronous>, transform_indices = @transform_1, window_bounds = array<i64: 1, 128>}, {pipeline_mode = #tpu.pipeline_mode<synchronous>, transform_indices = @transform_2, window_bounds = array<i64: 1, 128>}, {transform_indices = @transform_3, window_bounds = array<i64: 512, 128>}]} {
    %c0 = arith.constant 0 : index
    %c0_0 = arith.constant 0 : index
    %0 = vector.load %arg1[%c0, %c0_0] : memref<512x128xbf16, #tpu.memory_space<vmem>>, vector<512x128xbf16>
    %1 = arith.extf %0 : vector<512x128xbf16> to vector<512x128xf32>
    %c0_1 = arith.constant 0 : index
    %c0_2 = arith.constant 0 : index
    %2 = vector.load %arg2[%c0_1, %c0_2] : memref<1x128xf32, #tpu.memory_space<vmem>>, vector<1x128xf32>
    %3 = vector.broadcast %2 : vector<1x128xf32> to vector<512x128xf32>
    %4 = arith.mulf %1, %3 : vector<512x128xf32>
    %c0_3 = arith.constant 0 : index
    %c0_4 = arith.constant 0 : index
    %5 = vector.load %arg3[%c0_3, %c0_4] : memref<1x128xf32, #tpu.memory_space<vmem>>, vector<1x128xf32>
    %6 = vector.broadcast %5 : vector<1x128xf32> to vector<512x128xf32>
    %7 = arith.addf %4, %6 : vector<512x128xf32>
    %cst = arith.constant 0.000000e+00 : f32
    %8 = vector.broadcast %cst : f32 to vector<512x128xf32>
    %9 = arith.maximumf %7, %8 : vector<512x128xf32>
    %c0_5 = arith.constant 0 : index
    %c0_6 = arith.constant 0 : index
    %10 = vector.load %arg4[%c0_5, %c0_6] : memref<512x128xf32, #tpu.memory_space<vmem>>, vector<512x128xf32>
    tpu.vector_store %arg4[%c0_5, %c0_6], %9 {strides = array<i32>} : memref<512x128xf32, #tpu.memory_space<vmem>>, vector<512x128xf32>,
    return
  }
  func.func @transform_0(%arg0: i32) -> (i32, i32) {
    %c0_i32 = arith.constant 0 : i32
    %c0_i32_0 = arith.constant 0 : i32
    return %arg0, %c0_i32 : i32, i32
  }
  func.func @transform_1(%arg0: i32) -> (i32, i32) {
    %c0_i32 = arith.constant 0 : i32
    %c0_i32_0 = arith.constant 0 : i32
    %c0_i32_1 = arith.constant 0 : i32
    return %c0_i32, %c0_i32_0 : i32, i32
  }
  func.func @transform_2(%arg0: i32) -> (i32, i32) {
    %c0_i32 = arith.constant 0 : i32
    %c0_i32_0 = arith.constant 0 : i32
    %c0_i32_1 = arith.constant 0 : i32
    return %c0_i32, %c0_i32_0 : i32, i32
  }
  func.func @transform_3(%arg0: i32) -> (i32, i32) {
    %c0_i32 = arith.constant 0 : i32
    %c0_i32_0 = arith.constant 0 : i32
    return %arg0, %c0_i32 : i32, i32
  }
}

</mosaic_0001>

<bundles_post_ra>
// kernel: tile.33
= control target key start
LH: loop header
LB: loop body
LE: loop exit
PB: predicated region body
PF: predicated region fallthrough
CT: control target
= control target key end

     0   :  { %s28_s0 = inlined_call_operand.vmem [shape: f32[8], index: 0, kind: input, shape index: {}]   ;;  %s29_s1 = inlined_call_operand.vmem [shape: f32[16,8], index: 1, kind: output, shape index: {}]  }
   0x1   :  { %v4_v0 = vld [vmem:[%s28_s0] ss:$0 sm:$0xff] }
   0x2   :  { %5 = vst [vmem:[%s29_s1] sm:$0xff] %v4_v0  ;;  %8 = vst [vmem:[%s29_s1 + $0x8] sm:$0xff] %v4_v0 }

// kernel: tile.34
= control target key start
LH: loop header
LB: loop body
LE: loop exit
PB: predicated region body
PF: predicated region fallthrough
CT: control target
= control target key end

     0   :  { %s133_s10 = smov 120   ;;  %s134_s11 = smov 104   ;;  %vm3_vm0 = vcmask 64512   ;;  %vm9_vm1 = vcmask 1048512   ;;  %vm15_vm2 = vcmask 982912   ;;  %vm21_vm3 = vcmask 917312   ;;  %s209_s0 = inlined_call_operand.vmem [shape: f32[16,8], index: 0, kind: input, shape index: {}]   ;;  %s210_s1 = inlined_call_operand.vmem [shape: f32[1,128], index: 1, kind: output, shape index: {}]  }
   0x1   :  { %v103_v0 = vld [vmem:[%s209_s0 + $0xf] sm:$0x1]   ;;  %v105_v1 = vld [vmem:[%s209_s0 + $0xd] sm:$0x1]   ;;  %v104_v2 = vld [vmem:[%s209_s0 + $0xe] sm:$0x1]  }
   0x2   :  { %7 = vrot.lane.b32.xlu0 %v103_v0, %s133_s10  ;;  %19 = vrot.lane.b32.xlu1 %v105_v1, %s134_s11  ;;  %v106_v3 = vld [vmem:[%s209_s0 + $0xc] sm:$0x1]   ;;  %s135_s16 = smov 112   ;;  %s136_s17 = smov 96   ;;  %v107_v4 = vld [vmem:[%s209_s0 + $0xb] sm:$0x1]  }
   0x3   :  { %v108_v5 = vld [vmem:[%s209_s0 + $0xa] sm:$0x1]   ;;  %v2_v6 = vld [vmem:[%s209_s0] sm:$0x1]   ;;  %s137_s24 = smov 88   ;;  %s138_s25 = smov 80  }
   0x4   :  { %4 = vst.msk [vmem:[#allocation0] sm:$0x1] %vm3_vm0, %v2_v6   ;;  %v109_v7 = vld [vmem:[%s209_s0 + $0x9] sm:$0x1]   ;;  %v110_v8 = vld [vmem:[%s209_s0 + $0x8] sm:$0x1]  }
   0x5   :  { %s139_s30 = smov 72   ;;  %s140_s2 = smov 64   ;;  %v111_v9 = vld [vmem:[%s209_s0 + $0x7] sm:$0x1]   ;;  %v112_v10 = vld [vmem:[%s209_s0 + $0x6] sm:$0x1]  }
   0x6   :  { %13 = vrot.lane.b32.xlu0 %v104_v2, %s135_s16  ;;  %25 = vrot.lane.b32.xlu1 %v106_v3, %s136_s17  ;;  %s141_s7 = smov 56   ;;  %s142_s8 = smov 48   ;;  %v113_v11 = vld [vmem:[%s209_s0 + $0x5] sm:$0x1]   ;;  %v114_v12 = vld [vmem:[%s209_s0 + $0x4] sm:$0x1]  }
   0x7   :  { %s143_s13 = smov 40   ;;  %s144_s14 = smov 32   ;;  %v115_v13 = vld [vmem:[%s209_s0 + $0x3] sm:$0x1]   ;;  %v116_v14 = vld [vmem:[%s209_s0 + $0x2] sm:$0x1]  }
   0x8   :  { %s145_s19 = smov 24   ;;  %s146_s20 = smov 16   ;;  %v117_v15 = vld [vmem:[%s209_s0 + $0x1] sm:$0x1]   ;;  %vm27_vm4 = vcmask 851712   ;;  %vm33_vm5 = vcmask 786112  }
   0x9   :  { %s147_s0 = smov 8   ;;  %vm39_vm6 = vcmask 720512   ;;  %vm45_vm7 = vcmask 654912   ;;  %vm51_vm8 = vcmask 589312   ;;  %vm57_vm9 = vcmask 523712  }
   0xa   :  { %31 = vrot.lane.b32.xlu0 %v107_v4, %s137_s24  ;;  %37 = vrot.lane.b32.xlu1 %v108_v5, %s138_s25  ;;  %vm63_vm10 = vcmask 458112   ;;  %vm69_vm11 = vcmask 392512   ;;  %vm75_vm12 = vcmask 326912   ;;  %vm81_vm13 = vcmask 261312  }
   0xb   :  { %vm87_vm14 = vcmask 195712   ;;  %vm93_vm15 = vcmask 130112  }
   0xe   :  { %43 = vrot.lane.b32.xlu0 %v109_v7, %s139_s30  ;;  %49 = vrot.lane.b32.xlu1 %v110_v8, %s140_s2 }
  0x12   :  { %55 = vrot.lane.b32.xlu0 %v111_v9, %s141_s7  ;;  %61 = vrot.lane.b32.xlu1 %v112_v10, %s142_s8 }
  0x16   :  { %67 = vrot.lane.b32.xlu0 %v113_v11, %s143_s13  ;;  %73 = vrot.lane.b32.xlu1 %v114_v12, %s144_s14 }
  0x1a   :  { %79 = vrot.lane.b32.xlu0 %v115_v13, %s145_s19  ;;  %85 = vrot.lane.b32.xlu1 %v116_v14, %s146_s20 }
  0x1e   :  { %91 = vrot.lane.b32.xlu0 %v117_v15, %s147_s0 }
  0x74   :  { %v8_v16 = vpop.permute.xlu0 %7   ;;  %v20_v17 = vpop.permute.xlu1 %19  }
  0x75   :  { %10 = vst.msk [vmem:[#allocation0] sm:$0x1] %vm9_vm1, %v8_v16  }
  0x78   :  { %v14_v18 = vpop.permute.xlu0 %13   ;;  %v26_v19 = vpop.permute.xlu1 %25  }
  0x79   :  { %16 = vst.msk [vmem:[#allocation0] sm:$0x1] %vm15_vm2, %v14_v18  }
  0x7a   :  { %22 = vst.msk [vmem:[#allocation0] sm:$0x1] %vm21_vm3, %v20_v17  }
  0x7b   :  { %28 = vst.msk [vmem:[#allocation0] sm:$0x1] %vm27_vm4, %v26_v19  }
  0x7c   :  { %v32_v20 = vpop.permute.xlu0 %31   ;;  %v38_v21 = vpop.permute.xlu1 %37  }
  0x7d   :  { %34 = vst.msk [vmem:[#allocation0] sm:$0x1] %vm33_vm5, %v32_v20  }
  0x7e   :  { %40 = vst.msk [vmem:[#allocation0] sm:$0x1] %vm39_vm6, %v38_v21  }
  0x80   :  { %v44_v22 = vpop.permute.xlu0 %43   ;;  %v50_v23 = vpop.permute.xlu1 %49  }
  0x81   :  { %46 = vst.msk [vmem:[#allocation0] sm:$0x1] %vm45_vm7, %v44_v22  }
  0x82   :  { %52 = vst.msk [vmem:[#allocation0] sm:$0x1] %vm51_vm8, %v50_v23  }
  0x84   :  { %v56_v24 = vpop.permute.xlu0 %55   ;;  %v62_v25 = vpop.permute.xlu1 %61  }
  0x85   :  { %58 = vst.msk [vmem:[#allocation0] sm:$0x1] %vm57_vm9, %v56_v24  }
  0x86   :  { %64 = vst.msk [vmem:[#allocation0] sm:$0x1] %vm63_vm10, %v62_v25  }
  0x88   :  { %v68_v26 = vpop.permute.xlu0 %67   ;;  %v74_v27 = vpop.permute.xlu1 %73  }
  0x89   :  { %70 = vst.msk [vmem:[#allocation0] sm:$0x1] %vm69_vm11, %v68_v26  }
  0x8a   :  { %76 = vst.msk [vmem:[#allocation0] sm:$0x1] %vm75_vm12, %v74_v27  }
  0x8c   :  { %v80_v28 = vpop.permute.xlu0 %79   ;;  %v86_v29 = vpop.permute.xlu1 %85  }
  0x8d   :  { %82 = vst.msk [vmem:[#allocation0] sm:$0x1] %vm81_vm13, %v80_v28  }
  0x8e   :  { %88 = vst.msk [vmem:[#allocation0] sm:$0x1] %vm87_vm14, %v86_v29  }
  0x90   :  { %v92_v30 = vpop.permute.xlu0 %91  }
  0x91   :  { %94 = vst.msk [vmem:[#allocation0] sm:$0x1] %vm93_vm15, %v92_v30  }
  0x98   :  { %v99_v31 = vld [vmem:[#allocation0] sm:$0x1] }
  0x99   :  { %102 = vst [vmem:[%s210_s1] sm:$0x1] %v99_v31 }

// kernel: tile.38
= control target key start
LH: loop header
LB: loop body
LE: loop exit
PB: predicated region body
PF: predicated region fallthrough
CT: control target
= control target key end

     0   :  { %s34_s0 = inlined_call_operand.vmem [shape: f32[8], index: 0, kind: input, shape index: {}]   ;;  %s35_s1 = inlined_call_operand.vmem [shape: f32[18,8], index: 1, kind: output, shape index: {}]  }
   0x1   :  { %v4_v0 = vld [vmem:[%s34_s0] ss:$0 sm:$0xff] }
   0x2   :  { %5 = vst [vmem:[%s35_s1] sm:$0xff] %v4_v0  ;;  %10 = vst [vmem:[%s35_s1 + $0x8] sm:$0xff] %v4_v0 }
   0x3   :  { %11 = vst [vmem:[%s35_s1 + $0x10] sm:$0xff] %v4_v0 }

// kernel: tile.39
= control target key start
LH: loop header
LB: loop body
LE: loop exit
PB: predicated region body
PF: predicated region fallthrough
CT: control target
= control target key end

     0   :  { %s142_s10 = smov 120   ;;  %s143_s11 = smov 104   ;;  %vm4_vm0 = vcmask 64512   ;;  %vm10_vm1 = vcmask 1048512   ;;  %vm16_vm2 = vcmask 982912   ;;  %vm22_vm3 = vcmask 917312   ;;  %s221_s0 = inlined_call_operand.vmem [shape: f32[18,8], index: 0, kind: input, shape index: {}]   ;;  %s222_s1 = inlined_call_operand.vmem [shape: f32[1,144], index: 1, kind: output, shape index: {}]  }
   0x1   :  { %v111_v0 = vld [vmem:[%s221_s0 + $0xf] sm:$0x1]   ;;  %v113_v1 = vld [vmem:[%s221_s0 + $0xd] sm:$0x1]   ;;  %v112_v2 = vld [vmem:[%s221_s0 + $0xe] sm:$0x1]  }
   0x2   :  { %8 = vrot.lane.b32.xlu0 %v111_v0, %s142_s10  ;;  %20 = vrot.lane.b32.xlu1 %v113_v1, %s143_s11  ;;  %v114_v3 = vld [vmem:[%s221_s0 + $0xc] sm:$0x1]   ;;  %s144_s16 = smov 112   ;;  %s145_s17 = smov 96   ;;  %v115_v4 = vld [vmem:[%s221_s0 + $0xb] sm:$0x1]  }
   0x3   :  { %v116_v5 = vld [vmem:[%s221_s0 + $0xa] sm:$0x1]   ;;  %s2_s22 = smov 3  ;;  %s146_s23 = smov 88   ;;  %v117_v7 = vld [vmem:[%s221_s0 + $0x9] sm:$0x1]  }
   0x4   :  { %s147_s24 = smov 80   ;;  %v3_v6 = vld [vmem:[%s221_s0] ss:$16 sm:%s2_s22]   ;;  %v118_v8 = vld [vmem:[%s221_s0 + $0x8] sm:$0x1]   ;;  %s148_s2 = smov 72  }
   0x5   :  { %5 = vst.msk [vmem:[#allocation0] ss:$8 sm:$0x3] %vm4_vm0, %v3_v6   ;;  %s149_s3 = smov 64   ;;  %v119_v9 = vld [vmem:[%s221_s0 + $0x7] sm:$0x1]  }
   0x6   :  { %14 = vrot.lane.b32.xlu0 %v112_v2, %s144_s16  ;;  %26 = vrot.lane.b32.xlu1 %v114_v3, %s145_s17  ;;  %v120_v10 = vld [vmem:[%s221_s0 + $0x6] sm:$0x1]   ;;  %s150_s8 = smov 56   ;;  %s151_s9 = smov 48   ;;  %v121_v11 = vld [vmem:[%s221_s0 + $0x5] sm:$0x1]  }
   0x7   :  { %v122_v12 = vld [vmem:[%s221_s0 + $0x4] sm:$0x1]   ;;  %s152_s14 = smov 40   ;;  %s153_s15 = smov 32   ;;  %v123_v13 = vld [vmem:[%s221_s0 + $0x3] sm:$0x1]  }
   0x8   :  { %v124_v14 = vld [vmem:[%s221_s0 + $0x2] sm:$0x1]   ;;  %s91_s20 = smov 3  ;;  %s154_s21 = smov 24   ;;  %vm28_vm4 = vcmask 851712   ;;  %vm34_vm5 = vcmask 786112  }
   0x9   :  { %s155_s22 = smov 16   ;;  %v125_v15 = vld [vmem:[%s221_s0 + $0x1] ss:$16 sm:%s91_s20]   ;;  %s156_s0 = smov 8   ;;  %vm40_vm6 = vcmask 720512   ;;  %vm46_vm7 = vcmask 654912  }
   0xa   :  { %32 = vrot.lane.b32.xlu0 %v115_v4, %s146_s23  ;;  %38 = vrot.lane.b32.xlu1 %v116_v5, %s147_s24  ;;  %vm52_vm8 = vcmask 589312   ;;  %vm58_vm9 = vcmask 523712   ;;  %vm64_vm10 = vcmask 458112   ;;  %vm70_vm11 = vcmask 392512  }
   0xb   :  { %vm76_vm12 = vcmask 326912   ;;  %vm82_vm13 = vcmask 261312   ;;  %vm88_vm14 = vcmask 195712   ;;  %vm95_vm15 = vcmask 130112  }
   0xe   :  { %44 = vrot.lane.b32.xlu0 %v117_v7, %s148_s2  ;;  %50 = vrot.lane.b32.xlu1 %v118_v8, %s149_s3 }
  0x12   :  { %56 = vrot.lane.b32.xlu0 %v119_v9, %s150_s8  ;;  %62 = vrot.lane.b32.xlu1 %v120_v10, %s151_s9 }
  0x16   :  { %68 = vrot.lane.b32.xlu0 %v121_v11, %s152_s14  ;;  %74 = vrot.lane.b32.xlu1 %v122_v12, %s153_s15 }
  0x1a   :  { %80 = vrot.lane.b32.xlu0 %v123_v13, %s154_s21  ;;  %86 = vrot.lane.b32.xlu1 %v124_v14, %s155_s22 }
  0x1e   :  { %93 = vrot.lane.b32.xlu0 %v125_v15, %s156_s0 }
  0x74   :  { %v9_v16 = vpop.permute.xlu0 %8   ;;  %v21_v17 = vpop.permute.xlu1 %20  }
  0x75   :  { %11 = vst.msk [vmem:[#allocation0] sm:$0x1] %vm10_vm1, %v9_v16  }
  0x78   :  { %v15_v18 = vpop.permute.xlu0 %14   ;;  %v27_v19 = vpop.permute.xlu1 %26  }
  0x79   :  { %17 = vst.msk [vmem:[#allocation0] sm:$0x1] %vm16_vm2, %v15_v18  }
  0x7a   :  { %23 = vst.msk [vmem:[#allocation0] sm:$0x1] %vm22_vm3, %v21_v17  }
  0x7b   :  { %29 = vst.msk [vmem:[#allocation0] sm:$0x1] %vm28_vm4, %v27_v19  }
  0x7c   :  { %v33_v20 = vpop.permute.xlu0 %32   ;;  %v39_v21 = vpop.permute.xlu1 %38  }
  0x7d   :  { %35 = vst.msk [vmem:[#allocation0] sm:$0x1] %vm34_vm5, %v33_v20  }
  0x7e   :  { %41 = vst.msk [vmem:[#allocation0] sm:$0x1] %vm40_vm6, %v39_v21  }
  0x80   :  { %v45_v22 = vpop.permute.xlu0 %44   ;;  %v51_v23 = vpop.permute.xlu1 %50  }
  0x81   :  { %47 = vst.msk [vmem:[#allocation0] sm:$0x1] %vm46_vm7, %v45_v22  }
  0x82   :  { %53 = vst.msk [vmem:[#allocation0] sm:$0x1] %vm52_vm8, %v51_v23  }
  0x84   :  { %v57_v24 = vpop.permute.xlu0 %56   ;;  %v63_v25 = vpop.permute.xlu1 %62  }
  0x85   :  { %59 = vst.msk [vmem:[#allocation0] sm:$0x1] %vm58_vm9, %v57_v24  }
  0x86   :  { %65 = vst.msk [vmem:[#allocation0] sm:$0x1] %vm64_vm10, %v63_v25  }
  0x88   :  { %v69_v26 = vpop.permute.xlu0 %68   ;;  %v75_v27 = vpop.permute.xlu1 %74  }
  0x89   :  { %71 = vst.msk [vmem:[#allocation0] sm:$0x1] %vm70_vm11, %v69_v26  }
  0x8a   :  { %77 = vst.msk [vmem:[#allocation0] sm:$0x1] %vm76_vm12, %v75_v27  }
  0x8c   :  { %v81_v28 = vpop.permute.xlu0 %80   ;;  %v87_v29 = vpop.permute.xlu1 %86  }
  0x8d   :  { %83 = vst.msk [vmem:[#allocation0] sm:$0x1] %vm82_vm13, %v81_v28  }
  0x8e   :  { %89 = vst.msk [vmem:[#allocation0] sm:$0x1] %vm88_vm14, %v87_v29  }
  0x90   :  { %v94_v30 = vpop.permute.xlu0 %93  }
  0x91   :  { %96 = vst.msk [vmem:[#allocation0] ss:$8 sm:$0x3] %vm95_vm15, %v94_v30  }
  0x98   :  { %v101_v31 = vld [vmem:[#allocation0] sm:$0x1]  ;;  %v106_v32 = vld [vmem:[#allocation0 + $0x8] sm:$0x1] }
  0x99   :  { %104 = vst [vmem:[%s222_s1] sm:$0x1] %v101_v31  ;;  %126 = vst [vmem:[%s222_s1 + $0x1] sm:$0x1] %v106_v32 }

// kernel: double3dconv.3
= control target key start
LH: loop header
LB: loop body
LE: loop exit
PB: predicated region body
PF: predicated region fallthrough
CT: control target
= control target key end

     0   :  { %s3999_s21 = smov 0   ;;  %s4001_s22 = smov 0   ;;  %s4683_s0 = inlined_call_operand.vmem [shape: bf16[2,18,18,72], index: 0, kind: input, shape index: {}, may-alias: {0,1,2}]   ;;  %s4684_s1 = inlined_call_operand.vmem [shape: bf16[2,18,18,72], index: 1, kind: input, shape index: {}, may-alias: {0,1,2}]   ;;  %s4685_s2 = inlined_call_operand.vmem [shape: bf16[2,18,18,72], index: 2, kind: input, shape index: {}, may-alias: {0,1,2}]   ;;  %s4686_s3 = inlined_call_operand.vmem [shape: bf16[27,64,128], index: 3, kind: input, shape index: {}]   ;;  %s4687_s4 = inlined_call_operand.vmem [shape: f32[1,128], index: 4, kind: input, shape index: {}]   ;;  %s4688_s5 = inlined_call_operand.vmem [shape: bf16[2,16,16,128], index: 5, kind: output, shape index: {0}]   ;;  %s4689_s6 = inlined_call_operand.vmem [shape: f32[2,16,2,128], index: 6, kind: output, shape index: {1}]  }
   0x1   :  { %s4003_s23 = smov 0   ;;  %s4005_s24 = smov 0  }
   0x2   :  { %s4007_s25 = smov 0  }
   0x3 LB: > { %s26_s26 = sadd.s32 1, %s3950_s23  ;;  %s29_s27 = sadd.s32 1, %s3954_s24  ;;  %s3958_s25 = sphi %s4007_s25, %s17_s25   ;;  %s3954_s24 = sphi %s4005_s24, %s4694_s24   ;;  %s3950_s23 = sphi %s4003_s23, %s4693_s23   ;;  %s3946_s22 = sphi %s4001_s22, %s4692_s22   ;;  %s3942_s21 = sphi %s3999_s21, %s4691_s21  }
   0x4   : > { %p27_p0 = scmp.ge.s32.totalorder %s26_s26, 16  ;;  %p2917_p1 = scmp.ge.s32.totalorder %s3958_s25, 1 }
   0x5   : > { %p277_p2 = scmp.lt.s32.totalorder %s3958_s25, 33 }
   0x6   : > { %s4696_s26 = smov (%p27_p0, %s26_s26), 0  ;;  %s4698_s27 = smov (!%p27_p0, %s29_s27), %s3954_s24 }
   0x7   : > { %p278_p3 = pnand %p2917_p1, %p277_p2  ;;  %p31_p4 = scmp.ge.s32.totalorder %s4698_s27, 2 }
   0x8   : > { %p343_p5 = scmp.lt.s32.totalorder (!%p278_p3), %s3946_s22, 1  ;;  %p345_p6 = scmp.lt.s32.totalorder (!%p278_p3), %s3942_s21, 17 }
   0x9   : > { %s4700_s27 = smov (%p31_p4, %s4698_s27), 0  ;;  %281 = sbr.rel (%p278_p3) target bundleno = 572 (0x23c), region = 40 }
   0xa   : > { %s352_s10 = sadd.s32 (!%p278_p3), 1, %s3942_s21  ;;  %s3962_s7 = smov (!%p278_p3), 124  }
   0xb   : > { %p4056_p7 = scmp.lt.s32.totalorder (!%p278_p3), %s352_s10, 17  ;;  %s363_s8 = sadd.s32 (!%p278_p3), 2, %s3942_s21 }
   0xc   : > { %s3963_s11 = smov (!%p278_p3), 120   ;;  %p366_p8 = scmp.lt.s32.totalorder (!%p278_p3), %s363_s8, 17 }
   0xd   : > { %p376_p9 = scmp.lt.s32.totalorder (!%p278_p3), %s3942_s21, 15 }
   0xe   : > { %s4702_s22 = smov (!%p343_p5, %s3946_s22), 1  ;;  %v3960_v0 = vmov 0.0   ;;  %v3807_v1 = vld [vmem:[%s4686_s3 + $0x38] sm:$0xff]   ;;  %v3809_v3 = vld [vmem:[%s4686_s3 + $0x30] sm:$0xff]   ;;  %vm395_vm0 = vcmask 584704   ;;  %vm398_vm1 = vcmask 581632  }
   0xf   : > { %3428 = vmatprep.subr.bf16.mxu0 %v3960_v0  ;;  %3440 = vmatprep.subr.bf16.mxu1 %v3960_v0  ;;  %s346_s30 = scalar_select %p345_p6, %s3942_s21, 17  ;;  %v3808_v2 = vld [vmem:[%s4686_s3 + $0x18] sm:$0xff]   ;;  %v3810_v4 = vld [vmem:[%s4686_s3 + $0x10] sm:$0xff]   ;;  %vm3961_vm2 = vmmov 0   ;;  %v3811_v5 = vld [vmem:[%s4686_s3 + $0x28] sm:$0xff]   ;;  %vm464_vm4 = vcmask 523264  }
  0x10   : > { %s4044_s9 = smul.u32 54, %s4702_s22  ;;  %3429 = vmatpush3.bf16.msra.mxu0 %v3807_v1  ;;  %3441 = vmatpush3.bf16.msra.mxu1 %v3808_v2  ;;  %v3812_v6 = vld [vmem:[%s4686_s3 + $0x8] sm:$0xff]   ;;  %s4704_s10 = smov (!%p4056_p7, %s352_s10), 17  ;;  %v3813_v10 = vld [vmem:[%s4686_s3 + $0x20] sm:$0xff]   ;;  %vm678_vm3 = vsmask.f32 7424 }
  0x11   : > { %s3752_s13 = smul.u32 3, %s346_s30  ;;  %3430 = vmatprep.subr.bf16.mxu0 %v3960_v0  ;;  %3442 = vmatprep.subr.bf16.mxu1 %v3960_v0  ;;  %v3814_v11 = vld [vmem:[%s4686_s3] sm:$0xff]   ;;  %v3816_v12 = vld [vmem:[%s4686_s3 + $0x78] sm:$0xff]   ;;  %vm936_vm5 = vcmask 1046528   ;;  %v3818_v16 = vld [vmem:[%s4686_s3 + $0x70] sm:$0xff]   ;;  %s4706_s8 = smov (!%p366_p8, %s363_s8), 17 }
  0x12   : > { %3436 = vmatprep.mubr.msk.bf16.mxu0 %vm3961_vm2, %v3960_v0  ;;  %3448 = vmatprep.mubr.msk.bf16.mxu1 %vm3961_vm2, %v3960_v0  ;;  %v3820_v32 = vld [vmem:[%s4686_s3 + $0x68] sm:$0xff]   ;;  %v3823_v35 = vld [vmem:[%s4686_s3 + $0x60] sm:$0xff]   ;;  %v3825_v46 = vld [vmem:[%s4686_s3 + $0xb8] sm:$0xff]   ;;  %s4708_s21 = smov (!%p376_p9, %s3942_s21), 15 }
  0x13   : > { %s349_s16 = sadd.s32 %s4044_s9, %s3752_s13  ;;  %s3754_s13 = smul.u32 3, %s4704_s10  ;;  %v3827_v49 = vld [vmem:[%s4686_s3 + $0xb0] sm:$0xff]   ;;  %v3829_v57 = vld [vmem:[%s4686_s3 + $0xa8] sm:$0xff]   ;;  %v3832_v58 = vld [vmem:[%s4686_s3 + $0xa0] sm:$0xff]  }
  0x14   : > { %s2918_s18 = sshll.u32 %s349_s16, 2  ;;  %3431 = vmatpush3.bf16.msra.mxu0 %v3809_v3  ;;  %3443 = vmatpush3.bf16.msra.mxu1 %v3810_v4  ;;  %s2921_s12 = sshll.u32 %s4708_s21, 1 }
  0x15   : > { %s351_s30 = scalar_lea.vmem %s4683_s0, %s2918_s18  ;;  %3432 = vmatprep.subr.bf16.mxu0 %v3960_v0  ;;  %3444 = vmatprep.subr.bf16.mxu1 %v3960_v0  ;;  %s359_s16 = sadd.s32 %s3754_s13, %s4044_s9 }
  0x16   : > { %v392_v7 = vld [vmem:[%s351_s30] sm:$0xf]  ;;  %v393_v8 = vld [vmem:[%s351_s30 + $0x4] sm:$0xf]  ;;  %v394_v9 = vld [vmem:[%s351_s30 + $0x8] sm:$0x1] }
  0x17   : > { %396 = vst.msk [vmem:[#allocation2] sm:$0xf] %vm395_vm0, %v392_v7  ;;  %397 = vst.msk [vmem:[#allocation2 + $0x4] sm:$0xf] %vm395_vm0, %v393_v8  ;;  %s2919_s18 = sshll.u32 %s359_s16, 2  ;;  %s3755_s16 = smul.u32 3, %s4706_s8 }
  0x18   : > { %399 = vst.msk [vmem:[#allocation2 + $0x8] sm:$0x1] %vm398_vm1, %v394_v9  ;;  %3433 = vmatpush3.bf16.msra.mxu0 %v3811_v5  ;;  %3445 = vmatpush3.bf16.msra.mxu1 %v3812_v6  ;;  %s361_s28 = scalar_lea.vmem %s4684_s1, %s2919_s18  ;;  %s2922_s13 = sshll.u32 %s4702_s22, 5 }
  0x19   : > { %3434 = vmatprep.subr.bf16.mxu0 %v3960_v0  ;;  %3446 = vmatprep.subr.bf16.mxu1 %v3960_v0  ;;  %v400_v21 = vld [vmem:[%s361_s28] sm:$0xf]  ;;  %v401_v22 = vld [vmem:[%s361_s28 + $0x4] sm:$0xf]  ;;  %v402_v23 = vld [vmem:[%s361_s28 + $0x8] sm:$0x1]  ;;  %s370_s10 = sadd.s32 %s3755_s16, %s4044_s9  ;;  %s380_s16 = sadd.s32 %s2922_s13, %s2921_s12 }
  0x1a   : > { %404 = vst.msk [vmem:[#allocation2 + $0xc] sm:$0xf] %vm395_vm0, %v400_v21  ;;  %405 = vst.msk [vmem:[#allocation2 + $0x10] sm:$0xf] %vm395_vm0, %v401_v22  ;;  %s2920_s28 = sshll.u32 %s370_s10, 2  ;;  %s2923_s18 = sshll.u32 %s380_s16, 2 }
  0x1b   : > { %406 = vst.msk [vmem:[#allocation2 + $0x14] sm:$0x1] %vm398_vm1, %v402_v23  ;;  %s372_s8 = scalar_lea.vmem %s4685_s2, %s2920_s28  ;;  %v3824_v23 = vld [vmem:[%s4686_s3 + $0x98] sm:$0xff]   ;;  %s2924_s10 = sshll.u32 %s4702_s22, 4 }
  0x1c   : > { %3435 = vmatpush3.bf16.msra.mxu0 %v3813_v10  ;;  %3447 = vmatpush3.bf16.msra.mxu1 %v3814_v11  ;;  %v407_v53 = vld [vmem:[%s372_s8] sm:$0xf]  ;;  %v408_v54 = vld [vmem:[%s372_s8 + $0x4] sm:$0xf]  ;;  %v409_v60 = vld [vmem:[%s372_s8 + $0x8] sm:$0x1]  ;;  %s388_s19 = sadd.s32 %s2924_s10, %s4708_s21 }
  0x1d   : > { %3452 = vmatprep.subr.bf16.mxu0 %v3960_v0  ;;  %3464 = vmatprep.subr.bf16.mxu1 %v3960_v0  ;;  %411 = vst.msk [vmem:[#allocation2 + $0x18] sm:$0xf] %vm395_vm0, %v407_v53  ;;  %412 = vst.msk [vmem:[#allocation2 + $0x1c] sm:$0xf] %vm395_vm0, %v408_v54  ;;  %v3865_v53 = vld [vmem:[%s4686_s3 + $0x1a8] sm:$0xff]   ;;  %s2925_s20 = sshll.u32 %s388_s19, 1 }
  0x1e   : > { %v3800_v13 = vld [vmem:[#allocation2] sm:$0xff]   ;;  %413 = vst.msk [vmem:[#allocation2 + $0x20] sm:$0x1] %vm398_vm1, %v409_v60  ;;  %v3855_v54 = vld [vmem:[%s4686_s3 + $0x148] sm:$0xff]   ;;  %s390_s30 = scalar_lea.vmem %s4689_s6, %s2925_s20 }
  0x1f   : > { %v658_v14 = vld [vmem:[#allocation2] sm:$0xf]  ;;  %v659_v15 = vld [vmem:[#allocation2 + $0x4] sm:$0xf]  ;;  %438 = vrot.lane.b32.xlu0 %v3800_v13, %s3962_s7  ;;  %3449 = vmatmul.mubr.msk.bf16.vlgmr.msra.gmra.mxu1 %vm464_vm4, %v3800_v13 }
  0x20   : > { %v2966_v17 = vcombine.low %v658_v14, %v659_v15  ;;  %v3802_v18 = vld [vmem:[#allocation2 + $0x8] ss:$0 sps:$4 sm:$0x11]   ;;  %v923_v19 = vld [vmem:[#allocation2] sm:$0xe]  ;;  %3465 = vmatpush3.bf16.msra.mxu1 %v3816_v12  ;;  %3472 = vmatprep.mubr.msk.bf16.mxu1 %vm3961_vm2, %v3960_v0  ;;  %v3815_v14 = vld [vmem:[%s4686_s3 + $0x58] sm:$0xff]  }
  0x21   : > { %v3007_v20 = vcombine.low %v923_v19, %v659_v15  ;;  %v687_v26 = vshll.u32 %v3802_v18, 16  ;;  %v938_v27 = vrot.slane %v3802_v18, 1  ;;  %3466 = vmatprep.subr.bf16.mxu1 %v3960_v0  ;;  %v4124_v36 = vld [vmem:[#allocation2 + $0xc] sm:$0xff]   ;;  %v3822_v19 = vld [vmem:[%s4686_s3 + $0x40] sm:$0xff]  }
  0x22   : > { %v680_v24 = vshrl.u32 %v2966_v17, 16  ;;  %v682_v25 = vshll.u32 %v2966_v17, 16  ;;  %v1420_v37 = vld [vmem:[#allocation2 + $0xc] sm:$0xf]  ;;  %v1421_v38 = vld [vmem:[#allocation2 + $0x10] sm:$0xf] }
  0x23   : > { %v937_v28 = vrot.slane %v3007_v20, 1  ;;  %586 = vrot.lane.b32.xlu0 %v3800_v13, %s3963_s11  ;;  %v689_v30 = vrot.slane %v687_v26, 1  ;;  %v3087_v39 = vcombine.low %v1420_v37, %v1421_v38  ;;  %v3806_v40 = vld [vmem:[#allocation2 + $0x14] ss:$0 sps:$4 sm:$0x11]   ;;  %v3819_v17 = vld [vmem:[%s4686_s3 + $0x48] sm:$0xff]  }
  0x24   : > { %v684_v29 = vrot.slane %v682_v25, 1  ;;  %3467 = vmatpush3.bf16.msra.mxu1 %v3818_v16  ;;  %v1684_v41 = vld [vmem:[#allocation2 + $0xc] sm:$0xe]  ;;  %v1448_v45 = vshll.u32 %v3806_v40, 16  ;;  %v1698_v51 = vrot.slane %v3806_v40, 1  ;;  %v4170_v59 = vld [vmem:[#allocation2 + $0x18] sm:$0xff]  }
  0x25   : > { %v4111_v31 = vsel %vm936_vm5, %v937_v28, %v938_v27  ;;  %3468 = vmatprep.subr.bf16.mxu1 %v3960_v0  ;;  %v3128_v42 = vcombine.low %v1684_v41, %v1421_v38  ;;  %v1441_v43 = vshrl.u32 %v3087_v39, 16  ;;  %v1443_v44 = vshll.u32 %v3087_v39, 16  ;;  %v2180_v61 = vld [vmem:[#allocation2 + $0x18] sm:$0xf]  ;;  %v2181_v62 = vld [vmem:[#allocation2 + $0x1c] sm:$0xf] }
  0x26   : > { %v685_v33 = vor.u32 %v684_v29, %v680_v24  ;;  %v1450_v48 = vrot.slane %v1448_v45, 1  ;;  %v3208_v63 = vcombine.low %v2180_v61, %v2181_v62  ;;  %v3848_v1 = vld [vmem:[#allocation2 + $0x20] ss:$0 sps:$4 sm:$0x11]   ;;  %v2444_v9 = vld [vmem:[#allocation2 + $0x18] sm:$0xe] }
  0x27   : > { %1019 = vrot.lane.b32.xlu0 %v4111_v31, %s3962_s7  ;;  %v1445_v47 = vrot.slane %v1443_v44, 1  ;;  %v1697_v50 = vrot.slane %v3128_v42, 1  ;;  %v2208_v4 = vshll.u32 %v3848_v1, 16  ;;  %v3249_v10 = vcombine.low %v2444_v9, %v2181_v62  ;;  %v3817_v16 = vld [vmem:[%s4686_s3 + $0x50] sm:$0xff]   ;;  %v3834_v20 = vld [vmem:[%s4686_s3 + $0xf8] sm:$0xff]   ;;  %v3838_v26 = vld [vmem:[%s4686_s3 + $0xe8] sm:$0xff]  }
  0x28   : > { %v690_v34 = vsel %vm678_vm3, %v685_v33, %v689_v30  ;;  %3469 = vmatpush3.bf16.msra.mxu1 %v3820_v32  ;;  %v2203_v2 = vshll.u32 %v3208_v63, 16  ;;  %v2201_v3 = vshrl.u32 %v3208_v63, 16  ;;  %v2458_v12 = vrot.slane %v3848_v1, 1  ;;  %v3836_v24 = vld [vmem:[%s4686_s3 + $0xf0] sm:$0xff]   ;;  %v3828_v27 = vld [vmem:[%s4686_s3 + $0x88] sm:$0xff]   ;;  %v3840_v28 = vld [vmem:[%s4686_s3 + $0xe0] sm:$0xff]  }
  0x29   : > { %770 = vrot.lane.b32.xlu1 %v690_v34, %s3962_s7  ;;  %3470 = vmatprep.subr.bf16.mxu1 %v3960_v0  ;;  %v1446_v52 = vor.u32 %v1445_v47, %v1441_v43  ;;  %v4157_v56 = vsel %vm936_vm5, %v1697_v50, %v1698_v51  ;;  %v2210_v6 = vrot.slane %v2208_v4, 1  ;;  %v2457_v11 = vrot.slane %v3249_v10, 1  ;;  %v3826_v25 = vld [vmem:[%s4686_s3 + $0x90] sm:$0xff]   ;;  %v3830_v29 = vld [vmem:[%s4686_s3 + $0x80] sm:$0xff]   ;;  %v3842_v32 = vld [vmem:[%s4686_s3 + $0x138] sm:$0xff]  }
  0x2a   : > { %v2205_v5 = vrot.slane %v2203_v2, 1  ;;  %v3833_v33 = vld [vmem:[%s4686_s3 + $0xd8] sm:$0xff]   ;;  %v3846_v37 = vld [vmem:[%s4686_s3 + $0x128] sm:$0xff]   ;;  %v3850_v39 = vld [vmem:[%s4686_s3 + $0x120] sm:$0xff]  }
  0x2b   : > { %1267 = vrot.lane.b32.xlu0 %v4124_v36, %s3962_s7  ;;  %v4150_v55 = vsel %vm678_vm3, %v1446_v52, %v1450_v48  ;;  %v4189_v13 = vsel %vm936_vm5, %v2457_v11, %v2458_v12  ;;  %v3837_v38 = vld [vmem:[%s4686_s3 + $0xc8] sm:$0xff]   ;;  %v3839_v40 = vld [vmem:[%s4686_s3 + $0xc0] sm:$0xff]   ;;  %v3852_v41 = vld [vmem:[%s4686_s3 + $0x178] sm:$0xff]  }
  0x2c   : > { %3471 = vmatpush3.bf16.msra.mxu1 %v3823_v35  ;;  %v2206_v7 = vor.u32 %v2205_v5, %v2201_v3  ;;  %v3835_v35 = vld [vmem:[%s4686_s3 + $0xd0] sm:$0xff]   ;;  %v3841_v42 = vld [vmem:[%s4686_s3 + $0x118] sm:$0xff]   ;;  %v3856_v44 = vld [vmem:[%s4686_s3 + $0x168] sm:$0xff]  }
  0x2d   : > { %851 = vrot.lane.b32.xlu1 %v690_v34, %s3963_s11  ;;  %3488 = vmatprep.subr.bf16.mxu1 %v3960_v0  ;;  %v3854_v43 = vld [vmem:[%s4686_s3 + $0x170] sm:$0xff]   ;;  %v3849_v47 = vld [vmem:[%s4686_s3 + $0x100] sm:$0xff]   ;;  %v3851_v50 = vld [vmem:[%s4686_s3 + $0x158] sm:$0xff]  }
  0x2e   : > { %v4182_v8 = vsel %vm678_vm3, %v2206_v7, %v2210_v6  ;;  %v3863_v51 = vld [vmem:[%s4686_s3 + $0x1b0] sm:$0xff]   ;;  %v3857_v60 = vld [vmem:[%s4686_s3 + $0x140] sm:$0xff]   ;;  %v3869_v62 = vld [vmem:[%s4686_s3 + $0x1f8] sm:$0xff]  }
  0x2f   : > { %3473 = vmatmul.mubr.msk.bf16.vlgmr.msra.gmra.mxu1 %vm464_vm4, %v690_v34  ;;  %1531 = vrot.lane.b32.xlu0 %v4150_v55, %s3962_s7  ;;  %v3844_v34 = vld [vmem:[%s4686_s3 + $0x130] sm:$0xff]   ;;  %v3860_v63 = vld [vmem:[%s4686_s3 + $0x198] sm:$0xff]   ;;  %v3873_v6 = vld [vmem:[%s4686_s3 + $0x1e8] sm:$0xff]  }
  0x30   : > { %3489 = vmatpush3.bf16.msra.mxu1 %v3825_v46  ;;  %3496 = vmatprep.mubr.msk.bf16.mxu1 %vm3961_vm2, %v3960_v0  ;;  %v3859_v46 = vld [vmem:[%s4686_s3 + $0x160] sm:$0xff]   ;;  %v3853_v52 = vld [vmem:[%s4686_s3 + $0x150] sm:$0xff]   ;;  %v3864_v9 = vld [vmem:[%s4686_s3 + $0x188] sm:$0xff]  }
  0x31   : > { %1100 = vrot.lane.b32.xlu1 %v4111_v31, %s3963_s11  ;;  %3490 = vmatprep.subr.bf16.mxu1 %v3960_v0  ;;  %v3871_v2 = vld [vmem:[%s4686_s3 + $0x1f0] sm:$0xff]   ;;  %v3875_v10 = vld [vmem:[%s4686_s3 + $0x1e0] sm:$0xff]   ;;  %v3877_v12 = vld [vmem:[%s4686_s3 + $0x238] sm:$0xff]  }
  0x32   : > { %v3862_v4 = vld [vmem:[%s4686_s3 + $0x190] sm:$0xff]   ;;  %v3866_v11 = vld [vmem:[%s4686_s3 + $0x180] sm:$0xff]  }
  0x33   : > { %1779 = vrot.lane.b32.xlu0 %v4157_v56, %s3962_s7 }
  0x34   : > { %3491 = vmatpush3.bf16.msra.mxu1 %v3827_v49  ;;  %v3861_v49 = vld [vmem:[%s4686_s3 + $0x1b8] sm:$0xff]  }
  0x35   : > { %1348 = vrot.lane.b32.xlu1 %v4124_v36, %s3963_s11  ;;  %3492 = vmatprep.subr.bf16.mxu1 %v3960_v0 }
  0x37   : > { %2027 = vrot.lane.b32.xlu0 %v4170_v59, %s3962_s7 }
  0x38   : > { %3493 = vmatpush3.bf16.msra.mxu1 %v3829_v57 }
  0x39   : > { %1612 = vrot.lane.b32.xlu1 %v4150_v55, %s3963_s11  ;;  %3494 = vmatprep.subr.bf16.mxu1 %v3960_v0 }
  0x3b   : > { %2291 = vrot.lane.b32.xlu0 %v4182_v8, %s3962_s7 }
  0x3c   : > { %3495 = vmatpush3.bf16.msra.mxu1 %v3832_v58  ;;  %v3867_v58 = vld [vmem:[%s4686_s3 + $0x1a0] sm:$0xff]  }
  0x3d   : > { %1860 = vrot.lane.b32.xlu1 %v4157_v56, %s3963_s11  ;;  %3512 = vmatprep.subr.bf16.mxu1 %v3960_v0 }
  0x3f   : > { %2539 = vrot.lane.b32.xlu0 %v4189_v13, %s3962_s7 }
  0x41   : > { %2108 = vrot.lane.b32.xlu1 %v4170_v59, %s3963_s11 }
  0x45   : > { %2372 = vrot.lane.b32.xlu1 %v4182_v8, %s3963_s11 }
  0x49   : > { %2620 = vrot.lane.b32.xlu1 %v4189_v13, %s3963_s11  ;;  %s382_s11 = scalar_lea.vmem %s4688_s5, %s2923_s18 }
  0x91   : > { %v439_v15 = vpop.permute.xlu0 %438 }
  0x92   : > { %3437 = vmatmul.mubr.msk.bf16.vlgmr.msra.gmra.mxu0 %vm464_vm4, %v439_v15 }
  0x93   : > { %3453 = vmatpush3.bf16.msra.mxu0 %v3815_v14  ;;  %3460 = vmatprep.mubr.msk.bf16.mxu0 %vm3961_vm2, %v3960_v0  ;;  %v3868_v14 = vld [vmem:[%s4686_s3 + $0x1d8] sm:$0xff]  }
  0x94   : > { %3454 = vmatprep.subr.bf16.mxu0 %v3960_v0 }
  0x95   : > { %v587_v22 = vpop.permute.xlu0 %586 }
  0x97   : > { %3455 = vmatpush3.bf16.msra.mxu0 %v3817_v16  ;;  %v3879_v16 = vld [vmem:[%s4686_s3 + $0x230] sm:$0xff]  }
  0x98   : > { %3456 = vmatprep.subr.bf16.mxu0 %v3960_v0 }
  0x99   : > { %v1020_v30 = vpop.permute.xlu0 %1019 }
  0x9b   : > { %v771_v18 = vpop.permute.xlu1 %770  ;;  %3457 = vmatpush3.bf16.msra.mxu0 %v3819_v17 }
  0x9c   : > { %3458 = vmatprep.subr.bf16.mxu0 %v3960_v0 }
  0x9d   : > { %v1268_v57 = vpop.permute.xlu0 %1267 }
  0x9f   : > { %v852_v21 = vpop.permute.xlu1 %851  ;;  %3459 = vmatpush3.bf16.msra.mxu0 %v3822_v19  ;;  %v3881_v19 = vld [vmem:[%s4686_s3 + $0x228] sm:$0xff]  }
  0xa0   : > { %3497 = vmatmul.mubr.msk.bf16.vlgmr.msra.gmra.mxu1 %vm464_vm4, %v852_v21  ;;  %3476 = vmatprep.subr.bf16.mxu0 %v3960_v0 }
  0xa1   : > { %3513 = vmatpush3.bf16.msra.mxu1 %v3834_v20  ;;  %3520 = vmatprep.mubr.msk.bf16.mxu1 %vm3961_vm2, %v3960_v0  ;;  %v1532_v61 = vpop.permute.xlu0 %1531  ;;  %v3872_v20 = vld [vmem:[%s4686_s3 + $0x1c8] sm:$0xff]  }
  0xa2   : > { %3514 = vmatprep.subr.bf16.mxu1 %v3960_v0  ;;  %3461 = vmatmul.mubr.msk.bf16.vlgmr.msra.gmra.mxu0 %vm464_vm4, %v587_v22  ;;  %v3883_v22 = vld [vmem:[%s4686_s3 + $0x220] sm:$0xff]  }
  0xa3   : > { %3477 = vmatpush3.bf16.msra.mxu0 %v3824_v23  ;;  %3484 = vmatprep.mubr.msk.bf16.mxu0 %vm3961_vm2, %v3960_v0  ;;  %v1101_v45 = vpop.permute.xlu1 %1100  ;;  %v3874_v23 = vld [vmem:[%s4686_s3 + $0x1c0] sm:$0xff]  }
  0xa4   : > { %3478 = vmatprep.subr.bf16.mxu0 %v3960_v0 }
  0xa5   : > { %3515 = vmatpush3.bf16.msra.mxu1 %v3836_v24 }
  0xa6   : > { %3516 = vmatprep.subr.bf16.mxu1 %v3960_v0 }
  0xa7   : > { %3479 = vmatpush3.bf16.msra.mxu0 %v3826_v25  ;;  %v1349_v48 = vpop.permute.xlu1 %1348  ;;  %v3885_v25 = vld [vmem:[%s4686_s3 + $0x278] sm:$0xff]  }
  0xa8   : > { %3480 = vmatprep.subr.bf16.mxu0 %v3960_v0 }
  0xa9   : > { %3517 = vmatpush3.bf16.msra.mxu1 %v3838_v26  ;;  %v3876_v26 = vld [vmem:[%s4686_s3 + $0x218] sm:$0xff]  }
  0xaa   : > { %3518 = vmatprep.subr.bf16.mxu1 %v3960_v0 }
  0xab   : > { %3481 = vmatpush3.bf16.msra.mxu0 %v3828_v27  ;;  %v1613_v21 = vpop.permute.xlu1 %1612  ;;  %v3887_v27 = vld [vmem:[%s4686_s3 + $0x270] sm:$0xff]  }
  0xac   : > { %3482 = vmatprep.subr.bf16.mxu0 %v3960_v0 }
  0xad   : > { %3519 = vmatpush3.bf16.msra.mxu1 %v3840_v28  ;;  %v3878_v28 = vld [vmem:[%s4686_s3 + $0x210] sm:$0xff]  }
  0xae   : > { %3536 = vmatprep.subr.bf16.mxu1 %v3960_v0 }
  0xaf   : > { %3483 = vmatpush3.bf16.msra.mxu0 %v3830_v29  ;;  %v1861_v24 = vpop.permute.xlu1 %1860  ;;  %v3889_v29 = vld [vmem:[%s4686_s3 + $0x268] sm:$0xff]  }
  0xb0   : > { %3521 = vmatmul.mubr.msk.bf16.vlgmr.msra.gmra.mxu1 %vm464_vm4, %v1020_v30  ;;  %3500 = vmatprep.subr.bf16.mxu0 %v3960_v0  ;;  %v3880_v30 = vld [vmem:[%s4686_s3 + $0x208] sm:$0xff]  }
  0xb1   : > { %3537 = vmatpush3.bf16.msra.mxu1 %v3842_v32  ;;  %3544 = vmatprep.mubr.msk.bf16.mxu1 %vm3961_vm2, %v3960_v0  ;;  %v1780_v32 = vpop.permute.xlu0 %1779 }
  0xb2   : > { %3538 = vmatprep.subr.bf16.mxu1 %v3960_v0  ;;  %3485 = vmatmul.mubr.msk.bf16.vlgmr.msra.gmra.mxu0 %vm464_vm4, %v771_v18 }
  0xb3   : > { %3501 = vmatpush3.bf16.msra.mxu0 %v3833_v33  ;;  %3508 = vmatprep.mubr.msk.bf16.mxu0 %vm3961_vm2, %v3960_v0  ;;  %v3891_v33 = vld [vmem:[%s4686_s3 + $0x260] sm:$0xff]  }
  0xb4   : > { %3502 = vmatprep.subr.bf16.mxu0 %v3960_v0 }
  0xb5   : > { %3539 = vmatpush3.bf16.msra.mxu1 %v3844_v34  ;;  %v3882_v34 = vld [vmem:[%s4686_s3 + $0x200] sm:$0xff]  }
  0xb6   : > { %3540 = vmatprep.subr.bf16.mxu1 %v3960_v0 }
  0xb7   : > { %3503 = vmatpush3.bf16.msra.mxu0 %v3835_v35  ;;  %v2028_v35 = vpop.permute.xlu0 %2027 }
  0xb8   : > { %3504 = vmatprep.subr.bf16.mxu0 %v3960_v0 }
  0xb9   : > { %3541 = vmatpush3.bf16.msra.mxu1 %v3846_v37  ;;  %v3893_v37 = vld [vmem:[%s4686_s3 + $0x2b8] sm:$0xff]  }
  0xba   : > { %3542 = vmatprep.subr.bf16.mxu1 %v3960_v0 }
  0xbb   : > { %3505 = vmatpush3.bf16.msra.mxu0 %v3837_v38  ;;  %v3884_v38 = vld [vmem:[%s4686_s3 + $0x258] sm:$0xff]  }
  0xbc   : > { %3506 = vmatprep.subr.bf16.mxu0 %v3960_v0 }
  0xbd   : > { %3543 = vmatpush3.bf16.msra.mxu1 %v3850_v39  ;;  %v3895_v39 = vld [vmem:[%s4686_s3 + $0x2b0] sm:$0xff]  }
  0xbe   : > { %3560 = vmatprep.subr.bf16.mxu1 %v3960_v0 }
  0xbf   : > { %3507 = vmatpush3.bf16.msra.mxu0 %v3839_v40  ;;  %v3886_v40 = vld [vmem:[%s4686_s3 + $0x250] sm:$0xff]  }
  0xc0   : > { %3545 = vmatmul.mubr.msk.bf16.vlgmr.msra.gmra.mxu1 %vm464_vm4, %v4124_v36  ;;  %3524 = vmatprep.subr.bf16.mxu0 %v3960_v0  ;;  %v3843_v36 = vld [vmem:[%s4686_s3 + $0x110] sm:$0xff]  }
  0xc1   : > { %3561 = vmatpush3.bf16.msra.mxu1 %v3852_v41  ;;  %3568 = vmatprep.mubr.msk.bf16.mxu1 %vm3961_vm2, %v3960_v0  ;;  %v3897_v41 = vld [vmem:[%s4686_s3 + $0x2a8] sm:$0xff]  }
  0xc2   : > { %3562 = vmatprep.subr.bf16.mxu1 %v3960_v0  ;;  %3509 = vmatmul.mubr.msk.bf16.vlgmr.msra.gmra.mxu0 %vm464_vm4, %v4111_v31  ;;  %v3845_v31 = vld [vmem:[%s4686_s3 + $0x108] sm:$0xff]  }
  0xc3   : > { %3525 = vmatpush3.bf16.msra.mxu0 %v3841_v42  ;;  %3532 = vmatprep.mubr.msk.bf16.mxu0 %vm3961_vm2, %v3960_v0  ;;  %v3888_v42 = vld [vmem:[%s4686_s3 + $0x248] sm:$0xff]  }
  0xc4   : > { %3526 = vmatprep.subr.bf16.mxu0 %v3960_v0 }
  0xc5   : > { %3563 = vmatpush3.bf16.msra.mxu1 %v3854_v43  ;;  %v3899_v43 = vld [vmem:[%s4686_s3 + $0x2a0] sm:$0xff]  }
  0xc6   : > { %3564 = vmatprep.subr.bf16.mxu1 %v3960_v0 }
  0xc7   : > { %3527 = vmatpush3.bf16.msra.mxu0 %v3843_v36  ;;  %v3890_v36 = vld [vmem:[%s4686_s3 + $0x240] sm:$0xff]  }
  0xc8   : > { %3528 = vmatprep.subr.bf16.mxu0 %v3960_v0 }
  0xc9   : > { %3565 = vmatpush3.bf16.msra.mxu1 %v3856_v44  ;;  %v3901_v44 = vld [vmem:[%s4686_s3 + $0x2f8] sm:$0xff]  }
  0xca   : > { %3566 = vmatprep.subr.bf16.mxu1 %v3960_v0 }
  0xcb   : > { %3529 = vmatpush3.bf16.msra.mxu0 %v3845_v31  ;;  %v3892_v31 = vld [vmem:[%s4686_s3 + $0x298] sm:$0xff]  }
  0xcc   : > { %3530 = vmatprep.subr.bf16.mxu0 %v3960_v0 }
  0xcd   : > { %3567 = vmatpush3.bf16.msra.mxu1 %v3859_v46  ;;  %v3905_v46 = vld [vmem:[%s4686_s3 + $0x2e8] sm:$0xff]  }
  0xce   : > { %3584 = vmatprep.subr.bf16.mxu1 %v3960_v0 }
  0xcf   : > { %3531 = vmatpush3.bf16.msra.mxu0 %v3849_v47  ;;  %v2109_v47 = vpop.permute.xlu1 %2108 }
  0xd0   : > { %3569 = vmatmul.mubr.msk.bf16.vlgmr.msra.gmra.mxu1 %vm464_vm4, %v1349_v48  ;;  %3548 = vmatprep.subr.bf16.mxu0 %v3960_v0  ;;  %v3907_v48 = vld [vmem:[%s4686_s3 + $0x2e0] sm:$0xff]  }
  0xd1   : > { %3585 = vmatpush3.bf16.msra.mxu1 %v3861_v49  ;;  %3592 = vmatprep.mubr.msk.bf16.mxu1 %vm3961_vm2, %v3960_v0  ;;  %v3898_v49 = vld [vmem:[%s4686_s3 + $0x280] sm:$0xff]  }
  0xd2   : > { %3586 = vmatprep.subr.bf16.mxu1 %v3960_v0  ;;  %3533 = vmatmul.mubr.msk.bf16.vlgmr.msra.gmra.mxu0 %vm464_vm4, %v1101_v45  ;;  %v3903_v45 = vld [vmem:[%s4686_s3 + $0x2f0] sm:$0xff]  }
  0xd3   : > { %3549 = vmatpush3.bf16.msra.mxu0 %v3851_v50  ;;  %3556 = vmatprep.mubr.msk.bf16.mxu0 %vm3961_vm2, %v3960_v0  ;;  %v2373_v50 = vpop.permute.xlu1 %2372 }
  0xd4   : > { %3550 = vmatprep.subr.bf16.mxu0 %v3960_v0 }
  0xd5   : > { %3587 = vmatpush3.bf16.msra.mxu1 %v3863_v51  ;;  %v3909_v51 = vld [vmem:[%s4686_s3 + $0x338] sm:$0xff]  }
  0xd6   : > { %3588 = vmatprep.subr.bf16.mxu1 %v3960_v0 }
  0xd7   : > { %3551 = vmatpush3.bf16.msra.mxu0 %v3853_v52  ;;  %v3900_v52 = vld [vmem:[%s4686_s3 + $0x2d8] sm:$0xff]  }
  0xd8   : > { %3552 = vmatprep.subr.bf16.mxu0 %v3960_v0 }
  0xd9   : > { %3589 = vmatpush3.bf16.msra.mxu1 %v3865_v53  ;;  %v3911_v53 = vld [vmem:[%s4686_s3 + $0x330] sm:$0xff]  }
  0xda   : > { %3590 = vmatprep.subr.bf16.mxu1 %v3960_v0 }
  0xdb   : > { %3553 = vmatpush3.bf16.msra.mxu0 %v3855_v54  ;;  %v3902_v54 = vld [vmem:[%s4686_s3 + $0x2d0] sm:$0xff]  }
  0xdc   : > { %3554 = vmatprep.subr.bf16.mxu0 %v3960_v0 }
  0xdd   : > { %3591 = vmatpush3.bf16.msra.mxu1 %v3867_v58  ;;  %v3904_v58 = vld [vmem:[%s4686_s3 + $0x2c8] sm:$0xff]  }
  0xde   : > { %3608 = vmatprep.subr.bf16.mxu1 %v3960_v0 }
  0xdf   : > { %3555 = vmatpush3.bf16.msra.mxu0 %v3857_v60  ;;  %v4374_v1 = vpop.f32.mrf.mxu1  ;;  %v2292_v60 = vpop.permute.xlu0 %2291 }
  0xe0   : > { %3593 = vmatmul.mubr.msk.bf16.vlgmr.msra.gmra.mxu1 %vm464_vm4, %v1532_v61  ;;  %3572 = vmatprep.subr.bf16.mxu0 %v3960_v0  ;;  %v3915_v61 = vld [vmem:[%s4686_s3 + $0x320] sm:$0xff]  }
  0xe1   : > { %3609 = vmatpush3.bf16.msra.mxu1 %v3869_v62  ;;  %3616 = vmatprep.mubr.msk.bf16.mxu1 %vm3961_vm2, %v3960_v0  ;;  %v3450_v3 = vpop.f32.mrf.mxu1  ;;  %v3906_v62 = vld [vmem:[%s4686_s3 + $0x2c0] sm:$0xff]  }
  0xe2   : > { %3610 = vmatprep.subr.bf16.mxu1 %v3960_v0  ;;  %3557 = vmatmul.mubr.msk.bf16.vlgmr.msra.gmra.mxu0 %vm464_vm4, %v1268_v57  ;;  %v3913_v57 = vld [vmem:[%s4686_s3 + $0x328] sm:$0xff]   ;;  %v3910_v3 = vld [vmem:[%s4686_s3 + $0x310] sm:$0xff]  }
  0xe3   : > { %3573 = vmatpush3.bf16.msra.mxu0 %v3860_v63  ;;  %3580 = vmatprep.mubr.msk.bf16.mxu0 %vm3961_vm2, %v3960_v0  ;;  %v4389_v5 = vpop.f32.mrf.mxu1  ;;  %v2540_v63 = vpop.permute.xlu0 %2539 }
  0xe4   : > { %3574 = vmatprep.subr.bf16.mxu0 %v3960_v0 }
  0xe5   : > { %3611 = vmatpush3.bf16.msra.mxu1 %v3871_v2  ;;  %v3451_v7 = vpop.f32.mrf.mxu1  ;;  %v3908_v2 = vld [vmem:[%s4686_s3 + $0x318] sm:$0xff]  }
  0xe6   : > { %3612 = vmatprep.subr.bf16.mxu1 %v3960_v0  ;;  %v3916_v7 = vld [vmem:[%s4686_s3 + $0x358] sm:$0xff]  }
  0xe7   : > { %3575 = vmatpush3.bf16.msra.mxu0 %v3862_v4  ;;  %v3912_v4 = vld [vmem:[%s4686_s3 + $0x308] sm:$0xff]  }
  0xe8   : > { %3576 = vmatprep.subr.bf16.mxu0 %v3960_v0 }
  0xe9   : > { %3613 = vmatpush3.bf16.msra.mxu1 %v3873_v6  ;;  %v3914_v6 = vld [vmem:[%s4686_s3 + $0x300] sm:$0xff]  }
  0xea   : > { %3614 = vmatprep.subr.bf16.mxu1 %v3960_v0 }
  0xeb   : > { %3577 = vmatpush3.bf16.msra.mxu0 %v3864_v9 }
  0xec   : > { %3578 = vmatprep.subr.bf16.mxu0 %v3960_v0 }
  0xed   : > { %3615 = vmatpush3.bf16.msra.mxu1 %v3875_v10  ;;  %v3917_v10 = vld [vmem:[%s4686_s3 + $0x350] sm:$0xff]  }
  0xee   : > { %3632 = vmatprep.subr.bf16.mxu1 %v3960_v0 }
  0xef   : > { %3579 = vmatpush3.bf16.msra.mxu0 %v3866_v11  ;;  %v4417_v15 = vpop.f32.mrf.mxu1 }
  0xf0   : > { %3617 = vmatmul.mubr.msk.bf16.vlgmr.msra.gmra.mxu1 %vm464_vm4, %v4157_v56  ;;  %3596 = vmatprep.subr.bf16.mxu0 %v3960_v0  ;;  %v3870_v56 = vld [vmem:[%s4686_s3 + $0x1d0] sm:$0xff]  }
  0xf1   : > { %3633 = vmatpush3.bf16.msra.mxu1 %v3877_v12  ;;  %3640 = vmatprep.mubr.msk.bf16.mxu1 %vm3961_vm2, %v3960_v0  ;;  %v3474_v17 = vpop.f32.mrf.mxu1 }
  0xf2   : > { %3634 = vmatprep.subr.bf16.mxu1 %v3960_v0  ;;  %3581 = vmatmul.mubr.msk.bf16.vlgmr.msra.gmra.mxu0 %vm464_vm4, %v4150_v55  ;;  %v2621_v17 = vpop.permute.xlu1 %2620 }
  0xf3   : > { %3597 = vmatpush3.bf16.msra.mxu0 %v3868_v14  ;;  %3604 = vmatprep.mubr.msk.bf16.mxu0 %vm3961_vm2, %v3960_v0  ;;  %v4433_v18 = vpop.f32.mrf.mxu1  ;;  %v3918_v14 = vld [vmem:[%s4686_s3 + $0x348] sm:$0xff]  }
  0xf4   : > { %3598 = vmatprep.subr.bf16.mxu0 %v3960_v0 }
  0xf5   : > { %3635 = vmatpush3.bf16.msra.mxu1 %v3879_v16  ;;  %v3475_v55 = vpop.f32.mrf.mxu1 }
  0xf6   : > { %3636 = vmatprep.subr.bf16.mxu1 %v3960_v0 }
  0xf7   : > { %3599 = vmatpush3.bf16.msra.mxu0 %v3870_v56 }
  0xf8   : > { %3600 = vmatprep.subr.bf16.mxu0 %v3960_v0 }
  0xf9   : > { %3637 = vmatpush3.bf16.msra.mxu1 %v3881_v19 }
  0xfa   : > { %3638 = vmatprep.subr.bf16.mxu1 %v3960_v0 }
  0xfb   : > { %3601 = vmatpush3.bf16.msra.mxu0 %v3872_v20 }
  0xfc   : > { %3602 = vmatprep.subr.bf16.mxu0 %v3960_v0 }
  0xfd   : > { %3639 = vmatpush3.bf16.msra.mxu1 %v3883_v22 }
  0xfe   : > { %3656 = vmatprep.subr.bf16.mxu1 %v3960_v0 }
  0xff   : > { %3603 = vmatpush3.bf16.msra.mxu0 %v3874_v23 }
 0x100   : > { %3641 = vmatmul.mubr.msk.bf16.vlgmr.msra.gmra.mxu1 %vm464_vm4, %v1861_v24  ;;  %3620 = vmatprep.subr.bf16.mxu0 %v3960_v0 }
 0x101   : > { %3657 = vmatpush3.bf16.msra.mxu1 %v3885_v25  ;;  %3664 = vmatprep.mubr.msk.bf16.mxu1 %vm3961_vm2, %v3960_v0 }
 0x102   : > { %3658 = vmatprep.subr.bf16.mxu1 %v3960_v0  ;;  %3605 = vmatmul.mubr.msk.bf16.vlgmr.msra.gmra.mxu0 %vm464_vm4, %v1613_v21 }
 0x103   : > { %3621 = vmatpush3.bf16.msra.mxu0 %v3876_v26  ;;  %3628 = vmatprep.mubr.msk.bf16.mxu0 %vm3961_vm2, %v3960_v0 }
 0x104   : > { %3622 = vmatprep.subr.bf16.mxu0 %v3960_v0 }
 0x105   : > { %3659 = vmatpush3.bf16.msra.mxu1 %v3887_v27 }
 0x106   : > { %3660 = vmatprep.subr.bf16.mxu1 %v3960_v0 }
 0x107   : > { %3623 = vmatpush3.bf16.msra.mxu0 %v3878_v28 }
 0x108   : > { %3624 = vmatprep.subr.bf16.mxu0 %v3960_v0 }
 0x109   : > { %3661 = vmatpush3.bf16.msra.mxu1 %v3889_v29 }
 0x10a   : > { %3662 = vmatprep.subr.bf16.mxu1 %v3960_v0 }
 0x10b   : > { %3625 = vmatpush3.bf16.msra.mxu0 %v3880_v30 }
 0x10c   : > { %3626 = vmatprep.subr.bf16.mxu0 %v3960_v0 }
 0x10d   : > { %3663 = vmatpush3.bf16.msra.mxu1 %v3891_v33 }
 0x10e   : > { %3680 = vmatprep.subr.bf16.mxu1 %v3960_v0 }
 0x10f   : > { %3627 = vmatpush3.bf16.msra.mxu0 %v3882_v34 }
 0x110   : > { %3665 = vmatmul.mubr.msk.bf16.vlgmr.msra.gmra.mxu1 %vm464_vm4, %v2028_v35  ;;  %3644 = vmatprep.subr.bf16.mxu0 %v3960_v0 }
 0x111   : > { %3681 = vmatpush3.bf16.msra.mxu1 %v3893_v37  ;;  %3688 = vmatprep.mubr.msk.bf16.mxu1 %vm3961_vm2, %v3960_v0 }
 0x112   : > { %3682 = vmatprep.subr.bf16.mxu1 %v3960_v0  ;;  %3629 = vmatmul.mubr.msk.bf16.vlgmr.msra.gmra.mxu0 %vm464_vm4, %v1780_v32 }
 0x113   : > { %3645 = vmatpush3.bf16.msra.mxu0 %v3884_v38  ;;  %3652 = vmatprep.mubr.msk.bf16.mxu0 %vm3961_vm2, %v3960_v0 }
 0x114   : > { %3646 = vmatprep.subr.bf16.mxu0 %v3960_v0 }
 0x115   : > { %3683 = vmatpush3.bf16.msra.mxu1 %v3895_v39 }
 0x116   : > { %3684 = vmatprep.subr.bf16.mxu1 %v3960_v0 }
 0x117   : > { %3647 = vmatpush3.bf16.msra.mxu0 %v3886_v40 }
 0x118   : > { %3648 = vmatprep.subr.bf16.mxu0 %v3960_v0 }
 0x119   : > { %3685 = vmatpush3.bf16.msra.mxu1 %v3897_v41 }
 0x11a   : > { %3686 = vmatprep.subr.bf16.mxu1 %v3960_v0 }
 0x11b   : > { %3649 = vmatpush3.bf16.msra.mxu0 %v3888_v42 }
 0x11c   : > { %3650 = vmatprep.subr.bf16.mxu0 %v3960_v0 }
 0x11d   : > { %3687 = vmatpush3.bf16.msra.mxu1 %v3899_v43 }
 0x11e   : > { %3704 = vmatprep.subr.bf16.mxu1 %v3960_v0 }
 0x11f   : > { %3651 = vmatpush3.bf16.msra.mxu0 %v3890_v36 }
 0x120   : > { %3689 = vmatmul.mubr.msk.bf16.vlgmr.msra.gmra.mxu1 %vm464_vm4, %v4182_v8  ;;  %3668 = vmatprep.subr.bf16.mxu0 %v3960_v0  ;;  %v3894_v8 = vld [vmem:[%s4686_s3 + $0x290] sm:$0xff]  }
 0x121   : > { %3705 = vmatpush3.bf16.msra.mxu1 %v3901_v44  ;;  %3712 = vmatprep.mubr.msk.bf16.mxu1 %vm3961_vm2, %v3960_v0 }
 0x122   : > { %3706 = vmatprep.subr.bf16.mxu1 %v3960_v0  ;;  %3653 = vmatmul.mubr.msk.bf16.vlgmr.msra.gmra.mxu0 %vm464_vm4, %v4170_v59  ;;  %v3896_v59 = vld [vmem:[%s4686_s3 + $0x288] sm:$0xff]  }
 0x123   : > { %3669 = vmatpush3.bf16.msra.mxu0 %v3892_v31  ;;  %3676 = vmatprep.mubr.msk.bf16.mxu0 %vm3961_vm2, %v3960_v0 }
 0x124   : > { %3670 = vmatprep.subr.bf16.mxu0 %v3960_v0 }
 0x125   : > { %3707 = vmatpush3.bf16.msra.mxu1 %v3903_v45 }
 0x126   : > { %3708 = vmatprep.subr.bf16.mxu1 %v3960_v0 }
 0x127   : > { %3671 = vmatpush3.bf16.msra.mxu0 %v3894_v8 }
 0x128   : > { %3672 = vmatprep.subr.bf16.mxu0 %v3960_v0 }
 0x129   : > { %3709 = vmatpush3.bf16.msra.mxu1 %v3905_v46 }
 0x12a   : > { %3710 = vmatprep.subr.bf16.mxu1 %v3960_v0 }
 0x12b   : > { %3673 = vmatpush3.bf16.msra.mxu0 %v3896_v59 }
 0x12c   : > { %3674 = vmatprep.subr.bf16.mxu0 %v3960_v0 }
 0x12d   : > { %3711 = vmatpush3.bf16.msra.mxu1 %v3907_v48 }
 0x12e   : > { %3728 = vmatprep.subr.bf16.mxu1 %v3960_v0 }
 0x12f   : > { %3675 = vmatpush3.bf16.msra.mxu0 %v3898_v49 }
 0x130   : > { %3713 = vmatmul.mubr.msk.bf16.vlgmr.msra.gmra.mxu1 %vm464_vm4, %v2373_v50  ;;  %3692 = vmatprep.subr.bf16.mxu0 %v3960_v0 }
 0x131   : > { %3729 = vmatpush3.bf16.msra.mxu1 %v3909_v51  ;;  %3736 = vmatprep.mubr.msk.bf16.mxu1 %vm3961_vm2, %v3960_v0 }
 0x132   : > { %3730 = vmatprep.subr.bf16.mxu1 %v3960_v0  ;;  %3677 = vmatmul.mubr.msk.bf16.vlgmr.msra.gmra.mxu0 %vm464_vm4, %v2109_v47 }
 0x133   : > { %3693 = vmatpush3.bf16.msra.mxu0 %v3900_v52  ;;  %3700 = vmatprep.mubr.msk.bf16.mxu0 %vm3961_vm2, %v3960_v0 }
 0x134   : > { %3694 = vmatprep.subr.bf16.mxu0 %v3960_v0 }
 0x135   : > { %3731 = vmatpush3.bf16.msra.mxu1 %v3911_v53 }
 0x136   : > { %3732 = vmatprep.subr.bf16.mxu1 %v3960_v0 }
 0x137   : > { %3695 = vmatpush3.bf16.msra.mxu0 %v3902_v54 }
 0x138   : > { %3696 = vmatprep.subr.bf16.mxu0 %v3960_v0 }
 0x139   : > { %3733 = vmatpush3.bf16.msra.mxu1 %v3913_v57 }
 0x13a   : > { %3734 = vmatprep.subr.bf16.mxu1 %v3960_v0 }
 0x13b   : > { %3697 = vmatpush3.bf16.msra.mxu0 %v3904_v58 }
 0x13c   : > { %3698 = vmatprep.subr.bf16.mxu0 %v3960_v0 }
 0x13d   : > { %3735 = vmatpush3.bf16.msra.mxu1 %v3915_v61 }
 0x13f   : > { %3699 = vmatpush3.bf16.msra.mxu0 %v3906_v62 }
 0x140   : > { %3737 = vmatmul.mubr.msk.bf16.vlgmr.msra.gmra.mxu1 %vm464_vm4, %v2540_v63  ;;  %3716 = vmatprep.subr.bf16.mxu0 %v3960_v0 }
 0x142   : > { %3701 = vmatmul.mubr.msk.bf16.vlgmr.msra.gmra.mxu0 %vm464_vm4, %v2292_v60 }
 0x143   : > { %3717 = vmatpush3.bf16.msra.mxu0 %v3908_v2  ;;  %3724 = vmatprep.mubr.msk.bf16.mxu0 %vm3961_vm2, %v3960_v0 }
 0x144   : > { %3718 = vmatprep.subr.bf16.mxu0 %v3960_v0 }
 0x147   : > { %3719 = vmatpush3.bf16.msra.mxu0 %v3910_v3 }
 0x148   : > { %3720 = vmatprep.subr.bf16.mxu0 %v3960_v0 }
 0x14b   : > { %3721 = vmatpush3.bf16.msra.mxu0 %v3912_v4 }
 0x14c   : > { %3722 = vmatprep.subr.bf16.mxu0 %v3960_v0 }
 0x14f   : > { %3723 = vmatpush3.bf16.msra.mxu0 %v3914_v6 }
 0x150   : > { %3740 = vmatprep.subr.bf16.mxu0 %v3960_v0 }
 0x152   : > { %3725 = vmatmul.mubr.msk.bf16.vlgmr.msra.gmra.mxu0 %vm464_vm4, %v4189_v13  ;;  %v502_v9 = vpop.f32.mrf.mxu0  ;;  %v3919_v13 = vld [vmem:[%s4686_s3 + $0x340] sm:$0xff]  }
 0x153   : > { %3741 = vmatpush3.bf16.msra.mxu0 %v3916_v7  ;;  %3748 = vmatprep.mubr.msk.bf16.mxu0 %vm3961_vm2, %v3960_v0  ;;  %v571_v19 = vadd.f32 %v4374_v1, %v502_v9 }
 0x154   : > { %v3438_v11 = vpop.f32.mrf.mxu0  ;;  %3742 = vmatprep.subr.bf16.mxu0 %v3960_v0 }
 0x156   : > { %v505_v12 = vpop.f32.mrf.mxu0 }
 0x157   : > { %3743 = vmatpush3.bf16.msra.mxu0 %v3917_v10  ;;  %v574_v24 = vadd.f32 %v4389_v5, %v505_v12 }
 0x158   : > { %v3439_v16 = vpop.f32.mrf.mxu0  ;;  %3744 = vmatprep.subr.bf16.mxu0 %v3960_v0 }
 0x15b   : > { %3745 = vmatpush3.bf16.msra.mxu0 %v3918_v14 }
 0x15c   : > { %3746 = vmatprep.subr.bf16.mxu0 %v3960_v0 }
 0x15f   : > { %3747 = vmatpush3.bf16.msra.mxu0 %v3919_v13 }
 0x160   : > { %v914_v56 = vpop.f32.mrf.mxu1 }
 0x162   : > { %v3498_v55 = vpop.f32.mrf.mxu1  ;;  %v649_v20 = vpop.f32.mrf.mxu0  ;;  %3749 = vmatmul.mubr.msk.bf16.vlgmr.msra.gmra.mxu0 %vm464_vm4, %v2621_v17 }
 0x163   : > { %v656_v21 = vadd.f32 %v649_v20, %v571_v19 }
 0x164   : > { %v917_v22 = vpop.f32.mrf.mxu1  ;;  %v3462_v23 = vpop.f32.mrf.mxu0 }
 0x165   : > { %v759_v0 = vadd.f32 %v4417_v15, %v656_v21 }
 0x166   : > { %v3499_v25 = vpop.f32.mrf.mxu1  ;;  %v652_v26 = vpop.f32.mrf.mxu0 }
 0x167   : > { %v657_v27 = vadd.f32 %v652_v26, %v574_v24 }
 0x168   : > { %v3463_v28 = vpop.f32.mrf.mxu0 }
 0x169   : > { %v760_v35 = vadd.f32 %v4433_v18, %v657_v27 }
 0x170   : > { %v1082_v29 = vpop.f32.mrf.mxu1 }
 0x172   : > { %v3522_v30 = vpop.f32.mrf.mxu1  ;;  %v833_v32 = vpop.f32.mrf.mxu0 }
 0x173   : > { %v840_v33 = vadd.f32 %v833_v32, %v759_v0 }
 0x174   : > { %v1085_v1 = vpop.f32.mrf.mxu1  ;;  %v3486_v34 = vpop.f32.mrf.mxu0 }
 0x175   : > { %v921_v37 = vadd.f32 %v914_v56, %v840_v33 }
 0x176   : > { %v3523_v38 = vpop.f32.mrf.mxu1  ;;  %v836_v39 = vpop.f32.mrf.mxu0 }
 0x177   : > { %v841_v40 = vadd.f32 %v836_v39, %v760_v35 }
 0x178   : > { %v3487_v41 = vpop.f32.mrf.mxu0 }
 0x179   : > { %v922_v5 = vadd.f32 %v917_v22, %v841_v40 }
 0x180   : > { %v1249_v42 = vpop.f32.mrf.mxu1 }
 0x182   : > { %v3546_v43 = vpop.f32.mrf.mxu1  ;;  %v1001_v36 = vpop.f32.mrf.mxu0 }
 0x183   : > { %v1008_v44 = vadd.f32 %v1001_v36, %v921_v37 }
 0x184   : > { %v1252_v31 = vpop.f32.mrf.mxu1  ;;  %v3510_v45 = vpop.f32.mrf.mxu0 }
 0x185   : > { %v1089_v15 = vadd.f32 %v1082_v29, %v1008_v44 }
 0x186   : > { %v3547_v8 = vpop.f32.mrf.mxu1  ;;  %v1004_v46 = vpop.f32.mrf.mxu0 }
 0x187   : > { %v1009_v59 = vadd.f32 %v1004_v46, %v922_v5 }
 0x188   : > { %v3511_v47 = vpop.f32.mrf.mxu0 }
 0x189   : > { %v1090_v48 = vadd.f32 %v1085_v1, %v1009_v59 }
 0x190   : > { %v1411_v49 = vpop.f32.mrf.mxu1 }
 0x192   : > { %v3570_v18 = vpop.f32.mrf.mxu1  ;;  %v1163_v50 = vpop.f32.mrf.mxu0 }
 0x193   : > { %v1170_v51 = vadd.f32 %v1163_v50, %v1089_v15 }
 0x194   : > { %v1414_v52 = vpop.f32.mrf.mxu1  ;;  %v3534_v53 = vpop.f32.mrf.mxu0 }
 0x195   : > { %v1256_v54 = vadd.f32 %v1249_v42, %v1170_v51 }
 0x196   : > { %v3571_v57 = vpop.f32.mrf.mxu1  ;;  %v1166_v58 = vpop.f32.mrf.mxu0 }
 0x197   : > { %v1171_v60 = vadd.f32 %v1166_v58, %v1090_v48 }
 0x198   : > { %v3535_v61 = vpop.f32.mrf.mxu0 }
 0x199   : > { %v1257_v62 = vadd.f32 %v1252_v31, %v1171_v60 }
 0x1a0   : > { %v1594_v63 = vpop.f32.mrf.mxu1 }
 0x1a2   : > { %v3594_v2 = vpop.f32.mrf.mxu1  ;;  %v1330_v3 = vpop.f32.mrf.mxu0 }
 0x1a3   : > { %v1337_v4 = vadd.f32 %v1330_v3, %v1256_v54 }
 0x1a4   : > { %v1597_v6 = vpop.f32.mrf.mxu1  ;;  %v3558_v7 = vpop.f32.mrf.mxu0 }
 0x1a5   : > { %v1418_v9 = vadd.f32 %v1411_v49, %v1337_v4 }
 0x1a6   : > { %v3595_v10 = vpop.f32.mrf.mxu1  ;;  %v1333_v11 = vpop.f32.mrf.mxu0 }
 0x1a7   : > { %v1338_v12 = vadd.f32 %v1333_v11, %v1257_v62 }
 0x1a8   : > { %v3559_v14 = vpop.f32.mrf.mxu0 }
 0x1a9   : > { %v1419_v16 = vadd.f32 %v1414_v52, %v1338_v12 }
 0x1b0   : > { %v1761_v13 = vpop.f32.mrf.mxu1 }
 0x1b2   : > { %v3618_v17 = vpop.f32.mrf.mxu1  ;;  %v1513_v56 = vpop.f32.mrf.mxu0 }
 0x1b3   : > { %v1520_v19 = vadd.f32 %v1513_v56, %v1418_v9 }
 0x1b4   : > { %v1764_v55 = vpop.f32.mrf.mxu1  ;;  %v3582_v20 = vpop.f32.mrf.mxu0 }
 0x1b5   : > { %v1601_v21 = vadd.f32 %v1594_v63, %v1520_v19 }
 0x1b6   : > { %v3619_v22 = vpop.f32.mrf.mxu1  ;;  %v1516_v23 = vpop.f32.mrf.mxu0 }
 0x1b7   : > { %v1521_v24 = vadd.f32 %v1516_v23, %v1419_v16 }
 0x1b8   : > { %v3583_v25 = vpop.f32.mrf.mxu0 }
 0x1b9   : > { %v1602_v26 = vadd.f32 %v1597_v6, %v1521_v24 }
 0x1c0   : > { %v1923_v27 = vpop.f32.mrf.mxu1 }
 0x1c2   : > { %v3642_v28 = vpop.f32.mrf.mxu1  ;;  %v1675_v29 = vpop.f32.mrf.mxu0 }
 0x1c3   : > { %v1682_v0 = vadd.f32 %v1675_v29, %v1601_v21 }
 0x1c4   : > { %v1926_v30 = vpop.f32.mrf.mxu1  ;;  %v3606_v32 = vpop.f32.mrf.mxu0 }
 0x1c5   : > { %v1768_v33 = vadd.f32 %v1761_v13, %v1682_v0  ;;  %v3281_v32 = vld [vmem:[%s4687_s4] ss:$0 sm:$0xff] }
 0x1c6   : > { %v3643_v1 = vpop.f32.mrf.mxu1  ;;  %v1678_v34 = vpop.f32.mrf.mxu0 }
 0x1c7   : > { %v1683_v35 = vadd.f32 %v1678_v34, %v1602_v26 }
 0x1c8   : > { %v3607_v37 = vpop.f32.mrf.mxu0 }
 0x1c9   : > { %v1769_v38 = vadd.f32 %v1764_v55, %v1683_v35 }
 0x1d0   : > { %v2090_v39 = vpop.f32.mrf.mxu1 }
 0x1d2   : > { %v3666_v40 = vpop.f32.mrf.mxu1  ;;  %v1842_v41 = vpop.f32.mrf.mxu0 }
 0x1d3   : > { %v1849_v5 = vadd.f32 %v1842_v41, %v1768_v33 }
 0x1d4   : > { %v2093_v42 = vpop.f32.mrf.mxu1  ;;  %v3630_v43 = vpop.f32.mrf.mxu0 }
 0x1d5   : > { %v1930_v36 = vadd.f32 %v1923_v27, %v1849_v5 }
 0x1d6   : > { %v3667_v44 = vpop.f32.mrf.mxu1  ;;  %v1845_v31 = vpop.f32.mrf.mxu0 }
 0x1d7   : > { %v1850_v45 = vadd.f32 %v1845_v31, %v1769_v38 }
 0x1d8   : > { %v3631_v15 = vpop.f32.mrf.mxu0 }
 0x1d9   : > { %v1931_v8 = vadd.f32 %v1926_v30, %v1850_v45 }
 0x1e0   : > { %v2273_v46 = vpop.f32.mrf.mxu1 }
 0x1e2   : > { %v3690_v59 = vpop.f32.mrf.mxu1  ;;  %v2009_v47 = vpop.f32.mrf.mxu0 }
 0x1e3   : > { %v2016_v48 = vadd.f32 %v2009_v47, %v1930_v36 }
 0x1e4   : > { %v2276_v49 = vpop.f32.mrf.mxu1  ;;  %v3654_v18 = vpop.f32.mrf.mxu0 }
 0x1e5   : > { %v2097_v50 = vadd.f32 %v2090_v39, %v2016_v48 }
 0x1e6   : > { %v3691_v51 = vpop.f32.mrf.mxu1  ;;  %v2012_v52 = vpop.f32.mrf.mxu0 }
 0x1e7   : > { %v2017_v53 = vadd.f32 %v2012_v52, %v1931_v8 }
 0x1e8   : > { %v3655_v54 = vpop.f32.mrf.mxu0 }
 0x1e9   : > { %v2098_v57 = vadd.f32 %v2093_v42, %v2017_v53 }
 0x1f0   : > { %v2435_v58 = vpop.f32.mrf.mxu1 }
 0x1f2   : > { %v3714_v60 = vpop.f32.mrf.mxu1  ;;  %v2171_v61 = vpop.f32.mrf.mxu0 }
 0x1f3   : > { %v2178_v13 = vadd.f32 %v2171_v61, %v2097_v50 }
 0x1f4   : > { %v2438_v62 = vpop.f32.mrf.mxu1  ;;  %v3678_v63 = vpop.f32.mrf.mxu0 }
 0x1f5   : > { %v2280_v19 = vadd.f32 %v2273_v46, %v2178_v13 }
 0x1f6   : > { %v3715_v2 = vpop.f32.mrf.mxu1  ;;  %v2174_v3 = vpop.f32.mrf.mxu0 }
 0x1f7   : > { %v2179_v55 = vadd.f32 %v2174_v3, %v2098_v57 }
 0x1f8   : > { %v3679_v4 = vpop.f32.mrf.mxu0 }
 0x1f9   : > { %v2281_v23 = vadd.f32 %v2276_v49, %v2179_v55 }
 0x200   : > { %v2602_v6 = vpop.f32.mrf.mxu1 }
 0x202   : > { %v3738_v7 = vpop.f32.mrf.mxu1  ;;  %v2354_v9 = vpop.f32.mrf.mxu0 }
 0x203   : > { %v2361_v21 = vadd.f32 %v2354_v9, %v2280_v19 }
 0x204   : > { %v2605_v10 = vpop.f32.mrf.mxu1  ;;  %v3702_v11 = vpop.f32.mrf.mxu0 }
 0x205   : > { %v2442_v24 = vadd.f32 %v2435_v58, %v2361_v21 }
 0x206   : > { %v3739_v12 = vpop.f32.mrf.mxu1  ;;  %v2357_v14 = vpop.f32.mrf.mxu0 }
 0x207   : > { %v2362_v25 = vadd.f32 %v2357_v14, %v2281_v23 }
 0x208   : > { %v3703_v16 = vpop.f32.mrf.mxu0 }
 0x209   : > { %v2443_v27 = vadd.f32 %v2438_v62, %v2362_v25 }
 0x212   : > { %v2521_v17 = vpop.f32.mrf.mxu0 }
 0x213   : > { %v2528_v26 = vadd.f32 %v2521_v17, %v2442_v24 }
 0x214   : > { %v3726_v56 = vpop.f32.mrf.mxu0 }
 0x215   : > { %v2609_v28 = vadd.f32 %v2602_v6, %v2528_v26 }
 0x216   : > { %v2524_v20 = vpop.f32.mrf.mxu0 }
 0x217   : > { %v2529_v29 = vadd.f32 %v2524_v20, %v2443_v27 }
 0x218   : > { %v3727_v22 = vpop.f32.mrf.mxu0 }
 0x219   : > { %v2610_v1 = vadd.f32 %v2605_v10, %v2529_v29 }
 0x222   : > { %v2683_v0 = vpop.f32.mrf.mxu0 }
 0x223   : > { %v2690_v30 = vadd.f32 %v2683_v0, %v2609_v28 }
 0x224   : > { %v3750_v33 = vpop.f32.mrf.mxu0 }
 0x225   : > { %v2699_v35 = vadd.f32 %v3281_v32, %v2690_v30 }
 0x226   : > { %v2686_v34 = vpop.f32.mrf.mxu0 }
 0x227   : > { %v2691_v37 = vadd.f32 %v2686_v34, %v2610_v1  ;;  %v2709_v40 = vmul.f32 %v2699_v35, %v2699_v35 }
 0x228   : > { %v3751_v38 = vpop.f32.mrf.mxu0 }
 0x229   : > { %v2700_v39 = vadd.f32 %v3281_v32, %v2691_v37 }
 0x22b   : > { %v2701_v41 = vadd.f32 %v2700_v39, %v2699_v35  ;;  %v2710_v5 = vmul.f32 %v2700_v39, %v2700_v39  ;;  %v3291_v42 = vpack.c.bf16 %v2700_v39, %v2699_v35 }
 0x22d   : > { %v2702_v43 = vrot.slane %v2701_v41, 4  ;;  %v2711_v36 = vadd.f32 %v2710_v5, %v2709_v40  ;;  %3292 = vst [vmem:[%s382_s11] sm:$0xff] %v3291_v42  }
 0x22f   : > { %v2703_v44 = vadd.f32 %v2702_v43, %v2701_v41  ;;  %v2712_v31 = vrot.slane %v2711_v36, 4 }
 0x231   : > { %v2704_v45 = vrot.slane %v2703_v44, 2  ;;  %v2713_v15 = vadd.f32 %v2712_v31, %v2711_v36 }
 0x233   : > { %v2705_v8 = vadd.f32 %v2704_v45, %v2703_v44  ;;  %v2714_v46 = vrot.slane %v2713_v15, 2 }
 0x235   : > { %v2706_v59 = vrot.slane %v2705_v8, 1  ;;  %v2715_v47 = vadd.f32 %v2714_v46, %v2713_v15 }
 0x237   : > { %v2707_v48 = vadd.f32 %v2706_v59, %v2705_v8  ;;  %v2716_v49 = vrot.slane %v2715_v47, 1 }
 0x239   : > { %2708 = vst [vmem:[%s390_s30] sm:$0x1] %v2707_v48  ;;  %v2717_v18 = vadd.f32 %v2716_v49, %v2715_v47 }
 0x23b   : > { %2718 = vst [vmem:[%s390_s30 + $0x1] sm:$0x1] %v2717_v18 }
 0x23c PF: > { %s17_s25 = sadd.s32 1, %s3958_s25   ;;  %s4691_s21 = smov %s3950_s23 }
 0x23d   : > { %p14_p10 = scmp.ge.s32.totalorder %s17_s25, 34   ;;  %s4692_s22 = smov %s3954_s24 }
 0x23e   : > { %s4693_s23 = smov %s4696_s26  ;;  %s4694_s24 = smov %s4700_s27 }
 0x23f   :  { %16 = sbr.rel (!%p14_p10) target bundleno = 3 (0x3), region = 116 }

// kernel: double3dconv.5
= control target key start
LH: loop header
LB: loop body
LE: loop exit
PB: predicated region body
PF: predicated region fallthrough
CT: control target
= control target key end

     0   :  { %s1023_s0 = inlined_call_operand.vmem [shape: bf16[512,128], index: 0, kind: input, shape index: {}]   ;;  %s1024_s1 = inlined_call_operand.vmem [shape: f32[1,128], index: 1, kind: input, shape index: {}]   ;;  %s1025_s2 = inlined_call_operand.vmem [shape: f32[1,128], index: 2, kind: input, shape index: {}]   ;;  %s1026_s3 = inlined_call_operand.vmem [shape: f32[512,128], index: 3, kind: output, shape index: {}]  }
   0x1   :  { %v419_v0 = vld [vmem:[%s1023_s0] sm:$0xff]   ;;  %v546_v4 = vld [vmem:[%s1023_s0 + $0x8] sm:$0xff]   ;;  %v547_v5 = vld [vmem:[%s1023_s0 + $0x10] sm:$0xff]  }
   0x2   :  { %v603_v1 = vld [vmem:[%s1024_s1] ss:$0 sm:$0xff]  ;;  %v420_v2 = vunpack.c.l.bf16 %v419_v0  ;;  %v421_v3 = vunpack.c.h.bf16 %v419_v0  ;;  %v548_v6 = vld [vmem:[%s1023_s0 + $0x18] sm:$0xff]   ;;  %v424_v8 = vunpack.c.l.bf16 %v546_v4  ;;  %v425_v9 = vunpack.c.h.bf16 %v546_v4  ;;  %v550_v33 = vld [vmem:[%s1023_s0 + $0x28] sm:$0xff]  }
   0x3   :  { %v617_v7 = vld [vmem:[%s1025_s2] ss:$0 sm:$0xff]  ;;  %v428_v10 = vunpack.c.l.bf16 %v547_v5  ;;  %v429_v11 = vunpack.c.h.bf16 %v547_v5  ;;  %v432_v14 = vunpack.c.l.bf16 %v548_v6  ;;  %v433_v15 = vunpack.c.h.bf16 %v548_v6  ;;  %v551_v34 = vld [vmem:[%s1023_s0 + $0x30] sm:$0xff]   ;;  %v552_v39 = vld [vmem:[%s1023_s0 + $0x38] sm:$0xff]  }
   0x4   :  { %v149_v12 = vmul.f32 %v420_v2, %v603_v1  ;;  %v150_v13 = vmul.f32 %v421_v3, %v603_v1  ;;  %v151_v16 = vmul.f32 %v424_v8, %v603_v1  ;;  %v152_v17 = vmul.f32 %v425_v9, %v603_v1  ;;  %v549_v28 = vld [vmem:[%s1023_s0 + $0x20] sm:$0xff]   ;;  %v554_v6 = vld [vmem:[%s1023_s0 + $0x48] sm:$0xff]   ;;  %v555_v8 = vld [vmem:[%s1023_s0 + $0x50] sm:$0xff]  }
   0x5   :  { %v153_v18 = vmul.f32 %v428_v10, %v603_v1  ;;  %v154_v19 = vmul.f32 %v429_v11, %v603_v1  ;;  %v155_v22 = vmul.f32 %v432_v14, %v603_v1  ;;  %v156_v23 = vmul.f32 %v433_v15, %v603_v1  ;;  %v553_v0 = vld [vmem:[%s1023_s0 + $0x40] sm:$0xff]  }
   0x6   :  { %v220_v20 = vadd.f32 %v617_v7, %v149_v12  ;;  %v221_v21 = vadd.f32 %v617_v7, %v150_v13  ;;  %v222_v24 = vadd.f32 %v617_v7, %v151_v16  ;;  %v223_v25 = vadd.f32 %v617_v7, %v152_v17  ;;  %v556_v13 = vld [vmem:[%s1023_s0 + $0x58] sm:$0xff]  }
   0x7   :  { %v224_v26 = vadd.f32 %v617_v7, %v153_v18  ;;  %v225_v27 = vadd.f32 %v617_v7, %v154_v19  ;;  %v226_v31 = vadd.f32 %v617_v7, %v155_v22  ;;  %v227_v32 = vadd.f32 %v617_v7, %v156_v23 }
   0x8   :  { %v284_v29 = vmax.f32 %v220_v20, 0.0  ;;  %v285_v30 = vmax.f32 %v221_v21, 0.0  ;;  %v286_v35 = vmax.f32 %v222_v24, 0.0  ;;  %v287_v36 = vmax.f32 %v223_v25, 0.0 }
   0x9   :  { %v288_v37 = vmax.f32 %v224_v26, 0.0  ;;  %v289_v38 = vmax.f32 %v225_v27, 0.0  ;;  %v290_v40 = vmax.f32 %v226_v31, 0.0  ;;  %v291_v41 = vmax.f32 %v227_v32, 0.0 }
   0xa   :  { %348 = vst [vmem:[%s1026_s3] sm:$0xff] %v284_v29  ;;  %349 = vst [vmem:[%s1026_s3 + $0x8] sm:$0xff] %v285_v30  ;;  %v436_v42 = vunpack.c.l.bf16 %v549_v28  ;;  %v437_v43 = vunpack.c.h.bf16 %v549_v28  ;;  %v440_v44 = vunpack.c.l.bf16 %v550_v33  ;;  %v441_v45 = vunpack.c.h.bf16 %v550_v33 }
   0xb   :  { %350 = vst [vmem:[%s1026_s3 + $0x10] sm:$0xff] %v286_v35  ;;  %351 = vst [vmem:[%s1026_s3 + $0x18] sm:$0xff] %v287_v36  ;;  %v444_v46 = vunpack.c.l.bf16 %v551_v34  ;;  %v445_v47 = vunpack.c.h.bf16 %v551_v34  ;;  %v448_v50 = vunpack.c.l.bf16 %v552_v39  ;;  %v449_v51 = vunpack.c.h.bf16 %v552_v39 }
   0xc   :  { %352 = vst [vmem:[%s1026_s3 + $0x20] sm:$0xff] %v288_v37  ;;  %353 = vst [vmem:[%s1026_s3 + $0x28] sm:$0xff] %v289_v38  ;;  %v157_v48 = vmul.f32 %v436_v42, %v603_v1  ;;  %v158_v49 = vmul.f32 %v437_v43, %v603_v1  ;;  %v159_v52 = vmul.f32 %v440_v44, %v603_v1  ;;  %v452_v16 = vunpack.c.l.bf16 %v553_v0  ;;  %v557_v38 = vld [vmem:[%s1023_s0 + $0x60] sm:$0xff]   ;;  %v558_v43 = vld [vmem:[%s1023_s0 + $0x68] sm:$0xff]  }
   0xd   :  { %354 = vst [vmem:[%s1026_s3 + $0x30] sm:$0xff] %v290_v40  ;;  %355 = vst [vmem:[%s1026_s3 + $0x38] sm:$0xff] %v291_v41  ;;  %v160_v53 = vmul.f32 %v441_v45, %v603_v1  ;;  %v161_v54 = vmul.f32 %v444_v46, %v603_v1  ;;  %v162_v55 = vmul.f32 %v445_v47, %v603_v1  ;;  %v453_v17 = vunpack.c.h.bf16 %v553_v0  ;;  %v559_v44 = vld [vmem:[%s1023_s0 + $0x70] sm:$0xff]  }
   0xe   :  { %v228_v56 = vadd.f32 %v617_v7, %v157_v48  ;;  %v229_v57 = vadd.f32 %v617_v7, %v158_v49  ;;  %v163_v58 = vmul.f32 %v448_v50, %v603_v1  ;;  %v164_v59 = vmul.f32 %v449_v51, %v603_v1  ;;  %v560_v49 = vld [vmem:[%s1023_s0 + $0x78] sm:$0xff]  }
   0xf   :  { %v230_v60 = vadd.f32 %v617_v7, %v159_v52  ;;  %v231_v61 = vadd.f32 %v617_v7, %v160_v53  ;;  %v232_v62 = vadd.f32 %v617_v7, %v161_v54  ;;  %v233_v63 = vadd.f32 %v617_v7, %v162_v55 }
  0x10   :  { %v292_v2 = vmax.f32 %v228_v56, 0.0  ;;  %v293_v3 = vmax.f32 %v229_v57, 0.0  ;;  %v234_v4 = vadd.f32 %v617_v7, %v163_v58  ;;  %v235_v5 = vadd.f32 %v617_v7, %v164_v59 }
  0x11   :  { %v294_v9 = vmax.f32 %v230_v60, 0.0  ;;  %v295_v10 = vmax.f32 %v231_v61, 0.0  ;;  %v296_v11 = vmax.f32 %v232_v62, 0.0  ;;  %v297_v12 = vmax.f32 %v233_v63, 0.0 }
  0x12   :  { %356 = vst [vmem:[%s1026_s3 + $0x40] sm:$0xff] %v292_v2  ;;  %357 = vst [vmem:[%s1026_s3 + $0x48] sm:$0xff] %v293_v3  ;;  %v298_v14 = vmax.f32 %v234_v4, 0.0  ;;  %v299_v15 = vmax.f32 %v235_v5, 0.0  ;;  %v456_v18 = vunpack.c.l.bf16 %v554_v6  ;;  %v457_v19 = vunpack.c.h.bf16 %v554_v6 }
  0x13   :  { %358 = vst [vmem:[%s1026_s3 + $0x50] sm:$0xff] %v294_v9  ;;  %359 = vst [vmem:[%s1026_s3 + $0x58] sm:$0xff] %v295_v10  ;;  %v460_v20 = vunpack.c.l.bf16 %v555_v8  ;;  %v461_v21 = vunpack.c.h.bf16 %v555_v8  ;;  %v165_v22 = vmul.f32 %v452_v16, %v603_v1  ;;  %v166_v23 = vmul.f32 %v453_v17, %v603_v1  ;;  %v562_v17 = vld [vmem:[%s1023_s0 + $0x88] sm:$0xff]  }
  0x14   :  { %360 = vst [vmem:[%s1026_s3 + $0x60] sm:$0xff] %v296_v11  ;;  %361 = vst [vmem:[%s1026_s3 + $0x68] sm:$0xff] %v297_v12  ;;  %v464_v24 = vunpack.c.l.bf16 %v556_v13  ;;  %v465_v25 = vunpack.c.h.bf16 %v556_v13  ;;  %v167_v26 = vmul.f32 %v456_v18, %v603_v1  ;;  %v168_v27 = vmul.f32 %v457_v19, %v603_v1  ;;  %v561_v12 = vld [vmem:[%s1023_s0 + $0x80] sm:$0xff]   ;;  %v563_v18 = vld [vmem:[%s1023_s0 + $0x90] sm:$0xff]  }
  0x15   :  { %362 = vst [vmem:[%s1026_s3 + $0x70] sm:$0xff] %v298_v14  ;;  %363 = vst [vmem:[%s1026_s3 + $0x78] sm:$0xff] %v299_v15  ;;  %v169_v28 = vmul.f32 %v460_v20, %v603_v1  ;;  %v170_v29 = vmul.f32 %v461_v21, %v603_v1  ;;  %v236_v30 = vadd.f32 %v617_v7, %v165_v22  ;;  %v468_v52 = vunpack.c.l.bf16 %v557_v38 }
  0x16   :  { %v237_v31 = vadd.f32 %v617_v7, %v166_v23  ;;  %v171_v32 = vmul.f32 %v464_v24, %v603_v1  ;;  %v172_v33 = vmul.f32 %v465_v25, %v603_v1  ;;  %v238_v34 = vadd.f32 %v617_v7, %v167_v26  ;;  %v564_v23 = vld [vmem:[%s1023_s0 + $0x98] sm:$0xff]  }
  0x17   :  { %v239_v35 = vadd.f32 %v617_v7, %v168_v27  ;;  %v240_v36 = vadd.f32 %v617_v7, %v169_v28  ;;  %v241_v37 = vadd.f32 %v617_v7, %v170_v29  ;;  %v300_v39 = vmax.f32 %v236_v30, 0.0 }
  0x18   :  { %v301_v40 = vmax.f32 %v237_v31, 0.0  ;;  %v242_v41 = vadd.f32 %v617_v7, %v171_v32  ;;  %v243_v42 = vadd.f32 %v617_v7, %v172_v33  ;;  %v302_v45 = vmax.f32 %v238_v34, 0.0 }
  0x19   :  { %v303_v46 = vmax.f32 %v239_v35, 0.0  ;;  %v304_v47 = vmax.f32 %v240_v36, 0.0  ;;  %v305_v48 = vmax.f32 %v241_v37, 0.0  ;;  %364 = vst [vmem:[%s1026_s3 + $0x80] sm:$0xff] %v300_v39  ;;  %v469_v53 = vunpack.c.h.bf16 %v557_v38 }
  0x1a   :  { %365 = vst [vmem:[%s1026_s3 + $0x88] sm:$0xff] %v301_v40  ;;  %v306_v50 = vmax.f32 %v242_v41, 0.0  ;;  %v307_v51 = vmax.f32 %v243_v42, 0.0  ;;  %366 = vst [vmem:[%s1026_s3 + $0x90] sm:$0xff] %v302_v45  ;;  %v472_v54 = vunpack.c.l.bf16 %v558_v43  ;;  %v473_v55 = vunpack.c.h.bf16 %v558_v43 }
  0x1b   :  { %367 = vst [vmem:[%s1026_s3 + $0x98] sm:$0xff] %v303_v46  ;;  %368 = vst [vmem:[%s1026_s3 + $0xa0] sm:$0xff] %v304_v47  ;;  %v476_v56 = vunpack.c.l.bf16 %v559_v44  ;;  %v477_v57 = vunpack.c.h.bf16 %v559_v44  ;;  %v173_v58 = vmul.f32 %v468_v52, %v603_v1  ;;  %v174_v59 = vmul.f32 %v469_v53, %v603_v1  ;;  %v566_v53 = vld [vmem:[%s1023_s0 + $0xa8] sm:$0xff]  }
  0x1c   :  { %369 = vst [vmem:[%s1026_s3 + $0xa8] sm:$0xff] %v305_v48  ;;  %370 = vst [vmem:[%s1026_s3 + $0xb0] sm:$0xff] %v306_v50  ;;  %v480_v60 = vunpack.c.l.bf16 %v560_v49  ;;  %v481_v61 = vunpack.c.h.bf16 %v560_v49  ;;  %v175_v62 = vmul.f32 %v472_v54, %v603_v1  ;;  %v176_v63 = vmul.f32 %v473_v55, %v603_v1  ;;  %v565_v48 = vld [vmem:[%s1023_s0 + $0xa0] sm:$0xff]   ;;  %v567_v54 = vld [vmem:[%s1023_s0 + $0xb0] sm:$0xff]  }
  0x1d   :  { %371 = vst [vmem:[%s1026_s3 + $0xb8] sm:$0xff] %v307_v51  ;;  %v177_v0 = vmul.f32 %v476_v56, %v603_v1  ;;  %v178_v2 = vmul.f32 %v477_v57, %v603_v1  ;;  %v244_v3 = vadd.f32 %v617_v7, %v173_v58  ;;  %v245_v4 = vadd.f32 %v617_v7, %v174_v59  ;;  %v568_v59 = vld [vmem:[%s1023_s0 + $0xb8] sm:$0xff]  }
  0x1e   :  { %v179_v5 = vmul.f32 %v480_v60, %v603_v1  ;;  %v180_v6 = vmul.f32 %v481_v61, %v603_v1  ;;  %v246_v8 = vadd.f32 %v617_v7, %v175_v62  ;;  %v247_v9 = vadd.f32 %v617_v7, %v176_v63 }
  0x1f   :  { %v248_v10 = vadd.f32 %v617_v7, %v177_v0  ;;  %v249_v11 = vadd.f32 %v617_v7, %v178_v2  ;;  %v308_v13 = vmax.f32 %v244_v3, 0.0  ;;  %v309_v14 = vmax.f32 %v245_v4, 0.0 }
  0x20   :  { %v250_v15 = vadd.f32 %v617_v7, %v179_v5  ;;  %v251_v16 = vadd.f32 %v617_v7, %v180_v6  ;;  %v310_v19 = vmax.f32 %v246_v8, 0.0  ;;  %v311_v20 = vmax.f32 %v247_v9, 0.0 }
  0x21   :  { %v312_v21 = vmax.f32 %v248_v10, 0.0  ;;  %v313_v22 = vmax.f32 %v249_v11, 0.0  ;;  %372 = vst [vmem:[%s1026_s3 + $0xc0] sm:$0xff] %v308_v13  ;;  %373 = vst [vmem:[%s1026_s3 + $0xc8] sm:$0xff] %v309_v14  ;;  %v484_v26 = vunpack.c.l.bf16 %v561_v12  ;;  %v485_v27 = vunpack.c.h.bf16 %v561_v12 }
  0x22   :  { %v314_v24 = vmax.f32 %v250_v15, 0.0  ;;  %v315_v25 = vmax.f32 %v251_v16, 0.0  ;;  %374 = vst [vmem:[%s1026_s3 + $0xd0] sm:$0xff] %v310_v19  ;;  %375 = vst [vmem:[%s1026_s3 + $0xd8] sm:$0xff] %v311_v20  ;;  %v488_v28 = vunpack.c.l.bf16 %v562_v17  ;;  %v489_v29 = vunpack.c.h.bf16 %v562_v17 }
  0x23   :  { %376 = vst [vmem:[%s1026_s3 + $0xe0] sm:$0xff] %v312_v21  ;;  %377 = vst [vmem:[%s1026_s3 + $0xe8] sm:$0xff] %v313_v22  ;;  %v492_v30 = vunpack.c.l.bf16 %v563_v18  ;;  %v493_v31 = vunpack.c.h.bf16 %v563_v18  ;;  %v181_v32 = vmul.f32 %v484_v26, %v603_v1  ;;  %v182_v33 = vmul.f32 %v485_v27, %v603_v1  ;;  %v569_v22 = vld [vmem:[%s1023_s0 + $0xc0] sm:$0xff]   ;;  %v570_v27 = vld [vmem:[%s1023_s0 + $0xc8] sm:$0xff]  }
  0x24   :  { %378 = vst [vmem:[%s1026_s3 + $0xf0] sm:$0xff] %v314_v24  ;;  %379 = vst [vmem:[%s1026_s3 + $0xf8] sm:$0xff] %v315_v25  ;;  %v496_v34 = vunpack.c.l.bf16 %v564_v23  ;;  %v497_v35 = vunpack.c.h.bf16 %v564_v23  ;;  %v183_v36 = vmul.f32 %v488_v28, %v603_v1  ;;  %v184_v37 = vmul.f32 %v489_v29, %v603_v1  ;;  %v571_v28 = vld [vmem:[%s1023_s0 + $0xd0] sm:$0xff]  }
  0x25   :  { %v185_v38 = vmul.f32 %v492_v30, %v603_v1  ;;  %v186_v39 = vmul.f32 %v493_v31, %v603_v1  ;;  %v252_v40 = vadd.f32 %v617_v7, %v181_v32  ;;  %v253_v41 = vadd.f32 %v617_v7, %v182_v33  ;;  %v572_v33 = vld [vmem:[%s1023_s0 + $0xd8] sm:$0xff]  }
  0x26   :  { %v187_v42 = vmul.f32 %v496_v34, %v603_v1  ;;  %v188_v43 = vmul.f32 %v497_v35, %v603_v1  ;;  %v254_v44 = vadd.f32 %v617_v7, %v183_v36  ;;  %v255_v45 = vadd.f32 %v617_v7, %v184_v37 }
  0x27   :  { %v256_v46 = vadd.f32 %v617_v7, %v185_v38  ;;  %v257_v47 = vadd.f32 %v617_v7, %v186_v39  ;;  %v316_v49 = vmax.f32 %v252_v40, 0.0  ;;  %v317_v50 = vmax.f32 %v253_v41, 0.0 }
  0x28   :  { %v258_v51 = vadd.f32 %v617_v7, %v187_v42  ;;  %v259_v52 = vadd.f32 %v617_v7, %v188_v43  ;;  %v318_v55 = vmax.f32 %v254_v44, 0.0  ;;  %v319_v56 = vmax.f32 %v255_v45, 0.0 }
  0x29   :  { %v320_v57 = vmax.f32 %v256_v46, 0.0  ;;  %v321_v58 = vmax.f32 %v257_v47, 0.0  ;;  %380 = vst [vmem:[%s1026_s3 + $0x100] sm:$0xff] %v316_v49  ;;  %381 = vst [vmem:[%s1026_s3 + $0x108] sm:$0xff] %v317_v50  ;;  %v500_v62 = vunpack.c.l.bf16 %v565_v48  ;;  %v501_v63 = vunpack.c.h.bf16 %v565_v48 }
  0x2a   :  { %v322_v60 = vmax.f32 %v258_v51, 0.0  ;;  %v323_v61 = vmax.f32 %v259_v52, 0.0  ;;  %382 = vst [vmem:[%s1026_s3 + $0x110] sm:$0xff] %v318_v55  ;;  %383 = vst [vmem:[%s1026_s3 + $0x118] sm:$0xff] %v319_v56  ;;  %v504_v0 = vunpack.c.l.bf16 %v566_v53  ;;  %v505_v2 = vunpack.c.h.bf16 %v566_v53 }
  0x2b   :  { %384 = vst [vmem:[%s1026_s3 + $0x120] sm:$0xff] %v320_v57  ;;  %385 = vst [vmem:[%s1026_s3 + $0x128] sm:$0xff] %v321_v58  ;;  %v508_v3 = vunpack.c.l.bf16 %v567_v54  ;;  %v509_v4 = vunpack.c.h.bf16 %v567_v54  ;;  %v189_v5 = vmul.f32 %v500_v62, %v603_v1  ;;  %v190_v6 = vmul.f32 %v501_v63, %v603_v1  ;;  %v573_v58 = vld [vmem:[%s1023_s0 + $0xe0] sm:$0xff]   ;;  %v574_v63 = vld [vmem:[%s1023_s0 + $0xe8] sm:$0xff]  }
  0x2c   :  { %386 = vst [vmem:[%s1026_s3 + $0x130] sm:$0xff] %v322_v60  ;;  %387 = vst [vmem:[%s1026_s3 + $0x138] sm:$0xff] %v323_v61  ;;  %v512_v8 = vunpack.c.l.bf16 %v568_v59  ;;  %v513_v9 = vunpack.c.h.bf16 %v568_v59  ;;  %v191_v10 = vmul.f32 %v504_v0, %v603_v1  ;;  %v192_v11 = vmul.f32 %v505_v2, %v603_v1  ;;  %v575_v0 = vld [vmem:[%s1023_s0 + $0xf0] sm:$0xff]  }
  0x2d   :  { %v193_v12 = vmul.f32 %v508_v3, %v603_v1  ;;  %v194_v13 = vmul.f32 %v509_v4, %v603_v1  ;;  %v260_v14 = vadd.f32 %v617_v7, %v189_v5  ;;  %v261_v15 = vadd.f32 %v617_v7, %v190_v6  ;;  %v576_v6 = vld [vmem:[%s1023_s0 + $0xf8] sm:$0xff]  }
  0x2e   :  { %v195_v16 = vmul.f32 %v512_v8, %v603_v1  ;;  %v196_v17 = vmul.f32 %v513_v9, %v603_v1  ;;  %v262_v18 = vadd.f32 %v617_v7, %v191_v10  ;;  %v263_v19 = vadd.f32 %v617_v7, %v192_v11 }
  0x2f   :  { %v264_v20 = vadd.f32 %v617_v7, %v193_v12  ;;  %v265_v21 = vadd.f32 %v617_v7, %v194_v13  ;;  %v324_v23 = vmax.f32 %v260_v14, 0.0  ;;  %v325_v24 = vmax.f32 %v261_v15, 0.0 }
  0x30   :  { %v266_v25 = vadd.f32 %v617_v7, %v195_v16  ;;  %v267_v26 = vadd.f32 %v617_v7, %v196_v17  ;;  %v326_v29 = vmax.f32 %v262_v18, 0.0  ;;  %v327_v30 = vmax.f32 %v263_v19, 0.0 }
  0x31   :  { %v328_v31 = vmax.f32 %v264_v20, 0.0  ;;  %v329_v32 = vmax.f32 %v265_v21, 0.0  ;;  %388 = vst [vmem:[%s1026_s3 + $0x140] sm:$0xff] %v324_v23  ;;  %389 = vst [vmem:[%s1026_s3 + $0x148] sm:$0xff] %v325_v24  ;;  %v516_v36 = vunpack.c.l.bf16 %v569_v22  ;;  %v517_v37 = vunpack.c.h.bf16 %v569_v22 }
  0x32   :  { %v330_v34 = vmax.f32 %v266_v25, 0.0  ;;  %v331_v35 = vmax.f32 %v267_v26, 0.0  ;;  %390 = vst [vmem:[%s1026_s3 + $0x150] sm:$0xff] %v326_v29  ;;  %391 = vst [vmem:[%s1026_s3 + $0x158] sm:$0xff] %v327_v30  ;;  %v520_v38 = vunpack.c.l.bf16 %v570_v27  ;;  %v521_v39 = vunpack.c.h.bf16 %v570_v27 }
  0x33   :  { %392 = vst [vmem:[%s1026_s3 + $0x160] sm:$0xff] %v328_v31  ;;  %393 = vst [vmem:[%s1026_s3 + $0x168] sm:$0xff] %v329_v32  ;;  %v524_v40 = vunpack.c.l.bf16 %v571_v28  ;;  %v525_v41 = vunpack.c.h.bf16 %v571_v28  ;;  %v197_v42 = vmul.f32 %v516_v36, %v603_v1  ;;  %v198_v43 = vmul.f32 %v517_v37, %v603_v1 }
  0x34   :  { %394 = vst [vmem:[%s1026_s3 + $0x170] sm:$0xff] %v330_v34  ;;  %395 = vst [vmem:[%s1026_s3 + $0x178] sm:$0xff] %v331_v35  ;;  %v528_v44 = vunpack.c.l.bf16 %v572_v33  ;;  %v529_v45 = vunpack.c.h.bf16 %v572_v33  ;;  %v199_v46 = vmul.f32 %v520_v38, %v603_v1  ;;  %v200_v47 = vmul.f32 %v521_v39, %v603_v1 }
  0x35   :  { %v201_v48 = vmul.f32 %v524_v40, %v603_v1  ;;  %v202_v49 = vmul.f32 %v525_v41, %v603_v1  ;;  %v268_v50 = vadd.f32 %v617_v7, %v197_v42  ;;  %v269_v51 = vadd.f32 %v617_v7, %v198_v43 }
  0x36   :  { %v203_v52 = vmul.f32 %v528_v44, %v603_v1  ;;  %v204_v53 = vmul.f32 %v529_v45, %v603_v1  ;;  %v270_v54 = vadd.f32 %v617_v7, %v199_v46  ;;  %v271_v55 = vadd.f32 %v617_v7, %v200_v47 }
  0x37   :  { %v272_v56 = vadd.f32 %v617_v7, %v201_v48  ;;  %v273_v57 = vadd.f32 %v617_v7, %v202_v49  ;;  %v332_v59 = vmax.f32 %v268_v50, 0.0  ;;  %v333_v60 = vmax.f32 %v269_v51, 0.0 }
  0x38   :  { %v274_v61 = vadd.f32 %v617_v7, %v203_v52  ;;  %v275_v62 = vadd.f32 %v617_v7, %v204_v53  ;;  %v334_v2 = vmax.f32 %v270_v54, 0.0  ;;  %v335_v3 = vmax.f32 %v271_v55, 0.0 }
  0x39   :  { %v336_v4 = vmax.f32 %v272_v56, 0.0  ;;  %v337_v5 = vmax.f32 %v273_v57, 0.0  ;;  %396 = vst [vmem:[%s1026_s3 + $0x180] sm:$0xff] %v332_v59  ;;  %397 = vst [vmem:[%s1026_s3 + $0x188] sm:$0xff] %v333_v60  ;;  %v532_v10 = vunpack.c.l.bf16 %v573_v58  ;;  %v533_v11 = vunpack.c.h.bf16 %v573_v58 }
  0x3a   :  { %v338_v8 = vmax.f32 %v274_v61, 0.0  ;;  %v339_v9 = vmax.f32 %v275_v62, 0.0  ;;  %398 = vst [vmem:[%s1026_s3 + $0x190] sm:$0xff] %v334_v2  ;;  %399 = vst [vmem:[%s1026_s3 + $0x198] sm:$0xff] %v335_v3  ;;  %v536_v12 = vunpack.c.l.bf16 %v574_v63  ;;  %v537_v13 = vunpack.c.h.bf16 %v574_v63 }
  0x3b   :  { %400 = vst [vmem:[%s1026_s3 + $0x1a0] sm:$0xff] %v336_v4  ;;  %401 = vst [vmem:[%s1026_s3 + $0x1a8] sm:$0xff] %v337_v5  ;;  %v540_v14 = vunpack.c.l.bf16 %v575_v0  ;;  %v541_v15 = vunpack.c.h.bf16 %v575_v0  ;;  %v205_v16 = vmul.f32 %v532_v10, %v603_v1  ;;  %v206_v17 = vmul.f32 %v533_v11, %v603_v1 }
  0x3c   :  { %402 = vst [vmem:[%s1026_s3 + $0x1b0] sm:$0xff] %v338_v8  ;;  %403 = vst [vmem:[%s1026_s3 + $0x1b8] sm:$0xff] %v339_v9  ;;  %v544_v18 = vunpack.c.l.bf16 %v576_v6  ;;  %v545_v19 = vunpack.c.h.bf16 %v576_v6  ;;  %v207_v20 = vmul.f32 %v536_v12, %v603_v1  ;;  %v208_v21 = vmul.f32 %v537_v13, %v603_v1 }
  0x3d   :  { %v209_v22 = vmul.f32 %v540_v14, %v603_v1  ;;  %v210_v23 = vmul.f32 %v541_v15, %v603_v1  ;;  %v276_v24 = vadd.f32 %v617_v7, %v205_v16  ;;  %v277_v25 = vadd.f32 %v617_v7, %v206_v17 }
  0x3e   :  { %v211_v26 = vmul.f32 %v544_v18, %v603_v1  ;;  %v212_v27 = vmul.f32 %v545_v19, %v603_v1  ;;  %v278_v28 = vadd.f32 %v617_v7, %v207_v20  ;;  %v279_v29 = vadd.f32 %v617_v7, %v208_v21 }
  0x3f   :  { %v280_v30 = vadd.f32 %v617_v7, %v209_v22  ;;  %v281_v31 = vadd.f32 %v617_v7, %v210_v23  ;;  %v340_v32 = vmax.f32 %v276_v24, 0.0  ;;  %v341_v33 = vmax.f32 %v277_v25, 0.0 }
  0x40   :  { %v282_v34 = vadd.f32 %v617_v7, %v211_v26  ;;  %v283_v35 = vadd.f32 %v617_v7, %v212_v27  ;;  %v342_v36 = vmax.f32 %v278_v28, 0.0  ;;  %v343_v37 = vmax.f32 %v279_v29, 0.0 }
  0x41   :  { %v344_v38 = vmax.f32 %v280_v30, 0.0  ;;  %v345_v39 = vmax.f32 %v281_v31, 0.0  ;;  %404 = vst [vmem:[%s1026_s3 + $0x1c0] sm:$0xff] %v340_v32  ;;  %405 = vst [vmem:[%s1026_s3 + $0x1c8] sm:$0xff] %v341_v33 }
  0x42   :  { %v346_v1 = vmax.f32 %v282_v34, 0.0  ;;  %v347_v40 = vmax.f32 %v283_v35, 0.0  ;;  %406 = vst [vmem:[%s1026_s3 + $0x1d0] sm:$0xff] %v342_v36  ;;  %407 = vst [vmem:[%s1026_s3 + $0x1d8] sm:$0xff] %v343_v37 }
  0x43   :  { %408 = vst [vmem:[%s1026_s3 + $0x1e0] sm:$0xff] %v344_v38  ;;  %409 = vst [vmem:[%s1026_s3 + $0x1e8] sm:$0xff] %v345_v39 }
  0x44   :  { %410 = vst [vmem:[%s1026_s3 + $0x1f0] sm:$0xff] %v346_v1  ;;  %411 = vst [vmem:[%s1026_s3 + $0x1f8] sm:$0xff] %v347_v40 }

// kernel: double3dconv.4
= control target key start
LH: loop header
LB: loop body
LE: loop exit
PB: predicated region body
PF: predicated region fallthrough
CT: control target
= control target key end

     0   :  { %s6192_s27 = smov 0   ;;  %s6194_s28 = smov 0   ;;  %s7714_s0 = inlined_call_operand.vmem [shape: bf16[2,18,18,144], index: 0, kind: input, shape index: {}, may-alias: {0,1,2}]   ;;  %s7715_s1 = inlined_call_operand.vmem [shape: bf16[2,18,18,144], index: 1, kind: input, shape index: {}, may-alias: {0,1,2}]   ;;  %s7716_s2 = inlined_call_operand.vmem [shape: bf16[2,18,18,144], index: 2, kind: input, shape index: {}, may-alias: {0,1,2}]   ;;  %s7717_s3 = inlined_call_operand.vmem [shape: bf16[27,128,128], index: 3, kind: input, shape index: {}]   ;;  %s7718_s4 = inlined_call_operand.vmem [shape: f32[1,128], index: 4, kind: input, shape index: {}]   ;;  %s7719_s5 = inlined_call_operand.vmem [shape: f32[1,144], index: 5, kind: input, shape index: {}]   ;;  %s7720_s6 = inlined_call_operand.vmem [shape: f32[1,144], index: 6, kind: input, shape index: {}]   ;;  %s7721_s7 = inlined_call_operand.vmem [shape: bf16[2,16,16,128], index: 7, kind: output, shape index: {0}]   ;;  %s7722_s8 = inlined_call_operand.vmem [shape: f32[2,16,2,128], index: 8, kind: output, shape index: {1}]  }
   0x1   :  { %s6196_s29 = smov 0   ;;  %s6198_s30 = smov 0  }
   0x2   :  { %s6200_s9 = smov 0  }
   0x3 LB: > { %s28_s10 = sadd.s32 1, %s6133_s29  ;;  %s31_s11 = sadd.s32 1, %s6137_s30  ;;  %s6141_s9 = sphi %s6200_s9, %s19_s9   ;;  %s6137_s30 = sphi %s6198_s30, %s7758_s30   ;;  %s6133_s29 = sphi %s6196_s29, %s7757_s29   ;;  %s6129_s28 = sphi %s6194_s28, %s7756_s28   ;;  %s6125_s27 = sphi %s6192_s27, %s7755_s27  }
   0x4   : > { %p29_p0 = scmp.ge.s32.totalorder %s28_s10, 16  ;;  %p4321_p1 = scmp.ge.s32.totalorder %s6141_s9, 1 }
   0x5   : > { %p327_p2 = scmp.lt.s32.totalorder %s6141_s9, 33 }
   0x6   : > { %s7760_s10 = smov (%p29_p0, %s28_s10), 0  ;;  %s7762_s11 = smov (!%p29_p0, %s31_s11), %s6137_s30 }
   0x7   : > { %p328_p3 = pnand %p4321_p1, %p327_p2  ;;  %p33_p4 = scmp.ge.s32.totalorder %s7762_s11, 2 }
   0x8   : > { %p397_p5 = scmp.lt.s32.totalorder (!%p328_p3), %s6129_s28, 1  ;;  %p399_p6 = scmp.lt.s32.totalorder (!%p328_p3), %s6125_s27, 17 }
   0x9   : > { %s7764_s11 = smov (%p33_p4, %s7762_s11), 0  ;;  %331 = sbr.rel (%p328_p3) target bundleno = 798 (0x31e), region = 48 }
   0xa   : > { %p529_p7 = scmp.ge.s32.totalorder (!%p328_p3), %s6125_s27, 1  ;;  %p530_p8 = scmp.le.s32.totalorder (!%p328_p3), %s6125_s27, 16 }
   0xb   : > { %s6145_s16 = smov (!%p328_p3), 120   ;;  %s6442_s18 = sadd.s32 (!%p328_p3), 1, %s6125_s27 }
   0xc   : > { %p6249_p9 = pnand (!%p328_p3), %p530_p8, %p529_p7  ;;  %p409_p10 = scmp.lt.s32.totalorder (!%p328_p3), %s6442_s18, 17 }
   0xd   : > { %p629_p11 = scmp.ge.s32.totalorder (!%p328_p3), %s6442_s18, 1  ;;  %p630_p12 = scmp.le.s32.totalorder (!%p328_p3), %s6442_s18, 16 }
   0xe   : > { %v457_v0 = vlaneseq  ;;  %s7766_s28 = smov (!%p397_p5, %s6129_s28), 1  ;;  %v6143_v3 = vmov 0.0   ;;  %v455_v4 = vld [vmem:[%s7719_s5] sm:$0x3]  ;;  %v5866_v7 = vld [vmem:[%s7717_s3 + $0x78] sm:$0xff]   ;;  %v5868_v13 = vld [vmem:[%s7717_s3 + $0x70] sm:$0xff]  }
   0xf   : > { %s400_s12 = scalar_select %p399_p6, %s6125_s27, 17  ;;  %5274 = vmatprep.subr.bf16.mxu0 %v6143_v3  ;;  %5294 = vmatprep.subr.bf16.mxu1 %v6143_v3  ;;  %v473_v9 = vld [vmem:[%s7720_s6] sm:$0x3]  ;;  %v5867_v11 = vld [vmem:[%s7717_s3 + $0x38] sm:$0xff]   ;;  %v5869_v19 = vld [vmem:[%s7717_s3 + $0x30] sm:$0xff]   ;;  %vm568_vm12 = vcmask 1043456  }
  0x10   : > { %v458_v1 = vshrl.u32 %v457_v0, 7  ;;  %v6229_v2 = vand.u32 127, %v457_v0  ;;  %s6235_s13 = smul.u32 108, %s7766_s28  ;;  %5275 = vmatpush3.bf16.msra.mxu0 %v5866_v7  ;;  %5295 = vmatpush3.bf16.msra.mxu1 %v5867_v11  ;;  %v5870_v33 = vld [vmem:[%s7717_s3 + $0x68] sm:$0xff]   ;;  %vm569_vm13 = vcmask 130052   ;;  %v5872_v48 = vld [vmem:[%s7717_s3 + $0x60] sm:$0xff]   ;;  %p6476_p13 = pnand %p630_p12, %p629_p11 }
  0x11   : > { %s5814_s19 = smul.u32 6, %s400_s12  ;;  %5276 = vmatprep.subr.bf16.mxu0 %v6143_v3  ;;  %5296 = vmatprep.subr.bf16.mxu1 %v6143_v3  ;;  %v5871_v39 = vld [vmem:[%s7717_s3 + $0x28] sm:$0xff]   ;;  %v5873_v52 = vld [vmem:[%s7717_s3 + $0x20] sm:$0xff]   ;;  %v5874_v60 = vld [vmem:[%s7717_s3 + $0x58] sm:$0xff]   ;;  %p430_p4 = scmp.lt.s32.totalorder %s6125_s27, 15 }
  0x12   : > { %v6240_v5 = vsub.s32 0, %v458_v1  ;;  %v6243_v6 = vadd.s32 128, %v6229_v2  ;;  %vm504_vm0 = vcmp.ge.s32.totalorder %v458_v1, 1  ;;  %v6256_v8 = vsub.s32 1, %v458_v1  ;;  %s4330_s22 = scalar_select %p6249_p9, 0, 1 }
  0x13   : > { %vm513_vm1 = vcmp.ge.s32.totalorder %v6229_v2, 8  ;;  %v500_v10 = vadd.s32 16, %v458_v1  ;;  %s403_s25 = sadd.s32 %s6235_s13, %s5814_s19  ;;  %v5875_v61 = vld [vmem:[%s7717_s3 + $0x18] sm:$0xff]   ;;  %v5881_v29 = vld [vmem:[%s7717_s3] sm:$0xff]   ;;  %v5888_v57 = vld [vmem:[%s7717_s3 + $0xe8] sm:$0xff]   ;;  %s4326_s12 = sshll.u32 %s7766_s28, 5 }
  0x14   : > { %vm6271_vm2 = vmand %vm504_vm0, %vm513_vm1  ;;  %vm7723_vm3 = vcmp.lt.s32.totalorder %v6243_v6, 136  ;;  %s4322_s14 = sshll.u32 %s403_s25, 2  ;;  %v534_v15 = vstv %s4330_s22  ;;  %v460_v16 = vrot.slane %v455_v4, %v6240_v5  ;;  %v464_v17 = vrot.slane %v455_v4, %v6256_v8  ;;  %5277 = vmatpush3.bf16.msra.mxu0 %v5868_v13  ;;  %5297 = vmatpush3.bf16.msra.mxu1 %v5869_v19  ;;  %v5878_v19 = vld [vmem:[%s7717_s3 + $0x48] sm:$0xff]   ;;  %v5936_v12 = vld [vmem:[%s7717_s3 + $0x1c0] sm:$0xff]  }
  0x15   : > { %vm509_vm4 = vcmp.le.s32.totalorder %v500_v10, 16  ;;  %vm6283_vm5 = vmand %vm504_vm0, %vm7723_vm3  ;;  %s405_s17 = scalar_lea.vmem %s7714_s0, %s4322_s14  ;;  %vm535_vm6 = vcmp.eq.s32.totalorder %v534_v15, 1  ;;  %v478_v23 = vrot.slane %v473_v9, %v6240_v5  ;;  %v482_v24 = vrot.slane %v473_v9, %v6256_v8  ;;  %5278 = vmatprep.subr.bf16.mxu0 %v6143_v3  ;;  %5298 = vmatprep.subr.bf16.mxu1 %v6143_v3  ;;  %v5905_v2 = vld [vmem:[%s7717_s3 + $0x128] sm:$0xff]   ;;  %v5965_v47 = vld [vmem:[%s7717_s3 + $0x2d0] sm:$0xff]  }
  0x16   : > { %vm6295_vm7 = vmand %vm509_vm4, %vm513_vm1  ;;  %v446_v20 = vld [vmem:[%s405_s17] sm:$0xff]  ;;  %v447_v21 = vld [vmem:[%s405_s17 + $0x8] sm:$0xff]  ;;  %vm573_vm0 = vcmask 1040384   ;;  %s410_s21 = scalar_select %p409_p10, %s6442_s18, 17 }
  0x17   : > { %v448_v22 = vld [vmem:[%s405_s17 + $0x10] sm:$0x11]  ;;  %v449_v25 = vunpack.c.l.bf16 %v446_v20  ;;  %v450_v26 = vunpack.c.h.bf16 %v446_v20  ;;  %v451_v27 = vunpack.c.l.bf16 %v447_v21  ;;  %v452_v28 = vunpack.c.h.bf16 %v447_v21  ;;  %vm6308_vm8 = vmand %vm6271_vm2, %vm535_vm6  ;;  %v5879_v20 = vld [vmem:[%s7717_s3 + $0x8] sm:$0xff]   ;;  %s6146_s17 = smov 112  }
  0x18   : > { %v453_v30 = vunpack.c.l.bf16 %v448_v22  ;;  %v454_v31 = vunpack.c.h.bf16 %v448_v22  ;;  %vm6316_vm9 = vmand %vm6283_vm5, %vm535_vm6  ;;  %5279 = vmatpush3.bf16.msra.mxu0 %v5870_v33  ;;  %5299 = vmatpush3.bf16.msra.mxu1 %v5871_v39  ;;  %s5816_s24 = smul.u32 6, %s410_s21  ;;  %s6679_s21 = sadd.s32 2, %s6125_s27  ;;  %v5939_v13 = vld [vmem:[%s7717_s3 + $0x230] sm:$0xff]  }
  0x19   : > { %v467_v34 = vmul.f32 %v460_v16, %v449_v25  ;;  %v468_v35 = vmul.f32 %v464_v17, %v450_v26  ;;  %v469_v36 = vmul.f32 %v460_v16, %v451_v27  ;;  %v470_v37 = vmul.f32 %v464_v17, %v452_v28  ;;  %vm6326_vm10 = vmand %vm513_vm1, %vm535_vm6  ;;  %5280 = vmatprep.subr.bf16.mxu0 %v6143_v3  ;;  %s4334_s23 = scalar_select %p6476_p13, 0, 1 }
  0x1a   : > { %vm6337_vm11 = vmand %vm7723_vm3, %vm535_vm6  ;;  %v471_v41 = vmul.f32 %v460_v16, %v453_v30  ;;  %v472_v42 = vmul.f32 %v464_v17, %v454_v31  ;;  %5300 = vmatprep.subr.bf16.mxu1 %v6143_v3  ;;  %v5876_v16 = vld [vmem:[%s7717_s3 + $0x50] sm:$0xff]   ;;  %s413_s25 = sadd.s32 %s5816_s24, %s6235_s13  ;;  %p420_p0 = scmp.lt.s32.totalorder %s6679_s21, 17 }
  0x1b   : > { %v485_v43 = vadd.f32 %v478_v23, %v467_v34  ;;  %v486_v44 = vadd.f32 %v482_v24, %v468_v35  ;;  %v487_v45 = vadd.f32 %v478_v23, %v469_v36  ;;  %v488_v46 = vadd.f32 %v482_v24, %v470_v37  ;;  %vm6344_vm14 = vmand %vm509_vm4, %vm7723_vm3  ;;  %v5877_v17 = vld [vmem:[%s7717_s3 + $0x10] sm:$0xff]   ;;  %s4323_s14 = sshll.u32 %s413_s25, 2  ;;  %p724_p1 = scmp.ge.s32.totalorder %s6679_s21, 1 }
  0x1c   : > { %v489_v49 = vadd.f32 %v478_v23, %v471_v41  ;;  %v490_v50 = vadd.f32 %v482_v24, %v472_v42  ;;  %vm6355_vm15 = vmand %vm6295_vm7, %vm535_vm6  ;;  %vm574_vm4 = vcmask 126980   ;;  %5281 = vmatpush3.bf16.msra.mxu0 %v5872_v48  ;;  %5301 = vmatpush3.bf16.msra.mxu1 %v5873_v52  ;;  %v5880_v23 = vld [vmem:[%s7717_s3 + $0x40] sm:$0xff]   ;;  %s6483_s18 = scalar_lea.vmem %s7715_s1, %s4323_s14  ;;  %p725_p2 = scmp.le.s32.totalorder %s6679_s21, 16 }
  0x1d   : > { %v491_v53 = vmax.f32 %v485_v43, 0.0  ;;  %v492_v54 = vmax.f32 %v486_v44, 0.0  ;;  %v493_v55 = vmax.f32 %v487_v45, 0.0  ;;  %v494_v56 = vmax.f32 %v488_v46, 0.0  ;;  %vm6365_vm3 = vmand %vm6344_vm14, %vm535_vm6  ;;  %5282 = vmatprep.subr.bf16.mxu0 %v6143_v3  ;;  %5302 = vmatprep.subr.bf16.mxu1 %v6143_v3  ;;  %s421_s26 = scalar_select %p420_p0, %s6679_s21, 17 }
  0x1e   : > { %v495_v58 = vmax.f32 %v489_v49, 0.0  ;;  %v496_v59 = vmax.f32 %v490_v50, 0.0  ;;  %vm6386_vm6 = vmor %vm569_vm13, %vm568_vm12  ;;  %v5884_v49 = vld [vmem:[%s7717_s3 + $0xf8] sm:$0xff]   ;;  %p6735_p3 = pnand %p725_p2, %p724_p1  ;;  %s7768_s27 = smov (!%p430_p4, %s6125_s27), 15 }
  0x1f   : > { %v542_v62 = vsel %vm6308_vm8, %v491_v53, 0.0  ;;  %v543_v63 = vsel %vm6316_vm9, %v492_v54, 0.0  ;;  %v544_v0 = vsel %vm6326_vm10, %v493_v55, 0.0  ;;  %v545_v1 = vsel %vm6337_vm11, %v494_v56, 0.0  ;;  %vm6397_vm8 = vmor %vm574_vm4, %vm573_vm0  ;;  %v5886_v54 = vld [vmem:[%s7717_s3 + $0xf0] sm:$0xff]   ;;  %s4325_s25 = sshll.u32 %s7768_s27, 1 }
  0x20   : > { %v5015_v7 = vpack.c.bf16 %v543_v63, %v542_v62  ;;  %v5016_v9 = vpack.c.bf16 %v545_v1, %v544_v0  ;;  %v546_v10 = vsel %vm6355_vm15, %v495_v58, 0.0  ;;  %v547_v11 = vsel %vm6365_vm3, %v496_v59, 0.0  ;;  %5283 = vmatpush3.bf16.msra.mxu0 %v5874_v60  ;;  %5303 = vmatpush3.bf16.msra.mxu1 %v5875_v61  ;;  %v5890_v58 = vld [vmem:[%s7717_s3 + $0xe0] sm:$0xff]   ;;  %v5892_v62 = vld [vmem:[%s7717_s3 + $0xd8] sm:$0xff]   ;;  %v578_v0 = vld [vmem:[%s6483_s18 + $0x8] sm:$0xff] }
  0x21   : > { %v5017_v15 = vpack.c.bf16 %v547_v11, %v546_v10  ;;  %5284 = vmatprep.subr.bf16.mxu0 %v6143_v3  ;;  %vm6144_vm3 = vmmov 0   ;;  %5304 = vmatprep.subr.bf16.mxu1 %v6143_v3  ;;  %vm1146_vm9 = vsmask.f32 7424  ;;  %vm1540_vm10 = vcmask 1046528   ;;  %v577_v61 = vld [vmem:[%s6483_s18] sm:$0xff] }
  0x22   : > { %571 = vst.msk [vmem:[#allocation2] sm:$0xff] %vm6386_vm6, %v5015_v7  ;;  %572 = vst.msk [vmem:[#allocation2 + $0x8] sm:$0xff] %vm6386_vm6, %v5016_v9  ;;  %5290 = vmatprep.mubr.msk.bf16.mxu0 %vm6144_vm3, %v6143_v3  ;;  %5310 = vmatprep.mubr.msk.bf16.mxu1 %vm6144_vm3, %v6143_v3  ;;  %v580_v1 = vunpack.c.l.bf16 %v577_v61  ;;  %v581_v7 = vunpack.c.h.bf16 %v577_v61  ;;  %v582_v9 = vunpack.c.l.bf16 %v578_v0  ;;  %v583_v10 = vunpack.c.h.bf16 %v578_v0  ;;  %v586_v11 = vld [vmem:[%s7719_s5] sm:$0x3]  ;;  %s4338_s21 = scalar_select %p6735_p3, 0, 1 }
  0x23   : > { %576 = vst.msk [vmem:[#allocation2 + $0x10] sm:$0x11] %vm6397_vm8, %v5017_v15  ;;  %v604_v15 = vld [vmem:[%s7720_s6] sm:$0x3]  ;;  %vm7752_vm0 = vcmp.lt.s32.totalorder %v6243_v6, 136 }
  0x24   : > { %5285 = vmatpush3.bf16.msra.mxu0 %v5876_v16  ;;  %5305 = vmatpush3.bf16.msra.mxu1 %v5877_v17  ;;  %v6501_v16 = vstv %s4334_s23  ;;  %v6505_v17 = vrot.slane %v586_v11, %v6240_v5 }
  0x25   : > { %5286 = vmatprep.subr.bf16.mxu0 %v6143_v3  ;;  %5306 = vmatprep.subr.bf16.mxu1 %v6143_v3  ;;  %vm635_vm11 = vcmp.eq.s32.totalorder %v6501_v16, 1  ;;  %v5914_v16 = vld [vmem:[%s7717_s3 + $0x150] sm:$0xff]  }
  0x26   : > { %vm6528_vm12 = vmand %vm6271_vm2, %vm635_vm11 }
  0x27   : > { %vm637_vm13 = vmand %vm6283_vm5, %vm635_vm11 }
  0x28   : > { %5287 = vmatpush3.bf16.msra.mxu0 %v5878_v19  ;;  %5307 = vmatpush3.bf16.msra.mxu1 %v5879_v20  ;;  %v6508_v19 = vrot.slane %v586_v11, %v6256_v8  ;;  %v6511_v20 = vrot.slane %v604_v15, %v6240_v5  ;;  %vm638_vm15 = vmand %vm513_vm1, %vm635_vm11 }
  0x29   : > { %v785_v21 = vld [vmem:[#allocation2] sm:$0xff]  ;;  %v786_v22 = vld [vmem:[#allocation2 + $0x8] sm:$0xff]  ;;  %5288 = vmatprep.subr.bf16.mxu0 %v6143_v3  ;;  %5308 = vmatprep.subr.bf16.mxu1 %v6143_v3  ;;  %vm639_vm4 = vmand %vm7752_vm0, %vm635_vm11 }
  0x2a   : > { %v4358_v24 = vcombine.low %v785_v21, %v786_v22  ;;  %v4359_v25 = vcombine.high %v785_v21, %v786_v22  ;;  %v1253_v26 = vld [vmem:[#allocation2 + $0x10] sm:$0x11]  ;;  %v1636_v36 = vld [vmem:[#allocation2] sm:$0xee]  ;;  %v1119_v60 = vld [vmem:[#allocation2 + $0x8] sm:$0xf]  ;;  %v6514_v21 = vrot.slane %v604_v15, %v6256_v8 }
  0x2b   : > { %v4446_v27 = vcombine.high %v1253_v26, %v1253_v26  ;;  %v4445_v28 = vcombine.low %v1253_v26, %v1253_v26  ;;  %v5882_v41 = vld [vmem:[#allocation2] ss:$8 sps:$4 sm:$0xff]   ;;  %v4521_v44 = vcombine.high %v1636_v36, %v786_v22  ;;  %v4520_v45 = vcombine.low %v1636_v36, %v786_v22  ;;  %v5894_v22 = vld [vmem:[%s7717_s3 + $0xd0] sm:$0xff]  }
  0x2c   : > { %812 = vrot.lane.b32.xlu0 %v4358_v24, %s6145_s16  ;;  %1020 = vrot.lane.b32.xlu1 %v4358_v24, %s6146_s17  ;;  %v1297_v30 = vshrl.u32 %v4359_v25, 16  ;;  %v1299_v31 = vshll.u32 %v4359_v25, 16  ;;  %v1285_v32 = vshrl.u32 %v4358_v24, 16  ;;  %v1287_v33 = vshll.u32 %v4358_v24, 16  ;;  %v1118_v59 = vld [vmem:[#allocation2] sm:$0xf] }
  0x2d   : > { %v1304_v34 = vshll.u32 %v4446_v27, 16  ;;  %v1292_v35 = vshll.u32 %v4445_v28, 16  ;;  %5289 = vmatpush3.bf16.msra.mxu0 %v5880_v23  ;;  %5309 = vmatpush3.bf16.msra.mxu1 %v5881_v29  ;;  %v1662_v50 = vrot.slane %v4521_v44, 1  ;;  %v1663_v51 = vrot.slane %v4446_v27, 1 }
  0x2e   : > { %v1301_v37 = vrot.slane %v1299_v31, 1  ;;  %v1289_v38 = vrot.slane %v1287_v33, 1  ;;  %5314 = vmatprep.subr.bf16.mxu0 %v6143_v3  ;;  %5334 = vmatprep.subr.bf16.mxu1 %v6143_v3  ;;  %v1659_v52 = vrot.slane %v4520_v45, 1  ;;  %v1660_v53 = vrot.slane %v4445_v28, 1  ;;  %v5896_v33 = vld [vmem:[%s7717_s3 + $0xc8] sm:$0xff]  }
  0x2f   : > { %v1306_v39 = vrot.slane %v1304_v34, 1  ;;  %v1294_v40 = vrot.slane %v1292_v35, 1  ;;  %v1664_v55 = vsel %vm1540_vm10, %v1662_v50, %v1663_v51  ;;  %v4417_v63 = vcombine.low %v1118_v59, %v1119_v60  ;;  %v5901_v27 = vld [vmem:[#allocation2 + $0x10] ss:$0 sps:$4 sm:$0x11]  }
  0x30   : > { %814 = vrot.lane.b32.xlu0 %v4359_v25, %s6145_s16  ;;  %1022 = vrot.lane.b32.xlu1 %v4359_v25, %s6146_s17  ;;  %v1302_v42 = vor.u32 %v1301_v37, %v1297_v30  ;;  %v1290_v43 = vor.u32 %v1289_v38, %v1285_v32  ;;  %v1661_v56 = vsel %vm1540_vm10, %v1659_v52, %v1660_v53  ;;  %v5902_v53 = vld [vmem:[%s7717_s3 + $0x178] sm:$0xff]  }
  0x31   : > { %5311 = vmatmul.mubr.bf16.vlgmr.msra.gmra.mxu1 %v5882_v41  ;;  %v1150_v23 = vshll.u32 %v4417_v63, 16  ;;  %v598_v24 = vmul.f32 %v6505_v17, %v580_v1  ;;  %v599_v25 = vmul.f32 %v6508_v19, %v581_v7  ;;  %v600_v26 = vmul.f32 %v6505_v17, %v582_v9  ;;  %v5910_v9 = vld [vmem:[%s7717_s3 + $0x160] sm:$0xff]  }
  0x32   : > { %v1307_v46 = vsel %vm1146_vm9, %v1302_v42, %v1306_v39  ;;  %v1295_v48 = vsel %vm1146_vm9, %v1290_v43, %v1294_v40  ;;  %5335 = vmatpush3.bf16.msra.mxu1 %v5884_v49  ;;  %5350 = vmatprep.mubr.msk.bf16.mxu1 %vm6144_vm3, %v6143_v3  ;;  %v601_v28 = vmul.f32 %v6508_v19, %v583_v10  ;;  %v1148_v34 = vshrl.u32 %v4417_v63, 16  ;;  %v5898_v49 = vld [vmem:[%s7717_s3 + $0xc0] sm:$0xff]  }
  0x33   : > { %5336 = vmatprep.subr.bf16.mxu1 %v6143_v3  ;;  %v616_v30 = vadd.f32 %v6511_v20, %v598_v24  ;;  %v617_v31 = vadd.f32 %v6514_v21, %v599_v25  ;;  %v618_v32 = vadd.f32 %v6511_v20, %v600_v26  ;;  %v1152_v36 = vrot.slane %v1150_v23, 1 }
  0x34   : > { %1310 = vrot.lane.b32.xlu1 %v1307_v46, %s6145_s16  ;;  %1308 = vrot.lane.b32.xlu0 %v1295_v48, %s6145_s16  ;;  %v619_v35 = vadd.f32 %v6514_v21, %v601_v28  ;;  %v1155_v40 = vshll.u32 %v5901_v27, 16 }
  0x35   : > { %v622_v37 = vmax.f32 %v616_v30, 0.0  ;;  %v623_v38 = vmax.f32 %v617_v31, 0.0  ;;  %v624_v39 = vmax.f32 %v618_v32, 0.0  ;;  %v1153_v50 = vor.u32 %v1152_v36, %v1148_v34  ;;  %v5918_v31 = vld [vmem:[%s7717_s3 + $0x140] sm:$0xff]  }
  0x36   : > { %5337 = vmatpush3.bf16.msra.mxu1 %v5886_v54  ;;  %v625_v41 = vmax.f32 %v619_v35, 0.0  ;;  %v1157_v51 = vrot.slane %v1155_v40, 1  ;;  %v579_v54 = vld [vmem:[%s6483_s18 + $0x10] sm:$0x11]  ;;  %s5817_s18 = smul.u32 6, %s421_s26 }
  0x37   : > { %5338 = vmatprep.subr.bf16.mxu1 %v6143_v3  ;;  %v642_v42 = vsel %vm6528_vm12, %v622_v37, 0.0  ;;  %v643_v43 = vsel %vm637_vm13, %v623_v38, 0.0  ;;  %v644_v44 = vsel %vm638_vm15, %v624_v39, 0.0  ;;  %v584_v60 = vunpack.c.l.bf16 %v579_v54  ;;  %vm640_vm12 = vmand %vm6295_vm7, %vm635_vm11 }
  0x38   : > { %1424 = vrot.lane.b32.xlu1 %v1307_v46, %s6146_s17  ;;  %1422 = vrot.lane.b32.xlu0 %v1295_v48, %s6146_s17  ;;  %v645_v45 = vsel %vm639_vm4, %v625_v41, 0.0  ;;  %v5018_v46 = vpack.c.bf16 %v643_v43, %v642_v42  ;;  %v1158_v52 = vsel %vm1146_vm9, %v1153_v50, %v1157_v51  ;;  %v585_v61 = vunpack.c.h.bf16 %v579_v54  ;;  %vm641_vm13 = vmand %vm6344_vm14, %vm635_vm11  ;;  %v5883_v42 = vld [vmem:[%s7717_s3 + $0xb8] sm:$0xff]   ;;  %v5887_v50 = vld [vmem:[%s7717_s3 + $0xa8] sm:$0xff]   ;;  %s424_s20 = sadd.s32 %s5817_s18, %s6235_s13 }
  0x39   : > { %v5019_v48 = vpack.c.bf16 %v645_v45, %v644_v44  ;;  %v602_v63 = vmul.f32 %v6505_v17, %v584_v60  ;;  %v5912_v17 = vld [vmem:[%s7717_s3 + $0x158] sm:$0xff]   ;;  %vm816_vm11 = vcmask 982016   ;;  %vm1024_vm15 = vcmask 916480   ;;  %s4324_s22 = sshll.u32 %s424_s20, 2  ;;  %s4328_s20 = sshll.u32 %s7766_s28, 4 }
  0x3a   : > { %5339 = vmatpush3.bf16.msra.mxu1 %v5888_v57  ;;  %669 = vst.msk [vmem:[#allocation2 + $0x18] sm:$0xff] %vm6386_vm6, %v5018_v46  ;;  %v603_v0 = vmul.f32 %v6508_v19, %v585_v61  ;;  %v5885_v46 = vld [vmem:[%s7717_s3 + $0xb0] sm:$0xff]   ;;  %s6708_s26 = scalar_lea.vmem %s7716_s2, %s4324_s22  ;;  %s442_s22 = sadd.s32 %s4328_s20, %s7768_s27 }
  0x3b   : > { %5340 = vmatprep.subr.bf16.mxu1 %v6143_v3  ;;  %670 = vst.msk [vmem:[#allocation2 + $0x20] sm:$0xff] %vm6386_vm6, %v5019_v48  ;;  %v620_v1 = vadd.f32 %v6511_v20, %v602_v63 }
  0x3c   : > { %1667 = vrot.lane.b32.xlu1 %v1664_v55, %s6145_s16  ;;  %1665 = vrot.lane.b32.xlu0 %v1661_v56, %s6145_s16  ;;  %v621_v7 = vadd.f32 %v6514_v21, %v603_v0  ;;  %v5916_v21 = vld [vmem:[%s7717_s3 + $0x148] sm:$0xff]  }
  0x3d   : > { %v626_v10 = vmax.f32 %v620_v1, 0.0 }
  0x3e   : > { %5341 = vmatpush3.bf16.msra.mxu1 %v5890_v58  ;;  %v627_v11 = vmax.f32 %v621_v7, 0.0  ;;  %v5891_v7 = vld [vmem:[%s7717_s3 + $0x98] sm:$0xff]  }
  0x3f   : > { %5342 = vmatprep.subr.bf16.mxu1 %v6143_v3  ;;  %v646_v15 = vsel %vm640_vm12, %v626_v10, 0.0  ;;  %v5893_v10 = vld [vmem:[%s7717_s3 + $0x90] sm:$0xff]  }
  0x40   : > { %1781 = vrot.lane.b32.xlu1 %v1664_v55, %s6146_s17  ;;  %1779 = vrot.lane.b32.xlu0 %v1661_v56, %s6146_s17  ;;  %v5904_v56 = vld [vmem:[%s7717_s3 + $0x170] sm:$0xff]   ;;  %v647_v19 = vsel %vm641_vm13, %v627_v11, 0.0  ;;  %v5928_v11 = vld [vmem:[%s7717_s3 + $0x1e0] sm:$0xff]  }
  0x41   : > { %v1992_v55 = vld [vmem:[#allocation2 + $0x18] sm:$0xff]  ;;  %v5020_v20 = vpack.c.bf16 %v647_v19, %v646_v15  ;;  %v5895_v15 = vld [vmem:[%s7717_s3 + $0x88] sm:$0xff]   ;;  %v5897_v19 = vld [vmem:[%s7717_s3 + $0x80] sm:$0xff]  }
  0x42   : > { %5343 = vmatpush3.bf16.msra.mxu1 %v5892_v62  ;;  %v6572_v57 = vld [vmem:[#allocation2 + $0x20] sm:$0xff]  ;;  %v5908_v62 = vld [vmem:[%s7717_s3 + $0x168] sm:$0xff]   ;;  %v2746_v51 = vld [vmem:[#allocation2 + $0x18] sm:$0xee] }
  0x43   : > { %5344 = vmatprep.subr.bf16.mxu1 %v6143_v3  ;;  %v4596_v58 = vcombine.high %v1992_v55, %v6572_v57  ;;  %v4595_v59 = vcombine.low %v1992_v55, %v6572_v57  ;;  %671 = vst.msk [vmem:[#allocation2 + $0x28] sm:$0x11] %vm6397_vm8, %v5020_v20  ;;  %v4748_v54 = vcombine.low %v2746_v51, %v6572_v57  ;;  %v672_v20 = vld [vmem:[%s6708_s26] sm:$0xff] }
  0x45   : > { %2021 = vrot.lane.b32.xlu1 %v4596_v58, %s6145_s16  ;;  %2019 = vrot.lane.b32.xlu0 %v4595_v59, %s6145_s16  ;;  %v2410_v23 = vshll.u32 %v4596_v58, 16  ;;  %v2398_v24 = vshll.u32 %v4595_v59, 16  ;;  %v2408_v27 = vshrl.u32 %v4596_v58, 16  ;;  %v2396_v29 = vshrl.u32 %v4595_v59, 16 }
  0x46   : > { %5345 = vmatpush3.bf16.msra.mxu1 %v5894_v22  ;;  %v2769_v61 = vrot.slane %v4748_v54, 1 }
  0x47   : > { %5346 = vmatprep.subr.bf16.mxu1 %v6143_v3  ;;  %v2412_v28 = vrot.slane %v2410_v23, 1  ;;  %v2400_v30 = vrot.slane %v2398_v24, 1  ;;  %v675_v23 = vunpack.c.l.bf16 %v672_v20  ;;  %v676_v24 = vunpack.c.h.bf16 %v672_v20  ;;  %v5950_v20 = vld [vmem:[%s7717_s3 + $0x248] sm:$0xff]  }
  0x49   : > { %2135 = vrot.lane.b32.xlu1 %v4596_v58, %s6146_s17  ;;  %2133 = vrot.lane.b32.xlu0 %v4595_v59, %s6146_s17  ;;  %v2413_v34 = vor.u32 %v2412_v28, %v2408_v27  ;;  %v2401_v35 = vor.u32 %v2400_v30, %v2396_v29  ;;  %v699_v29 = vld [vmem:[%s7720_s6] sm:$0x3]  ;;  %v5899_v30 = vld [vmem:[%s7717_s3 + $0x138] sm:$0xff]  }
  0x4a   : > { %5347 = vmatpush3.bf16.msra.mxu1 %v5896_v33  ;;  %v2364_v22 = vld [vmem:[#allocation2 + $0x28] sm:$0x11] }
  0x4b   : > { %5348 = vmatprep.subr.bf16.mxu1 %v6143_v3  ;;  %v4674_v25 = vcombine.high %v2364_v22, %v2364_v22  ;;  %v4673_v26 = vcombine.low %v2364_v22, %v2364_v22  ;;  %v5932_v22 = vld [vmem:[%s7717_s3 + $0x1d0] sm:$0xff]  }
  0x4d   : > { %v2415_v32 = vshll.u32 %v4674_v25, 16  ;;  %v2403_v33 = vshll.u32 %v4673_v26, 16  ;;  %v2773_v60 = vrot.slane %v4674_v25, 1  ;;  %v2770_v63 = vrot.slane %v4673_v26, 1 }
  0x4e   : > { %5349 = vmatpush3.bf16.msra.mxu1 %v5898_v49 }
  0x4f   : > { %5374 = vmatprep.subr.bf16.mxu1 %v6143_v3  ;;  %v2417_v36 = vrot.slane %v2415_v32, 1  ;;  %v2405_v37 = vrot.slane %v2403_v33, 1  ;;  %v2771_v1 = vsel %vm1540_vm10, %v2769_v61, %v2770_v63  ;;  %v6746_v32 = vrot.slane %v699_v29, %v6256_v8  ;;  %v5911_v61 = vld [vmem:[%s7717_s3 + $0x118] sm:$0xff]  }
  0x51   : > { %5351 = vmatmul.mubr.bf16.vlgmr.msra.gmra.mxu1 %v1158_v52  ;;  %v2418_v38 = vsel %vm1146_vm9, %v2413_v34, %v2417_v36  ;;  %v2406_v39 = vsel %vm1146_vm9, %v2401_v35, %v2405_v37  ;;  %v5920_v52 = vld [vmem:[%s7717_s3 + $0x1f8] sm:$0xff]  }
  0x52   : > { %5375 = vmatpush3.bf16.msra.mxu1 %v5902_v53  ;;  %5390 = vmatprep.mubr.msk.bf16.mxu1 %vm6144_vm3, %v6143_v3  ;;  %v4749_v53 = vcombine.high %v2746_v51, %v6572_v57  ;;  %v5922_v57 = vld [vmem:[%s7717_s3 + $0x1f0] sm:$0xff]  }
  0x53   : > { %5376 = vmatprep.subr.bf16.mxu1 %v6143_v3  ;;  %2421 = vrot.lane.b32.xlu1 %v2418_v38, %s6145_s16 }
  0x54   : > { %2419 = vrot.lane.b32.xlu0 %v2406_v39, %s6145_s16  ;;  %v2772_v59 = vrot.slane %v4749_v53, 1 }
  0x56   : > { %5377 = vmatpush3.bf16.msra.mxu1 %v5904_v56  ;;  %v2774_v0 = vsel %vm1540_vm10, %v2772_v59, %v2773_v60  ;;  %v5909_v59 = vld [vmem:[%s7717_s3 + $0x120] sm:$0xff]   ;;  %v5940_v60 = vld [vmem:[%s7717_s3 + $0x270] sm:$0xff]  }
  0x57   : > { %5378 = vmatprep.subr.bf16.mxu1 %v6143_v3  ;;  %2535 = vrot.lane.b32.xlu1 %v2418_v38, %s6146_s17 }
  0x58   : > { %2533 = vrot.lane.b32.xlu0 %v2406_v39, %s6146_s17  ;;  %v6762_v39 = vstv %s4338_s21 }
  0x59   : > { %vm730_vm0 = vcmp.eq.s32.totalorder %v6762_v39, 1 }
  0x5a   : > { %5379 = vmatpush3.bf16.msra.mxu1 %v5908_v62  ;;  %v5889_v62 = vld [vmem:[%s7717_s3 + $0xa0] sm:$0xff]   ;;  %vm731_vm4 = vmand %vm6271_vm2, %vm730_vm0 }
  0x5b   : > { %5380 = vmatprep.subr.bf16.mxu1 %v6143_v3  ;;  %2777 = vrot.lane.b32.xlu1 %v2774_v0, %s6145_s16  ;;  %vm732_vm12 = vmand %vm6283_vm5, %vm730_vm0  ;;  %vm7754_vm5 = vcmp.lt.s32.totalorder %v6243_v6, 136  ;;  %v5938_v6 = vld [vmem:[%s7717_s3 + $0x278] sm:$0xff]  }
  0x5c   : > { %2775 = vrot.lane.b32.xlu0 %v2771_v1, %s6145_s16  ;;  %vm733_vm2 = vmand %vm513_vm1, %vm730_vm0 }
  0x5d   : > { %vm734_vm13 = vmand %vm7754_vm5, %vm730_vm0 }
  0x5e   : > { %5381 = vmatpush3.bf16.msra.mxu1 %v5910_v9  ;;  %v5924_v9 = vld [vmem:[%s7717_s3 + $0x1e8] sm:$0xff]   ;;  %vm735_vm1 = vmand %vm6295_vm7, %vm730_vm0 }
  0x5f   : > { %5382 = vmatprep.subr.bf16.mxu1 %v6143_v3  ;;  %2891 = vrot.lane.b32.xlu1 %v2774_v0, %s6146_s17 }
  0x60   : > { %2889 = vrot.lane.b32.xlu0 %v2771_v1, %s6146_s17  ;;  %v5913_v1 = vld [vmem:[%s7717_s3 + $0x110] sm:$0xff]  }
  0x62   : > { %5383 = vmatpush3.bf16.msra.mxu1 %v5912_v17  ;;  %v5930_v17 = vld [vmem:[%s7717_s3 + $0x1d8] sm:$0xff]  }
  0x63   : > { %5384 = vmatprep.subr.bf16.mxu1 %v6143_v3 }
  0x66   : > { %5385 = vmatpush3.bf16.msra.mxu1 %v5914_v16  ;;  %v673_v16 = vld [vmem:[%s6708_s26 + $0x8] sm:$0xff] }
  0x67   : > { %5386 = vmatprep.subr.bf16.mxu1 %v6143_v3  ;;  %v677_v25 = vunpack.c.l.bf16 %v673_v16  ;;  %v678_v26 = vunpack.c.h.bf16 %v673_v16  ;;  %v5921_v16 = vld [vmem:[%s7717_s3 + $0x1b0] sm:$0xff]  }
  0x6a   : > { %5387 = vmatpush3.bf16.msra.mxu1 %v5916_v21  ;;  %v681_v21 = vld [vmem:[%s7719_s5] sm:$0x3] }
  0x6b   : > { %5388 = vmatprep.subr.bf16.mxu1 %v6143_v3  ;;  %v6723_v27 = vrot.slane %v681_v21, %v6240_v5  ;;  %v6726_v28 = vrot.slane %v681_v21, %v6256_v8  ;;  %v5954_v21 = vld [vmem:[#allocation2 + $0x18] ss:$8 sps:$4 sm:$0xff]  }
  0x6d   : > { %v693_v33 = vmul.f32 %v6723_v27, %v675_v23  ;;  %v694_v34 = vmul.f32 %v6726_v28, %v676_v24  ;;  %v695_v35 = vmul.f32 %v6723_v27, %v677_v25  ;;  %v696_v36 = vmul.f32 %v6726_v28, %v678_v26  ;;  %v5925_v23 = vld [vmem:[%s7717_s3 + $0x1a0] sm:$0xff]   ;;  %v5957_v24 = vld [vmem:[%s7717_s3 + $0x2f0] sm:$0xff]   ;;  %v5929_v25 = vld [vmem:[%s7717_s3 + $0x198] sm:$0xff]  }
  0x6e   : > { %5389 = vmatpush3.bf16.msra.mxu1 %v5918_v31  ;;  %v6743_v31 = vrot.slane %v699_v29, %v6240_v5  ;;  %v5934_v5 = vld [vmem:[%s7717_s3 + $0x1c8] sm:$0xff]   ;;  %v674_v26 = vld [vmem:[%s6708_s26 + $0x10] sm:$0x11]  ;;  %s434_s26 = sadd.s32 %s4326_s12, %s4325_s25 }
  0x6f   : > { %5414 = vmatprep.subr.bf16.mxu1 %v6143_v3  ;;  %v712_v37 = vadd.f32 %v6746_v32, %v694_v34  ;;  %v5959_v29 = vld [vmem:[%s7717_s3 + $0x2e8] sm:$0xff]   ;;  %v5931_v34 = vld [vmem:[%s7717_s3 + $0x190] sm:$0xff]  }
  0x70   : > { %v711_v8 = vadd.f32 %v6743_v31, %v693_v33  ;;  %v713_v38 = vadd.f32 %v6743_v31, %v695_v35  ;;  %v680_v33 = vunpack.c.h.bf16 %v674_v26 }
  0x9e   : > { %v813_v40 = vpop.permute.xlu0 %812  ;;  %v6628_v41 = vpop.permute.xlu1 %1020 }
  0xa2   : > { %v815_v43 = vpop.permute.xlu0 %814  ;;  %v6633_v44 = vpop.permute.xlu1 %1022 }
  0xa3   : > { %v817_v45 = vsel %vm816_vm11, %v813_v40, %v815_v43  ;;  %v1025_v40 = vsel %vm1024_vm15, %v6628_v41, %v6633_v44  ;;  %v717_v43 = vmax.f32 %v711_v8, 0.0 }
  0xa4   : > { %5291 = vmatmul.mubr.bf16.vlgmr.msra.gmra.mxu0 %v817_v45  ;;  %v718_v45 = vmax.f32 %v712_v37, 0.0  ;;  %v698_v37 = vmul.f32 %v6726_v28, %v680_v33 }
  0xa5   : > { %5315 = vmatpush3.bf16.msra.mxu0 %v5883_v42  ;;  %5330 = vmatprep.mubr.msk.bf16.mxu0 %vm6144_vm3, %v6143_v3  ;;  %v714_v42 = vadd.f32 %v6746_v32, %v696_v36  ;;  %v737_v44 = vsel %vm731_vm4, %v717_v43, 0.0  ;;  %v1519_v36 = vld [vmem:[#allocation2] sm:$0xe]  ;;  %v5933_v43 = vld [vmem:[%s7717_s3 + $0x188] sm:$0xff]  }
  0xa6   : > { %5316 = vmatprep.subr.bf16.mxu0 %v6143_v3  ;;  %v6642_v48 = vpop.permute.xlu1 %1310  ;;  %v6644_v49 = vpop.permute.xlu0 %1308  ;;  %v738_v51 = vsel %vm732_vm12, %v718_v45, 0.0  ;;  %v6101_v45 = vld [vmem:[#allocation2 + $0x8] sm:$0xf] }
  0xa7   : > { %v720_v41 = vmax.f32 %v714_v42, 0.0  ;;  %v5021_v54 = vpack.c.bf16 %v738_v51, %v737_v44  ;;  %v716_v42 = vadd.f32 %v6746_v32, %v698_v37  ;;  %v6102_v51 = vld [vmem:[#allocation2 + $0x10] ss:$0 sps:$4 sm:$0x11]   ;;  %v5981_v37 = vld [vmem:[%s7717_s3 + $0x358] sm:$0xff]  }
  0xa9   : > { %5317 = vmatpush3.bf16.msra.mxu0 %v5885_v46  ;;  %v719_v46 = vmax.f32 %v713_v38, 0.0  ;;  %764 = vst.msk [vmem:[#allocation2 + $0x30] sm:$0xff] %vm6386_vm6, %v5021_v54 }
  0xaa   : > { %5318 = vmatprep.subr.bf16.mxu0 %v6143_v3  ;;  %v1425_v55 = vpop.permute.xlu1 %1424  ;;  %v1423_v56 = vpop.permute.xlu0 %1422 }
  0xab   : > { %v1426_v58 = vsel %vm1024_vm15, %v1423_v56, %v1425_v55  ;;  %v739_v14 = vsel %vm733_vm2, %v719_v46, 0.0  ;;  %v740_v55 = vsel %vm734_vm13, %v720_v41, 0.0  ;;  %v4495_v46 = vcombine.low %v1519_v36, %v6101_v45  ;;  %v5953_v45 = vld [vmem:[%s7717_s3 + $0x2b8] sm:$0xff]  }
  0xac   : > { %5391 = vmatmul.mubr.bf16.vlgmr.msra.gmra.mxu1 %v1426_v58  ;;  %v5022_v56 = vpack.c.bf16 %v740_v55, %v739_v14  ;;  %v5937_v55 = vld [vmem:[%s7717_s3 + $0x238] sm:$0xff]  }
  0xad   : > { %5319 = vmatpush3.bf16.msra.mxu0 %v5887_v50  ;;  %5415 = vmatpush3.bf16.msra.mxu1 %v5920_v52  ;;  %v5903_v50 = vld [vmem:[%s7717_s3 + $0x130] sm:$0xff]   ;;  %v1541_v44 = vrot.slane %v4495_v46, 1  ;;  %v5985_v46 = vld [vmem:[%s7717_s3 + $0x348] sm:$0xff]  }
  0xae   : > { %5320 = vmatprep.subr.bf16.mxu0 %v6143_v3  ;;  %5416 = vmatprep.subr.bf16.mxu1 %v6143_v3  ;;  %v1668_v52 = vpop.permute.xlu1 %1667  ;;  %v1666_v53 = vpop.permute.xlu0 %1665  ;;  %765 = vst.msk [vmem:[#allocation2 + $0x38] sm:$0xff] %vm6386_vm6, %v5022_v56  ;;  %vm736_vm6 = vmand %vm6344_vm14, %vm730_vm0 }
  0xaf   : > { %5430 = vmatprep.mubr.msk.bf16.mxu1 %vm6144_vm3, %v6143_v3  ;;  %v1669_v58 = vsel %vm816_vm11, %v1666_v53, %v1668_v52  ;;  %v1542_v52 = vrot.slane %v6102_v51, 1 }
  0xb0   : > { %v3102_v4 = vld [vmem:[#allocation2 + $0x30] sm:$0xff] }
  0xb1   : > { %5321 = vmatpush3.bf16.msra.mxu0 %v5889_v62  ;;  %5417 = vmatpush3.bf16.msra.mxu1 %v5922_v57  ;;  %v5942_v62 = vld [vmem:[%s7717_s3 + $0x268] sm:$0xff]   ;;  %v1543_v54 = vsel %vm1540_vm10, %v1541_v44, %v1542_v52  ;;  %v5991_v44 = vld [vmem:[%s7717_s3 + $0x3f8] sm:$0xff]   ;;  %v3856_v51 = vld [vmem:[#allocation2 + $0x30] sm:$0xee] }
  0xb2   : > { %5322 = vmatprep.subr.bf16.mxu0 %v6143_v3  ;;  %5418 = vmatprep.subr.bf16.mxu1 %v6143_v3  ;;  %v6949_v53 = vpop.permute.xlu1 %1781  ;;  %v6951_v14 = vpop.permute.xlu0 %1779  ;;  %v5960_v52 = vld [vmem:[%s7717_s3 + $0x2a0] sm:$0xff]  }
  0xb5   : > { %5323 = vmatpush3.bf16.msra.mxu0 %v5891_v7  ;;  %5419 = vmatpush3.bf16.msra.mxu1 %v5924_v9  ;;  %v6825_v63 = vld [vmem:[#allocation2 + $0x38] sm:$0xff]  ;;  %v5944_v7 = vld [vmem:[%s7717_s3 + $0x260] sm:$0xff]   ;;  %v5915_v9 = vld [vmem:[%s7717_s3 + $0x108] sm:$0xff]  }
  0xb6   : > { %5324 = vmatprep.subr.bf16.mxu0 %v6143_v3  ;;  %5420 = vmatprep.subr.bf16.mxu1 %v6143_v3  ;;  %v6829_v57 = vcombine.high %v3102_v4, %v6825_v63  ;;  %v6832_v0 = vcombine.low %v3102_v4, %v6825_v63 }
  0xb7   : > { %v6966_v56 = vpop.permute.xlu0 %2019 }
  0xb8   : > { %3131 = vrot.lane.b32.xlu1 %v6829_v57, %s6145_s16  ;;  %3129 = vrot.lane.b32.xlu0 %v6832_v0, %s6145_s16 }
  0xb9   : > { %5325 = vmatpush3.bf16.msra.mxu0 %v5893_v10  ;;  %5421 = vmatpush3.bf16.msra.mxu1 %v5928_v11  ;;  %v5946_v10 = vld [vmem:[%s7717_s3 + $0x258] sm:$0xff]   ;;  %v5917_v11 = vld [vmem:[%s7717_s3 + $0x100] sm:$0xff]  }
  0xba   : > { %5326 = vmatprep.subr.bf16.mxu0 %v6143_v3  ;;  %5422 = vmatprep.subr.bf16.mxu1 %v6143_v3 }
  0xbc   : > { %3245 = vrot.lane.b32.xlu1 %v6829_v57, %s6146_s17  ;;  %3243 = vrot.lane.b32.xlu0 %v6832_v0, %s6146_s17 }
  0xbd   : > { %5327 = vmatpush3.bf16.msra.mxu0 %v5895_v15  ;;  %5423 = vmatpush3.bf16.msra.mxu1 %v5930_v17  ;;  %v5948_v15 = vld [vmem:[%s7717_s3 + $0x250] sm:$0xff]   ;;  %v5919_v17 = vld [vmem:[%s7717_s3 + $0x1b8] sm:$0xff]  }
  0xbe   : > { %5328 = vmatprep.subr.bf16.mxu0 %v6143_v3  ;;  %5424 = vmatprep.subr.bf16.mxu1 %v6143_v3 }
  0xc1   : > { %5329 = vmatpush3.bf16.msra.mxu0 %v5897_v19  ;;  %5425 = vmatpush3.bf16.msra.mxu1 %v5932_v22  ;;  %v1312_v19 = vsel %vm816_vm11, %v6644_v49, %v6642_v48  ;;  %v5952_v48 = vld [vmem:[%s7717_s3 + $0x240] sm:$0xff]   ;;  %v5923_v49 = vld [vmem:[%s7717_s3 + $0x1a8] sm:$0xff]   ;;  %v5955_v22 = vld [vmem:[%s7717_s3 + $0x2f8] sm:$0xff]  }
  0xc2   : > { %5354 = vmatprep.subr.bf16.mxu0 %v6143_v3  ;;  %5426 = vmatprep.subr.bf16.mxu1 %v6143_v3 }
  0xc4   : > { %5331 = vmatmul.mubr.bf16.vlgmr.msra.gmra.mxu0 %v1025_v40 }
  0xc5   : > { %5355 = vmatpush3.bf16.msra.mxu0 %v5899_v30  ;;  %5370 = vmatprep.mubr.msk.bf16.mxu0 %vm6144_vm3, %v6143_v3  ;;  %v679_v30 = vunpack.c.l.bf16 %v674_v26  ;;  %v5945_v26 = vld [vmem:[%s7717_s3 + $0x218] sm:$0xff]  }
  0xc6   : > { %5356 = vmatprep.subr.bf16.mxu0 %v6143_v3  ;;  %5427 = vmatpush3.bf16.msra.mxu1 %v5934_v5  ;;  %v5961_v5 = vld [vmem:[%s7717_s3 + $0x2e0] sm:$0xff]  }
  0xc7   : > { %5428 = vmatprep.subr.bf16.mxu1 %v6143_v3  ;;  %v697_v8 = vmul.f32 %v6723_v27, %v679_v30  ;;  %v5963_v27 = vld [vmem:[%s7717_s3 + $0x2d8] sm:$0xff]   ;;  %v5947_v30 = vld [vmem:[%s7717_s3 + $0x210] sm:$0xff]  }
  0xc9   : > { %5357 = vmatpush3.bf16.msra.mxu0 %v5903_v50  ;;  %v715_v40 = vadd.f32 %v6743_v31, %v697_v8  ;;  %v722_v31 = vmax.f32 %v716_v42, 0.0  ;;  %v5983_v42 = vld [vmem:[%s7717_s3 + $0x350] sm:$0xff]  }
  0xca   : > { %5358 = vmatprep.subr.bf16.mxu0 %v6143_v3  ;;  %5429 = vmatpush3.bf16.msra.mxu1 %v5936_v12  ;;  %v5935_v12 = vld [vmem:[%s7717_s3 + $0x180] sm:$0xff]  }
  0xcb   : > { %5454 = vmatprep.subr.bf16.mxu1 %v6143_v3  ;;  %v721_v28 = vmax.f32 %v715_v40, 0.0  ;;  %v742_v18 = vsel %vm736_vm6, %v722_v31, 0.0  ;;  %v5951_v40 = vld [vmem:[%s7717_s3 + $0x200] sm:$0xff]  }
  0xcd   : > { %5359 = vmatpush3.bf16.msra.mxu0 %v5905_v2  ;;  %5431 = vmatmul.mubr.bf16.vlgmr.msra.gmra.mxu1 %v1669_v58  ;;  %v741_v41 = vsel %vm735_vm1, %v721_v28, 0.0  ;;  %v6964_v2 = vpop.permute.xlu1 %2021  ;;  %v5967_v58 = vld [vmem:[%s7717_s3 + $0x2c8] sm:$0xff]   ;;  %v5987_v28 = vld [vmem:[%s7717_s3 + $0x340] sm:$0xff]  }
  0xce   : > { %5360 = vmatprep.subr.bf16.mxu0 %v6143_v3  ;;  %5455 = vmatpush3.bf16.msra.mxu1 %v5938_v6  ;;  %v5023_v39 = vpack.c.bf16 %v742_v18, %v741_v41  ;;  %v5969_v6 = vld [vmem:[%s7717_s3 + $0x2c0] sm:$0xff]   ;;  %v5958_v41 = vld [vmem:[%s7717_s3 + $0x2a8] sm:$0xff]   ;;  %v5993_v18 = vld [vmem:[%s7717_s3 + $0x3f0] sm:$0xff]  }
  0xcf   : > { %5456 = vmatprep.subr.bf16.mxu1 %v6143_v3  ;;  %5470 = vmatprep.mubr.msk.bf16.mxu1 %vm6144_vm3, %v6143_v3 }
  0xd0   : > { %766 = vst.msk [vmem:[#allocation2 + $0x40] sm:$0x11] %vm6397_vm8, %v5023_v39 }
  0xd1   : > { %5361 = vmatpush3.bf16.msra.mxu0 %v5909_v59  ;;  %v2136_v59 = vpop.permute.xlu1 %2135 }
  0xd2   : > { %5362 = vmatprep.subr.bf16.mxu0 %v6143_v3  ;;  %5457 = vmatpush3.bf16.msra.mxu1 %v5940_v60  ;;  %v2134_v60 = vpop.permute.xlu0 %2133 }
  0xd3   : > { %5458 = vmatprep.subr.bf16.mxu1 %v6143_v3 }
  0xd5   : > { %5363 = vmatpush3.bf16.msra.mxu0 %v5911_v61  ;;  %v3520_v61 = vshll.u32 %v6829_v57, 16  ;;  %v2422_v31 = vpop.permute.xlu1 %2421 }
  0xd6   : > { %5364 = vmatprep.subr.bf16.mxu0 %v6143_v3  ;;  %5459 = vmatpush3.bf16.msra.mxu1 %v5942_v62  ;;  %v3508_v62 = vshll.u32 %v6832_v0, 16 }
  0xd7   : > { %5460 = vmatprep.subr.bf16.mxu1 %v6143_v3  ;;  %v3474_v4 = vld [vmem:[#allocation2 + $0x40] sm:$0x11] }
  0xd9   : > { %5365 = vmatpush3.bf16.msra.mxu0 %v5913_v1  ;;  %v6985_v1 = vcombine.high %v3474_v4, %v3474_v4 }
  0xda   : > { %5366 = vmatprep.subr.bf16.mxu0 %v6143_v3  ;;  %5461 = vmatpush3.bf16.msra.mxu1 %v5944_v7  ;;  %v6987_v7 = vcombine.low %v3474_v4, %v3474_v4  ;;  %v5966_v4 = vld [vmem:[%s7717_s3 + $0x288] sm:$0xff]  }
  0xdb   : > { %5462 = vmatprep.subr.bf16.mxu1 %v6143_v3  ;;  %v3883_v39 = vrot.slane %v6985_v1, 1 }
  0xdd   : > { %5367 = vmatpush3.bf16.msra.mxu0 %v5915_v9  ;;  %v5941_v9 = vld [vmem:[%s7717_s3 + $0x228] sm:$0xff]  }
  0xde   : > { %5368 = vmatprep.subr.bf16.mxu0 %v6143_v3  ;;  %5463 = vmatpush3.bf16.msra.mxu1 %v5946_v10  ;;  %v3518_v10 = vshrl.u32 %v6829_v57, 16 }
  0xdf   : > { %5464 = vmatprep.subr.bf16.mxu1 %v6143_v3 }
  0xe1   : > { %5369 = vmatpush3.bf16.msra.mxu0 %v5917_v11  ;;  %v3522_v11 = vrot.slane %v3520_v61, 1  ;;  %v5999_v61 = vld [vmem:[%s7717_s3 + $0x3d8] sm:$0xff]  }
  0xe2   : > { %5394 = vmatprep.subr.bf16.mxu0 %v6143_v3  ;;  %5465 = vmatpush3.bf16.msra.mxu1 %v5948_v15  ;;  %v3506_v15 = vshrl.u32 %v6832_v0, 16 }
  0xe3   : > { %5466 = vmatprep.subr.bf16.mxu1 %v6143_v3  ;;  %v3523_v57 = vor.u32 %v3522_v11, %v3518_v10  ;;  %v5970_v10 = vld [vmem:[%s7717_s3 + $0x338] sm:$0xff]   ;;  %v2231_v11 = vld [vmem:[#allocation2 + $0x20] sm:$0xf] }
  0xe4   : > { %5371 = vmatmul.mubr.bf16.vlgmr.msra.gmra.mxu0 %v1312_v19  ;;  %v2137_v19 = vsel %vm1024_vm15, %v2134_v60, %v2136_v59  ;;  %v5964_v59 = vld [vmem:[%s7717_s3 + $0x290] sm:$0xff]   ;;  %v5997_v60 = vld [vmem:[%s7717_s3 + $0x3e0] sm:$0xff]  }
  0xe5   : > { %5395 = vmatpush3.bf16.msra.mxu0 %v5919_v17  ;;  %5410 = vmatprep.mubr.msk.bf16.mxu0 %vm6144_vm3, %v6143_v3  ;;  %v3510_v17 = vrot.slane %v3508_v62, 1  ;;  %v5968_v62 = vld [vmem:[%s7717_s3 + $0x280] sm:$0xff]  }
  0xe6   : > { %5396 = vmatprep.subr.bf16.mxu0 %v6143_v3  ;;  %5467 = vmatpush3.bf16.msra.mxu1 %v5950_v20  ;;  %v5971_v20 = vld [vmem:[%s7717_s3 + $0x378] sm:$0xff]  }
  0xe7   : > { %5468 = vmatprep.subr.bf16.mxu1 %v6143_v3 }
  0xe9   : > { %5397 = vmatpush3.bf16.msra.mxu0 %v5921_v16  ;;  %v3525_v16 = vshll.u32 %v6985_v1, 16  ;;  %v6001_v1 = vld [vmem:[%s7717_s3 + $0x3d0] sm:$0xff]  }
  0xea   : > { %5398 = vmatprep.subr.bf16.mxu0 %v6143_v3  ;;  %5469 = vmatpush3.bf16.msra.mxu1 %v5952_v48  ;;  %v3513_v48 = vshll.u32 %v6987_v7, 16 }
  0xeb   : > { %5494 = vmatprep.subr.bf16.mxu1 %v6143_v3 }
  0xec   : > { %v3515_v0 = vrot.slane %v3513_v48, 1  ;;  %v5974_v48 = vld [vmem:[%s7717_s3 + $0x328] sm:$0xff]  }
  0xed   : > { %5399 = vmatpush3.bf16.msra.mxu0 %v5923_v49  ;;  %5471 = vmatmul.mubr.bf16.vlgmr.msra.gmra.mxu1 %v5954_v21  ;;  %v3511_v49 = vor.u32 %v3510_v17, %v3506_v15  ;;  %v3527_v21 = vrot.slane %v3525_v16, 1  ;;  %v6003_v15 = vld [vmem:[%s7717_s3 + $0x3c8] sm:$0xff]  }
  0xee   : > { %5400 = vmatprep.subr.bf16.mxu0 %v6143_v3  ;;  %5495 = vmatpush3.bf16.msra.mxu1 %v5955_v22  ;;  %v5943_v22 = vld [vmem:[%s7717_s3 + $0x220] sm:$0xff]  }
  0xef   : > { %5496 = vmatprep.subr.bf16.mxu1 %v6143_v3  ;;  %5510 = vmatprep.mubr.msk.bf16.mxu1 %vm6144_vm3, %v6143_v3 }
  0xf1   : > { %5401 = vmatpush3.bf16.msra.mxu0 %v5925_v23  ;;  %v6917_v35 = vpop.f32.mrf.mxu1  ;;  %v5973_v23 = vld [vmem:[%s7717_s3 + $0x370] sm:$0xff]  }
  0xf2   : > { %5402 = vmatprep.subr.bf16.mxu0 %v6143_v3  ;;  %5497 = vmatpush3.bf16.msra.mxu1 %v5957_v24  ;;  %v3528_v24 = vsel %vm1146_vm9, %v3523_v57, %v3527_v21  ;;  %v5976_v21 = vld [vmem:[%s7717_s3 + $0x320] sm:$0xff]  }
  0xf3   : > { %5498 = vmatprep.subr.bf16.mxu1 %v6143_v3  ;;  %v5312_v38 = vpop.f32.mrf.mxu1  ;;  %3531 = vrot.lane.b32.xlu1 %v3528_v24, %s6145_s16 }
  0xf5   : > { %5403 = vmatpush3.bf16.msra.mxu0 %v5929_v25  ;;  %v6931_v50 = vpop.f32.mrf.mxu1  ;;  %v3516_v25 = vsel %vm1146_vm9, %v3511_v49, %v3515_v0  ;;  %v6008_v49 = vld [vmem:[%s7717_s3 + $0x478] sm:$0xff]  }
  0xf6   : > { %5404 = vmatprep.subr.bf16.mxu0 %v6143_v3  ;;  %5499 = vmatpush3.bf16.msra.mxu1 %v5959_v29  ;;  %v5975_v29 = vld [vmem:[%s7717_s3 + $0x368] sm:$0xff]   ;;  %v2230_v0 = vld [vmem:[#allocation2 + $0x18] sm:$0xf] }
  0xf7   : > { %5500 = vmatprep.subr.bf16.mxu1 %v6143_v3  ;;  %v5313_v32 = vpop.f32.mrf.mxu1  ;;  %3529 = vrot.lane.b32.xlu0 %v3516_v25, %s6145_s16 }
  0xf8   : > { %3645 = vrot.lane.b32.xlu1 %v3528_v24, %s6146_s17  ;;  %v2420_v32 = vpop.permute.xlu0 %2419  ;;  %v4645_v24 = vcombine.low %v2230_v0, %v2231_v11 }
  0xf9   : > { %5405 = vmatpush3.bf16.msra.mxu0 %v5931_v34  ;;  %v5979_v34 = vld [vmem:[%s7717_s3 + $0x360] sm:$0xff]  }
  0xfa   : > { %5406 = vmatprep.subr.bf16.mxu0 %v6143_v3  ;;  %5501 = vmatpush3.bf16.msra.mxu1 %v5961_v5  ;;  %v5949_v5 = vld [vmem:[%s7717_s3 + $0x208] sm:$0xff]  }
  0xfb   : > { %5502 = vmatprep.subr.bf16.mxu1 %v6143_v3  ;;  %3643 = vrot.lane.b32.xlu0 %v3516_v25, %s6146_s17  ;;  %v6014_v25 = vld [vmem:[%s7717_s3 + $0x468] sm:$0xff]  }
  0xfd   : > { %5407 = vmatpush3.bf16.msra.mxu0 %v5933_v43  ;;  %v1783_v43 = vsel %vm1024_vm15, %v6951_v14, %v6949_v53  ;;  %v4977_v53 = vcombine.high %v3856_v51, %v6825_v63  ;;  %v4976_v14 = vcombine.low %v3856_v51, %v6825_v63  ;;  %v5962_v63 = vld [vmem:[%s7717_s3 + $0x298] sm:$0xff]   ;;  %v5992_v51 = vld [vmem:[%s7717_s3 + $0x3b0] sm:$0xff]  }
  0xfe   : > { %5408 = vmatprep.subr.bf16.mxu0 %v6143_v3  ;;  %5503 = vmatpush3.bf16.msra.mxu1 %v5963_v27  ;;  %v5956_v27 = vld [vmem:[%s7717_s3 + $0x2b0] sm:$0xff]  }
  0xff   : > { %5504 = vmatprep.subr.bf16.mxu1 %v6143_v3 }
 0x101   : > { %5409 = vmatpush3.bf16.msra.mxu0 %v5935_v12  ;;  %v2423_v12 = vsel %vm816_vm11, %v2420_v32, %v2422_v31  ;;  %v5990_v31 = vld [vmem:[%s7717_s3 + $0x3b8] sm:$0xff]  }
 0x102   : > { %5434 = vmatprep.subr.bf16.mxu0 %v6143_v3  ;;  %5505 = vmatpush3.bf16.msra.mxu1 %v5965_v47  ;;  %v3882_v47 = vrot.slane %v4977_v53, 1  ;;  %v6024_v53 = vld [vmem:[%s7717_s3 + $0x440] sm:$0xff]  }
 0x103   : > { %5506 = vmatprep.subr.bf16.mxu1 %v6143_v3 }
 0x104   : > { %5411 = vmatmul.mubr.bf16.vlgmr.msra.gmra.mxu0 %v1543_v54  ;;  %v3879_v54 = vrot.slane %v4976_v14, 1 }
 0x105   : > { %5435 = vmatpush3.bf16.msra.mxu0 %v5937_v55  ;;  %5450 = vmatprep.mubr.msk.bf16.mxu0 %vm6144_vm3, %v6143_v3  ;;  %v3880_v55 = vrot.slane %v6987_v7, 1  ;;  %v2630_v7 = vld [vmem:[#allocation2 + $0x18] sm:$0xe] }
 0x106   : > { %5436 = vmatprep.subr.bf16.mxu0 %v6143_v3  ;;  %5507 = vmatpush3.bf16.msra.mxu1 %v5967_v58  ;;  %v3884_v58 = vsel %vm1540_vm10, %v3882_v47, %v3883_v39  ;;  %v4723_v17 = vcombine.low %v2630_v7, %v2231_v11  ;;  %v5994_v39 = vld [vmem:[%s7717_s3 + $0x3a8] sm:$0xff]   ;;  %v6032_v7 = vld [vmem:[%s7717_s3 + $0x4e0] sm:$0xff]  }
 0x107   : > { %5508 = vmatprep.subr.bf16.mxu1 %v6143_v3  ;;  %3887 = vrot.lane.b32.xlu1 %v3884_v58, %s6145_s16  ;;  %v6004_v11 = vld [vmem:[%s7717_s3 + $0x380] sm:$0xff]  }
 0x109   : > { %5437 = vmatpush3.bf16.msra.mxu0 %v5939_v13  ;;  %v3881_v13 = vsel %vm1540_vm10, %v3879_v54, %v3880_v55 }
 0x10a   : > { %5438 = vmatprep.subr.bf16.mxu0 %v6143_v3  ;;  %5509 = vmatpush3.bf16.msra.mxu1 %v5969_v6  ;;  %v5995_v6 = vld [vmem:[%s7717_s3 + $0x3e8] sm:$0xff]  }
 0x10b   : > { %5534 = vmatprep.subr.bf16.mxu1 %v6143_v3  ;;  %3885 = vrot.lane.b32.xlu0 %v3881_v13, %s6145_s16  ;;  %s4327_s16 = sshll.u32 %s434_s26, 2 }
 0x10c   : > { %4001 = vrot.lane.b32.xlu1 %v3884_v58, %s6146_s17  ;;  %s436_s19 = scalar_lea.vmem %s7721_s7, %s4327_s16 }
 0x10d   : > { %5439 = vmatpush3.bf16.msra.mxu0 %v5941_v9  ;;  %5511 = vmatmul.mubr.bf16.vlgmr.msra.gmra.mxu1 %v2137_v19  ;;  %v2023_v9 = vsel %vm816_vm11, %v6966_v56, %v6964_v2  ;;  %v5989_v19 = vld [vmem:[#allocation2 + $0x28] ss:$0 sps:$4 sm:$0x11]   ;;  %v5972_v2 = vld [vmem:[%s7717_s3 + $0x330] sm:$0xff]   ;;  %v6005_v56 = vld [vmem:[%s7717_s3 + $0x3c0] sm:$0xff]  }
 0x10e   : > { %5440 = vmatprep.subr.bf16.mxu0 %v6143_v3  ;;  %5535 = vmatpush3.bf16.msra.mxu1 %v5971_v20  ;;  %v2651_v20 = vrot.slane %v4723_v17, 1  ;;  %v2652_v16 = vrot.slane %v5989_v19, 1 }
 0x10f   : > { %5536 = vmatprep.subr.bf16.mxu1 %v6143_v3  ;;  %5550 = vmatprep.mubr.msk.bf16.mxu1 %vm6144_vm3, %v6143_v3 }
 0x110   : > { %3999 = vrot.lane.b32.xlu0 %v3881_v13, %s6146_s17  ;;  %v2653_v57 = vsel %vm1540_vm10, %v2651_v20, %v2652_v16  ;;  %v5996_v13 = vld [vmem:[%s7717_s3 + $0x3a0] sm:$0xff]   ;;  %s4329_s17 = sshll.u32 %s442_s22, 1 }
 0x111   : > { %5441 = vmatpush3.bf16.msra.mxu0 %v5943_v22  ;;  %v7029_v33 = vpop.f32.mrf.mxu1  ;;  %v6010_v22 = vld [vmem:[%s7717_s3 + $0x470] sm:$0xff]   ;;  %s444_s21 = scalar_lea.vmem %s7722_s8, %s4329_s17 }
 0x112   : > { %5442 = vmatprep.subr.bf16.mxu0 %v6143_v3  ;;  %5537 = vmatpush3.bf16.msra.mxu1 %v5973_v23  ;;  %v5980_v23 = vld [vmem:[%s7717_s3 + $0x318] sm:$0xff]  }
 0x113   : > { %5538 = vmatprep.subr.bf16.mxu1 %v6143_v3  ;;  %v5352_v36 = vpop.f32.mrf.mxu1 }
 0x114   : > { %v2259_v36 = vshrl.u32 %v4645_v24, 16 }
 0x115   : > { %5443 = vmatpush3.bf16.msra.mxu0 %v5945_v26  ;;  %v7039_v8 = vpop.f32.mrf.mxu1  ;;  %v5982_v26 = vld [vmem:[%s7717_s3 + $0x310] sm:$0xff]  }
 0x116   : > { %5444 = vmatprep.subr.bf16.mxu0 %v6143_v3  ;;  %5539 = vmatpush3.bf16.msra.mxu1 %v5975_v29  ;;  %v2261_v29 = vshll.u32 %v4645_v24, 16  ;;  %v6011_v24 = vld [vmem:[%s7717_s3 + $0x428] sm:$0xff]  }
 0x117   : > { %5540 = vmatprep.subr.bf16.mxu1 %v6143_v3  ;;  %v5353_v38 = vpop.f32.mrf.mxu1 }
 0x118   : > { %v6018_v38 = vld [vmem:[%s7717_s3 + $0x458] sm:$0xff]  }
 0x119   : > { %5445 = vmatpush3.bf16.msra.mxu0 %v5947_v30  ;;  %v6016_v30 = vld [vmem:[%s7717_s3 + $0x460] sm:$0xff]  }
 0x11a   : > { %5446 = vmatprep.subr.bf16.mxu0 %v6143_v3  ;;  %5541 = vmatpush3.bf16.msra.mxu1 %v5979_v34  ;;  %v5984_v34 = vld [vmem:[%s7717_s3 + $0x308] sm:$0xff]  }
 0x11b   : > { %5542 = vmatprep.subr.bf16.mxu1 %v6143_v3 }
 0x11d   : > { %5447 = vmatpush3.bf16.msra.mxu0 %v5949_v5  ;;  %v2263_v5 = vrot.slane %v2261_v29, 1  ;;  %v6015_v29 = vld [vmem:[%s7717_s3 + $0x420] sm:$0xff]  }
 0x11e   : > { %5448 = vmatprep.subr.bf16.mxu0 %v6143_v3  ;;  %5543 = vmatpush3.bf16.msra.mxu1 %v5981_v37  ;;  %v2266_v37 = vshll.u32 %v5989_v19, 16  ;;  %v6006_v19 = vld [vmem:[%s7717_s3 + $0x438] sm:$0xff]  }
 0x11f   : > { %5544 = vmatprep.subr.bf16.mxu1 %v6143_v3 }
 0x121   : > { %5449 = vmatpush3.bf16.msra.mxu0 %v5951_v40  ;;  %v5986_v40 = vld [vmem:[%s7717_s3 + $0x300] sm:$0xff]  }
 0x122   : > { %5474 = vmatprep.subr.bf16.mxu0 %v6143_v3  ;;  %5545 = vmatpush3.bf16.msra.mxu1 %v5983_v42  ;;  %v2264_v42 = vor.u32 %v2263_v5, %v2259_v36  ;;  %v6017_v5 = vld [vmem:[%s7717_s3 + $0x418] sm:$0xff]  }
 0x123   : > { %5546 = vmatprep.subr.bf16.mxu1 %v6143_v3 }
 0x124   : > { %5451 = vmatmul.mubr.bf16.vlgmr.msra.gmra.mxu0 %v1783_v43  ;;  %v2268_v43 = vrot.slane %v2266_v37, 1 }
 0x125   : > { %5475 = vmatpush3.bf16.msra.mxu0 %v5953_v45  ;;  %5490 = vmatprep.mubr.msk.bf16.mxu0 %vm6144_vm3, %v6143_v3  ;;  %v7203_v45 = vpop.permute.xlu1 %2535 }
 0x126   : > { %5476 = vmatprep.subr.bf16.mxu0 %v6143_v3  ;;  %5547 = vmatpush3.bf16.msra.mxu1 %v5985_v46  ;;  %v7205_v46 = vpop.permute.xlu0 %2533 }
 0x127   : > { %5548 = vmatprep.subr.bf16.mxu1 %v6143_v3  ;;  %v2537_v17 = vsel %vm1024_vm15, %v7205_v46, %v7203_v45  ;;  %v3340_v45 = vld [vmem:[#allocation2 + $0x30] sm:$0xf]  ;;  %v7359_v46 = vld [vmem:[#allocation2 + $0x38] sm:$0xf] }
 0x129   : > { %5477 = vmatpush3.bf16.msra.mxu0 %v5956_v27  ;;  %v6020_v27 = vld [vmem:[%s7717_s3 + $0x450] sm:$0xff]   ;;  %v7216_v32 = vpop.permute.xlu1 %2777 }
 0x12a   : > { %5478 = vmatprep.subr.bf16.mxu0 %v6143_v3  ;;  %5549 = vmatpush3.bf16.msra.mxu1 %v5987_v28  ;;  %v2269_v28 = vsel %vm1146_vm9, %v2264_v42, %v2268_v43  ;;  %v6019_v42 = vld [vmem:[%s7717_s3 + $0x410] sm:$0xff]   ;;  %v6049_v43 = vld [vmem:[%s7717_s3 + $0x560] sm:$0xff]  }
 0x12b   : > { %5574 = vmatprep.subr.bf16.mxu1 %v6143_v3 }
 0x12d   : > { %5479 = vmatpush3.bf16.msra.mxu0 %v5958_v41  ;;  %5551 = vmatmul.mubr.bf16.vlgmr.msra.gmra.mxu1 %v2423_v12  ;;  %v7218_v41 = vpop.permute.xlu0 %2775  ;;  %v6022_v12 = vld [vmem:[%s7717_s3 + $0x448] sm:$0xff]   ;;  %v2892_v14 = vpop.permute.xlu1 %2891 }
 0x12e   : > { %5480 = vmatprep.subr.bf16.mxu0 %v6143_v3  ;;  %5575 = vmatpush3.bf16.msra.mxu1 %v5991_v44 }
 0x12f   : > { %5576 = vmatprep.subr.bf16.mxu1 %v6143_v3  ;;  %5590 = vmatprep.mubr.msk.bf16.mxu1 %vm6144_vm3, %v6143_v3 }
 0x131   : > { %5481 = vmatpush3.bf16.msra.mxu0 %v5960_v52 }
 0x132   : > { %5482 = vmatprep.subr.bf16.mxu0 %v6143_v3  ;;  %5577 = vmatpush3.bf16.msra.mxu1 %v5993_v18  ;;  %v2890_v18 = vpop.permute.xlu0 %2889 }
 0x133   : > { %5578 = vmatprep.subr.bf16.mxu1 %v6143_v3  ;;  %v2893_v55 = vsel %vm1024_vm15, %v2890_v18, %v2892_v14  ;;  %v6025_v14 = vld [vmem:[%s7717_s3 + $0x4b8] sm:$0xff]   ;;  %v6055_v18 = vld [vmem:[%s7717_s3 + $0x548] sm:$0xff]  }
 0x135   : > { %5483 = vmatpush3.bf16.msra.mxu0 %v5962_v63  ;;  %v6026_v63 = vld [vmem:[%s7717_s3 + $0x4f8] sm:$0xff]  }
 0x136   : > { %5484 = vmatprep.subr.bf16.mxu0 %v6143_v3  ;;  %5579 = vmatpush3.bf16.msra.mxu1 %v5995_v6  ;;  %v3130_v0 = vpop.permute.xlu0 %3129 }
 0x137   : > { %5580 = vmatprep.subr.bf16.mxu1 %v6143_v3 }
 0x139   : > { %5485 = vmatpush3.bf16.msra.mxu0 %v5964_v59  ;;  %v6028_v59 = vld [vmem:[%s7717_s3 + $0x4f0] sm:$0xff]  }
 0x13a   : > { %5486 = vmatprep.subr.bf16.mxu0 %v6143_v3  ;;  %5581 = vmatpush3.bf16.msra.mxu1 %v5997_v60 }
 0x13b   : > { %5582 = vmatprep.subr.bf16.mxu1 %v6143_v3 }
 0x13d   : > { %5487 = vmatpush3.bf16.msra.mxu0 %v5966_v4  ;;  %v5998_v4 = vld [vmem:[%s7717_s3 + $0x398] sm:$0xff]  }
 0x13e   : > { %5488 = vmatprep.subr.bf16.mxu0 %v6143_v3  ;;  %5583 = vmatpush3.bf16.msra.mxu1 %v5999_v61  ;;  %v6030_v61 = vld [vmem:[%s7717_s3 + $0x4e8] sm:$0xff]  }
 0x13f   : > { %5584 = vmatprep.subr.bf16.mxu1 %v6143_v3 }
 0x141   : > { %5489 = vmatpush3.bf16.msra.mxu0 %v5968_v62 }
 0x142   : > { %5514 = vmatprep.subr.bf16.mxu0 %v6143_v3  ;;  %5585 = vmatpush3.bf16.msra.mxu1 %v6001_v1  ;;  %v6000_v1 = vld [vmem:[%s7717_s3 + $0x390] sm:$0xff]  }
 0x143   : > { %5586 = vmatprep.subr.bf16.mxu1 %v6143_v3 }
 0x144   : > { %5491 = vmatmul.mubr.bf16.vlgmr.msra.gmra.mxu0 %v2023_v9  ;;  %v6002_v9 = vld [vmem:[%s7717_s3 + $0x388] sm:$0xff]  }
 0x145   : > { %5515 = vmatpush3.bf16.msra.mxu0 %v5970_v10  ;;  %5530 = vmatprep.mubr.msk.bf16.mxu0 %vm6144_vm3, %v6143_v3  ;;  %v6034_v10 = vld [vmem:[%s7717_s3 + $0x4d8] sm:$0xff]  }
 0x146   : > { %5516 = vmatprep.subr.bf16.mxu0 %v6143_v3  ;;  %5587 = vmatpush3.bf16.msra.mxu1 %v6003_v15  ;;  %v6036_v15 = vld [vmem:[%s7717_s3 + $0x4d0] sm:$0xff]  }
 0x147   : > { %5588 = vmatprep.subr.bf16.mxu1 %v6143_v3 }
 0x149   : > { %5517 = vmatpush3.bf16.msra.mxu0 %v5972_v2  ;;  %v6038_v2 = vld [vmem:[%s7717_s3 + $0x4c8] sm:$0xff]  }
 0x14a   : > { %5518 = vmatprep.subr.bf16.mxu0 %v6143_v3  ;;  %5589 = vmatpush3.bf16.msra.mxu1 %v6005_v56 }
 0x14b   : > { %5614 = vmatprep.subr.bf16.mxu1 %v6143_v3 }
 0x14d   : > { %5519 = vmatpush3.bf16.msra.mxu0 %v5974_v48  ;;  %5591 = vmatmul.mubr.bf16.vlgmr.msra.gmra.mxu1 %v2653_v57  ;;  %v6009_v48 = vld [vmem:[%s7717_s3 + $0x430] sm:$0xff]  }
 0x14e   : > { %5520 = vmatprep.subr.bf16.mxu0 %v6143_v3  ;;  %5615 = vmatpush3.bf16.msra.mxu1 %v6008_v49 }
 0x14f   : > { %5616 = vmatprep.subr.bf16.mxu1 %v6143_v3  ;;  %5630 = vmatprep.mubr.msk.bf16.mxu1 %vm6144_vm3, %v6143_v3 }
 0x151   : > { %5521 = vmatpush3.bf16.msra.mxu0 %v5976_v21  ;;  %v3132_v21 = vpop.permute.xlu1 %3131 }
 0x152   : > { %5522 = vmatprep.subr.bf16.mxu0 %v6143_v3  ;;  %5617 = vmatpush3.bf16.msra.mxu1 %v6010_v22 }
 0x153   : > { %5618 = vmatprep.subr.bf16.mxu1 %v6143_v3 }
 0x155   : > { %5523 = vmatpush3.bf16.msra.mxu0 %v5980_v23 }
 0x156   : > { %5524 = vmatprep.subr.bf16.mxu0 %v6143_v3  ;;  %5619 = vmatpush3.bf16.msra.mxu1 %v6014_v25 }
 0x157   : > { %5620 = vmatprep.subr.bf16.mxu1 %v6143_v3 }
 0x159   : > { %5525 = vmatpush3.bf16.msra.mxu0 %v5982_v26  ;;  %v3133_v26 = vsel %vm816_vm11, %v3130_v0, %v3132_v21  ;;  %v7460_v21 = vpop.permute.xlu1 %3245  ;;  %v7462_v0 = vpop.permute.xlu0 %3243 }
 0x15a   : > { %5526 = vmatprep.subr.bf16.mxu0 %v6143_v3  ;;  %5621 = vmatpush3.bf16.msra.mxu1 %v6016_v30 }
 0x15b   : > { %5622 = vmatprep.subr.bf16.mxu1 %v6143_v3 }
 0x15d   : > { %5527 = vmatpush3.bf16.msra.mxu0 %v5984_v34  ;;  %v6045_v34 = vld [vmem:[%s7717_s3 + $0x570] sm:$0xff]  }
 0x15e   : > { %5528 = vmatprep.subr.bf16.mxu0 %v6143_v3  ;;  %5623 = vmatpush3.bf16.msra.mxu1 %v6018_v38  ;;  %v6047_v38 = vld [vmem:[%s7717_s3 + $0x568] sm:$0xff]  }
 0x15f   : > { %5624 = vmatprep.subr.bf16.mxu1 %v6143_v3 }
 0x161   : > { %5529 = vmatpush3.bf16.msra.mxu0 %v5986_v40 }
 0x162   : > { %5554 = vmatprep.subr.bf16.mxu0 %v6143_v3  ;;  %5625 = vmatpush3.bf16.msra.mxu1 %v6020_v27  ;;  %v6021_v27 = vld [vmem:[%s7717_s3 + $0x408] sm:$0xff]  }
 0x163   : > { %5626 = vmatprep.subr.bf16.mxu1 %v6143_v3 }
 0x164   : > { %5531 = vmatmul.mubr.bf16.vlgmr.msra.gmra.mxu0 %v2269_v28  ;;  %v901_v44 = vpop.f32.mrf.mxu0  ;;  %v6051_v28 = vld [vmem:[%s7717_s3 + $0x558] sm:$0xff]  }
 0x165   : > { %5555 = vmatpush3.bf16.msra.mxu0 %v5990_v31  ;;  %5570 = vmatprep.mubr.msk.bf16.mxu0 %vm6144_vm3, %v6143_v3  ;;  %v997_v56 = vadd.f32 %v6917_v35, %v901_v44  ;;  %v6040_v35 = vld [vmem:[%s7717_s3 + $0x4c0] sm:$0xff]   ;;  %v4873_v31 = vcombine.low %v3340_v45, %v7359_v46  ;;  %v6053_v44 = vld [vmem:[%s7717_s3 + $0x550] sm:$0xff]  }
 0x166   : > { %v5292_v52 = vpop.f32.mrf.mxu0  ;;  %5556 = vmatprep.subr.bf16.mxu0 %v6143_v3  ;;  %5627 = vmatpush3.bf16.msra.mxu1 %v6022_v12  ;;  %v6023_v12 = vld [vmem:[%s7717_s3 + $0x400] sm:$0xff]  }
 0x167   : > { %5628 = vmatprep.subr.bf16.mxu1 %v6143_v3  ;;  %v3371_v52 = vshll.u32 %v4873_v31, 16 }
 0x168   : > { %v7235_v47 = vpop.f32.mrf.mxu0 }
 0x169   : > { %5557 = vmatpush3.bf16.msra.mxu0 %v5992_v51  ;;  %v1000_v49 = vadd.f32 %v6931_v50, %v7235_v47  ;;  %v6043_v50 = vld [vmem:[%s7717_s3 + $0x578] sm:$0xff]   ;;  %v7377_v51 = vld [vmem:[#allocation2 + $0x40] ss:$0 sps:$4 sm:$0x11]   ;;  %v3369_v47 = vshrl.u32 %v4873_v31, 16 }
 0x16a   : > { %v5293_v54 = vpop.f32.mrf.mxu0  ;;  %5558 = vmatprep.subr.bf16.mxu0 %v6143_v3  ;;  %5629 = vmatpush3.bf16.msra.mxu1 %v6024_v53  ;;  %v2779_v53 = vsel %vm816_vm11, %v7218_v41, %v7216_v32 }
 0x16b   : > { %5654 = vmatprep.subr.bf16.mxu1 %v6143_v3  ;;  %v3376_v54 = vshll.u32 %v7377_v51, 16 }
 0x16c   : > { %v7246_v58 = vpop.f32.mrf.mxu1 }
 0x16d   : > { %5559 = vmatpush3.bf16.msra.mxu0 %v5994_v39  ;;  %5631 = vmatmul.mubr.bf16.vlgmr.msra.gmra.mxu1 %v2893_v55  ;;  %v3373_v39 = vrot.slane %v3371_v52, 1  ;;  %v6048_v52 = vld [vmem:[%s7717_s3 + $0x520] sm:$0xff]  }
 0x16e   : > { %5560 = vmatprep.subr.bf16.mxu0 %v6143_v3  ;;  %5655 = vmatpush3.bf16.msra.mxu1 %v6026_v63  ;;  %v5392_v6 = vpop.f32.mrf.mxu1  ;;  %v6027_v63 = vld [vmem:[%s7717_s3 + $0x4b0] sm:$0xff]  }
 0x16f   : > { %5656 = vmatprep.subr.bf16.mxu1 %v6143_v3  ;;  %5670 = vmatprep.mubr.msk.bf16.mxu1 %vm6144_vm3, %v6143_v3  ;;  %v3374_v6 = vor.u32 %v3373_v39, %v3369_v47  ;;  %v6081_v39 = vld [vmem:[%s7717_s3 + $0x668] sm:$0xff]  }
 0x170   : > { %v7258_v60 = vpop.f32.mrf.mxu1 }
 0x171   : > { %5561 = vmatpush3.bf16.msra.mxu0 %v5996_v13 }
 0x172   : > { %5562 = vmatprep.subr.bf16.mxu0 %v6143_v3  ;;  %5657 = vmatpush3.bf16.msra.mxu1 %v6028_v59  ;;  %v5393_v62 = vpop.f32.mrf.mxu1  ;;  %v3378_v59 = vrot.slane %v3376_v54, 1 }
 0x173   : > { %5658 = vmatprep.subr.bf16.mxu1 %v6143_v3 }
 0x175   : > { %5563 = vmatpush3.bf16.msra.mxu0 %v5998_v4 }
 0x176   : > { %5564 = vmatprep.subr.bf16.mxu0 %v6143_v3  ;;  %5659 = vmatpush3.bf16.msra.mxu1 %v6030_v61 }
 0x177   : > { %5660 = vmatprep.subr.bf16.mxu1 %v6143_v3 }
 0x179   : > { %5565 = vmatpush3.bf16.msra.mxu0 %v6000_v1 }
 0x17a   : > { %5566 = vmatprep.subr.bf16.mxu0 %v6143_v3  ;;  %5661 = vmatpush3.bf16.msra.mxu1 %v6032_v7  ;;  %v6029_v7 = vld [vmem:[%s7717_s3 + $0x4a8] sm:$0xff]  }
 0x17b   : > { %5662 = vmatprep.subr.bf16.mxu1 %v6143_v3 }
 0x17d   : > { %5567 = vmatpush3.bf16.msra.mxu0 %v6002_v9 }
 0x17e   : > { %5568 = vmatprep.subr.bf16.mxu0 %v6143_v3  ;;  %5663 = vmatpush3.bf16.msra.mxu1 %v6034_v10  ;;  %v3379_v10 = vsel %vm1146_vm9, %v3374_v6, %v3378_v59  ;;  %v3247_v6 = vsel %vm1024_vm15, %v7462_v0, %v7460_v21  ;;  %v6058_v59 = vld [vmem:[%s7717_s3 + $0x5b8] sm:$0xff]   ;;  %v6072_v21 = vld [vmem:[%s7717_s3 + $0x588] sm:$0xff]   ;;  %v6074_v0 = vld [vmem:[%s7717_s3 + $0x580] sm:$0xff]  }
 0x17f   : > { %5664 = vmatprep.subr.bf16.mxu1 %v6143_v3 }
 0x181   : > { %5569 = vmatpush3.bf16.msra.mxu0 %v6004_v11  ;;  %v6031_v11 = vld [vmem:[%s7717_s3 + $0x4a0] sm:$0xff]  }
 0x182   : > { %5594 = vmatprep.subr.bf16.mxu0 %v6143_v3  ;;  %5665 = vmatpush3.bf16.msra.mxu1 %v6036_v15 }
 0x183   : > { %5666 = vmatprep.subr.bf16.mxu1 %v6143_v3 }
 0x184   : > { %v1109_v20 = vpop.f32.mrf.mxu0  ;;  %5571 = vmatmul.mubr.bf16.vlgmr.msra.gmra.mxu0 %v2537_v17  ;;  %v6063_v17 = vld [vmem:[%s7717_s3 + $0x5f0] sm:$0xff]  }
 0x185   : > { %v7304_v16 = vadd.f32 %v1109_v20, %v997_v56  ;;  %5595 = vmatpush3.bf16.msra.mxu0 %v6006_v19  ;;  %5610 = vmatprep.mubr.msk.bf16.mxu0 %vm6144_vm3, %v6143_v3  ;;  %v6065_v56 = vld [vmem:[%s7717_s3 + $0x5e8] sm:$0xff]  }
 0x186   : > { %v5332_v57 = vpop.f32.mrf.mxu0  ;;  %5596 = vmatprep.subr.bf16.mxu0 %v6143_v3  ;;  %5667 = vmatpush3.bf16.msra.mxu1 %v6038_v2 }
 0x187   : > { %5668 = vmatprep.subr.bf16.mxu1 %v6143_v3  ;;  %v1249_v55 = vadd.f32 %v7029_v33, %v7304_v16  ;;  %v6057_v33 = vld [vmem:[%s7717_s3 + $0x540] sm:$0xff]   ;;  %v6035_v16 = vld [vmem:[%s7717_s3 + $0x490] sm:$0xff]   ;;  %v6037_v57 = vld [vmem:[%s7717_s3 + $0x488] sm:$0xff]  }
 0x188   : > { %v1112_v22 = vpop.f32.mrf.mxu0 }
 0x189   : > { %v7318_v23 = vadd.f32 %v1112_v22, %v1000_v49  ;;  %5597 = vmatpush3.bf16.msra.mxu0 %v6009_v48  ;;  %v6067_v48 = vld [vmem:[%s7717_s3 + $0x5e0] sm:$0xff]   ;;  %v6071_v22 = vld [vmem:[%s7717_s3 + $0x5d0] sm:$0xff]  }
 0x18a   : > { %v5333_v25 = vpop.f32.mrf.mxu0  ;;  %5598 = vmatprep.subr.bf16.mxu0 %v6143_v3  ;;  %5669 = vmatpush3.bf16.msra.mxu1 %v6040_v35  ;;  %v6069_v35 = vld [vmem:[%s7717_s3 + $0x5d8] sm:$0xff]   ;;  %v6039_v49 = vld [vmem:[%s7717_s3 + $0x480] sm:$0xff]  }
 0x18b   : > { %5694 = vmatprep.subr.bf16.mxu1 %v6143_v3  ;;  %v1250_v4 = vadd.f32 %v7039_v8, %v7318_v23  ;;  %v6061_v8 = vld [vmem:[%s7717_s3 + $0x5f8] sm:$0xff]   ;;  %v7472_v25 = vpop.permute.xlu1 %3531 }
 0x18c   : > { %v6041_v23 = vld [vmem:[#allocation2 + $0x30] ss:$8 sps:$4 sm:$0xff]  }
 0x18d   : > { %5599 = vmatpush3.bf16.msra.mxu0 %v6011_v24  ;;  %v7332_v30 = vpop.f32.mrf.mxu1  ;;  %5671 = vmatmul.mubr.bf16.vlgmr.msra.gmra.mxu1 %v3133_v26  ;;  %v6042_v24 = vld [vmem:[%s7717_s3 + $0x538] sm:$0xff]   ;;  %v7474_v26 = vpop.permute.xlu0 %3529 }
 0x18e   : > { %5600 = vmatprep.subr.bf16.mxu0 %v6143_v3  ;;  %5695 = vmatpush3.bf16.msra.mxu1 %v6043_v50  ;;  %v6073_v50 = vld [vmem:[%s7717_s3 + $0x5c8] sm:$0xff]  }
 0x18f   : > { %v5432_v36 = vpop.f32.mrf.mxu1  ;;  %5696 = vmatprep.subr.bf16.mxu1 %v6143_v3  ;;  %5710 = vmatprep.mubr.msk.bf16.mxu1 %vm6144_vm3, %v6143_v3 }
 0x190   : > { %v6044_v36 = vld [vmem:[%s7717_s3 + $0x530] sm:$0xff]  }
 0x191   : > { %5601 = vmatpush3.bf16.msra.mxu0 %v6015_v29  ;;  %v7344_v37 = vpop.f32.mrf.mxu1 }
 0x192   : > { %5602 = vmatprep.subr.bf16.mxu0 %v6143_v3  ;;  %5697 = vmatpush3.bf16.msra.mxu1 %v6045_v34 }
 0x193   : > { %5698 = vmatprep.subr.bf16.mxu1 %v6143_v3  ;;  %v5433_v40 = vpop.f32.mrf.mxu1 }
 0x195   : > { %5603 = vmatpush3.bf16.msra.mxu0 %v6017_v5 }
 0x196   : > { %5604 = vmatprep.subr.bf16.mxu0 %v6143_v3  ;;  %5699 = vmatpush3.bf16.msra.mxu1 %v6047_v38  ;;  %v6075_v38 = vld [vmem:[%s7717_s3 + $0x5c0] sm:$0xff]  }
 0x197   : > { %5700 = vmatprep.subr.bf16.mxu1 %v6143_v3 }
 0x199   : > { %5605 = vmatpush3.bf16.msra.mxu0 %v6019_v42  ;;  %v3646_v42 = vpop.permute.xlu1 %3645 }
 0x19a   : > { %5606 = vmatprep.subr.bf16.mxu0 %v6143_v3  ;;  %5701 = vmatpush3.bf16.msra.mxu1 %v6049_v43  ;;  %v3644_v43 = vpop.permute.xlu0 %3643 }
 0x19b   : > { %5702 = vmatprep.subr.bf16.mxu1 %v6143_v3 }
 0x19d   : > { %5607 = vmatpush3.bf16.msra.mxu0 %v6021_v27 }
 0x19e   : > { %5608 = vmatprep.subr.bf16.mxu0 %v6143_v3  ;;  %5703 = vmatpush3.bf16.msra.mxu1 %v6051_v28  ;;  %v6046_v28 = vld [vmem:[%s7717_s3 + $0x528] sm:$0xff]  }
 0x19f   : > { %5704 = vmatprep.subr.bf16.mxu1 %v6143_v3 }
 0x1a1   : > { %5609 = vmatpush3.bf16.msra.mxu0 %v6023_v12  ;;  %v3647_v12 = vsel %vm1024_vm15, %v3644_v43, %v3646_v42  ;;  %v6082_v42 = vld [vmem:[%s7717_s3 + $0x620] sm:$0xff]  }
 0x1a2   : > { %5634 = vmatprep.subr.bf16.mxu0 %v6143_v3  ;;  %5705 = vmatpush3.bf16.msra.mxu1 %v6053_v44 }
 0x1a3   : > { %5706 = vmatprep.subr.bf16.mxu1 %v6143_v3 }
 0x1a4   : > { %v1396_v32 = vpop.f32.mrf.mxu0  ;;  %5611 = vmatmul.mubr.bf16.vlgmr.msra.gmra.mxu0 %v2779_v53 }
 0x1a5   : > { %v1403_v41 = vadd.f32 %v1396_v32, %v1249_v55  ;;  %5635 = vmatpush3.bf16.msra.mxu0 %v6025_v14  ;;  %5650 = vmatprep.mubr.msk.bf16.mxu0 %vm6144_vm3, %v6143_v3  ;;  %v6079_v14 = vld [vmem:[%s7717_s3 + $0x670] sm:$0xff]   ;;  %v6083_v32 = vld [vmem:[%s7717_s3 + $0x660] sm:$0xff]  }
 0x1a6   : > { %v5372_v13 = vpop.f32.mrf.mxu0  ;;  %5636 = vmatprep.subr.bf16.mxu0 %v6143_v3  ;;  %5707 = vmatpush3.bf16.msra.mxu1 %v6055_v18  ;;  %v6052_v55 = vld [vmem:[%s7717_s3 + $0x510] sm:$0xff]  }
 0x1a7   : > { %v1517_v61 = vadd.f32 %v7246_v58, %v1403_v41  ;;  %5708 = vmatprep.subr.bf16.mxu1 %v6143_v3  ;;  %v6054_v41 = vld [vmem:[%s7717_s3 + $0x508] sm:$0xff]   ;;  %v6056_v13 = vld [vmem:[%s7717_s3 + $0x500] sm:$0xff]  }
 0x1a8   : > { %v1399_v62 = vpop.f32.mrf.mxu0 }
 0x1a9   : > { %v1404_v1 = vadd.f32 %v1399_v62, %v1250_v4  ;;  %5637 = vmatpush3.bf16.msra.mxu0 %v6027_v63  ;;  %v6085_v63 = vld [vmem:[%s7717_s3 + $0x658] sm:$0xff]   ;;  %v6089_v4 = vld [vmem:[%s7717_s3 + $0x648] sm:$0xff]  }
 0x1aa   : > { %v5373_v9 = vpop.f32.mrf.mxu0  ;;  %5638 = vmatprep.subr.bf16.mxu0 %v6143_v3  ;;  %5709 = vmatpush3.bf16.msra.mxu1 %v6057_v33  ;;  %v6087_v33 = vld [vmem:[%s7717_s3 + $0x650] sm:$0xff]  }
 0x1ab   : > { %v7416_v58 = vadd.f32 %v7258_v60, %v1404_v1  ;;  %5734 = vmatprep.subr.bf16.mxu1 %v6143_v3  ;;  %v6033_v60 = vld [vmem:[%s7717_s3 + $0x498] sm:$0xff]   ;;  %v6062_v1 = vld [vmem:[%s7717_s3 + $0x5b0] sm:$0xff]   ;;  %v6091_v9 = vld [vmem:[%s7717_s3 + $0x640] sm:$0xff]  }
 0x1ad   : > { %5639 = vmatpush3.bf16.msra.mxu0 %v6029_v7  ;;  %v7422_v15 = vpop.f32.mrf.mxu1  ;;  %5711 = vmatmul.mubr.bf16.vlgmr.msra.gmra.mxu1 %v3379_v10 }
 0x1ae   : > { %5640 = vmatprep.subr.bf16.mxu0 %v6143_v3  ;;  %5735 = vmatpush3.bf16.msra.mxu1 %v6061_v8  ;;  %v3888_v8 = vpop.permute.xlu1 %3887 }
 0x1af   : > { %v5472_v19 = vpop.f32.mrf.mxu1  ;;  %5736 = vmatprep.subr.bf16.mxu1 %v6143_v3  ;;  %5750 = vmatprep.mubr.msk.bf16.mxu1 %vm6144_vm3, %v6143_v3 }
 0x1b0   : > { %v6064_v19 = vld [vmem:[%s7717_s3 + $0x5a8] sm:$0xff]  }
 0x1b1   : > { %5641 = vmatpush3.bf16.msra.mxu0 %v6031_v11  ;;  %v7434_v2 = vpop.f32.mrf.mxu1 }
 0x1b2   : > { %5642 = vmatprep.subr.bf16.mxu0 %v6143_v3  ;;  %5737 = vmatpush3.bf16.msra.mxu1 %v6063_v17 }
 0x1b3   : > { %5738 = vmatprep.subr.bf16.mxu1 %v6143_v3  ;;  %v5473_v20 = vpop.f32.mrf.mxu1 }
 0x1b5   : > { %5643 = vmatpush3.bf16.msra.mxu0 %v6033_v60 }
 0x1b6   : > { %5644 = vmatprep.subr.bf16.mxu0 %v6143_v3  ;;  %5739 = vmatpush3.bf16.msra.mxu1 %v6065_v56 }
 0x1b7   : > { %5740 = vmatprep.subr.bf16.mxu1 %v6143_v3 }
 0x1b9   : > { %5645 = vmatpush3.bf16.msra.mxu0 %v6035_v16 }
 0x1ba   : > { %5646 = vmatprep.subr.bf16.mxu0 %v6143_v3  ;;  %5741 = vmatpush3.bf16.msra.mxu1 %v6067_v48 }
 0x1bb   : > { %5742 = vmatprep.subr.bf16.mxu1 %v6143_v3 }
 0x1bd   : > { %5647 = vmatpush3.bf16.msra.mxu0 %v6037_v57  ;;  %v6068_v57 = vld [vmem:[%s7717_s3 + $0x598] sm:$0xff]  }
 0x1be   : > { %5648 = vmatprep.subr.bf16.mxu0 %v6143_v3  ;;  %5743 = vmatpush3.bf16.msra.mxu1 %v6069_v35 }
 0x1bf   : > { %5744 = vmatprep.subr.bf16.mxu1 %v6143_v3 }
 0x1c1   : > { %5649 = vmatpush3.bf16.msra.mxu0 %v6039_v49  ;;  %v6070_v49 = vld [vmem:[%s7717_s3 + $0x590] sm:$0xff]  }
 0x1c2   : > { %5674 = vmatprep.subr.bf16.mxu0 %v6143_v3  ;;  %5745 = vmatpush3.bf16.msra.mxu1 %v6071_v22  ;;  %v3533_v22 = vsel %vm816_vm11, %v7474_v26, %v7472_v25 }
 0x1c3   : > { %5746 = vmatprep.subr.bf16.mxu1 %v6143_v3 }
 0x1c4   : > { %v1627_v29 = vpop.f32.mrf.mxu0  ;;  %5651 = vmatmul.mubr.bf16.vlgmr.msra.gmra.mxu0 %v6041_v23  ;;  %v6076_v23 = vld [vmem:[%s7717_s3 + $0x638] sm:$0xff]  }
 0x1c5   : > { %v1634_v34 = vadd.f32 %v1627_v29, %v1517_v61  ;;  %5675 = vmatpush3.bf16.msra.mxu0 %v6042_v24  ;;  %5690 = vmatprep.mubr.msk.bf16.mxu0 %vm6144_vm3, %v6143_v3  ;;  %v6078_v29 = vld [vmem:[%s7717_s3 + $0x630] sm:$0xff]  }
 0x1c6   : > { %v5412_v5 = vpop.f32.mrf.mxu0  ;;  %5676 = vmatprep.subr.bf16.mxu0 %v6143_v3  ;;  %5747 = vmatpush3.bf16.msra.mxu1 %v6073_v50 }
 0x1c7   : > { %v1760_v40 = vadd.f32 %v7332_v30, %v1634_v34  ;;  %5748 = vmatprep.subr.bf16.mxu1 %v6143_v3  ;;  %v6077_v30 = vld [vmem:[%s7717_s3 + $0x678] sm:$0xff]   ;;  %v6080_v5 = vld [vmem:[%s7717_s3 + $0x628] sm:$0xff]  }
 0x1c8   : > { %v1630_v45 = vpop.f32.mrf.mxu0 }
 0x1c9   : > { %v1635_v27 = vadd.f32 %v1630_v45, %v7416_v58  ;;  %5677 = vmatpush3.bf16.msra.mxu0 %v6044_v36  ;;  %v3886_v58 = vpop.permute.xlu0 %3885 }
 0x1ca   : > { %v5413_v31 = vpop.f32.mrf.mxu0  ;;  %5678 = vmatprep.subr.bf16.mxu0 %v6143_v3  ;;  %5749 = vmatpush3.bf16.msra.mxu1 %v6075_v38  ;;  %v3889_v56 = vsel %vm816_vm11, %v3886_v58, %v3888_v8  ;;  %v4002_v8 = vpop.permute.xlu1 %4001 }
 0x1cb   : > { %v1761_v44 = vadd.f32 %v7344_v37, %v1635_v27  ;;  %5774 = vmatprep.subr.bf16.mxu1 %v6143_v3  ;;  %v6050_v37 = vld [vmem:[%s7717_s3 + $0x518] sm:$0xff]  }
 0x1cc   : > { %v6084_v27 = vld [vmem:[%s7717_s3 + $0x618] sm:$0xff]  }
 0x1cd   : > { %5679 = vmatpush3.bf16.msra.mxu0 %v6046_v28  ;;  %v7506_v53 = vpop.f32.mrf.mxu1  ;;  %5751 = vmatmul.mubr.bf16.vlgmr.msra.gmra.mxu1 %v3647_v12  ;;  %v6086_v12 = vld [vmem:[%s7717_s3 + $0x610] sm:$0xff]   ;;  %v4000_v58 = vpop.permute.xlu0 %3999 }
 0x1ce   : > { %5680 = vmatprep.subr.bf16.mxu0 %v6143_v3  ;;  %5775 = vmatpush3.bf16.msra.mxu1 %v6077_v30  ;;  %v3740_v30 = vld [vmem:[#allocation2 + $0x30] sm:$0xe] }
 0x1cf   : > { %v5512_v18 = vpop.f32.mrf.mxu1  ;;  %5776 = vmatprep.subr.bf16.mxu1 %v6143_v3  ;;  %5790 = vmatprep.mubr.msk.bf16.mxu1 %vm6144_vm3, %v6143_v3 }
 0x1d0   : > { %v3762_v18 = vrot.slane %v7377_v51, 1 }
 0x1d1   : > { %5681 = vmatpush3.bf16.msra.mxu0 %v6048_v52  ;;  %v7518_v47 = vpop.f32.mrf.mxu1  ;;  %v4951_v52 = vcombine.low %v3740_v30, %v7359_v46 }
 0x1d2   : > { %5682 = vmatprep.subr.bf16.mxu0 %v6143_v3  ;;  %5777 = vmatpush3.bf16.msra.mxu1 %v6079_v14 }
 0x1d3   : > { %5778 = vmatprep.subr.bf16.mxu1 %v6143_v3  ;;  %v5513_v54 = vpop.f32.mrf.mxu1  ;;  %v3761_v14 = vrot.slane %v4951_v52, 1 }
 0x1d4   : > { %v6094_v54 = vld [vmem:[%s7717_s3 + $0x6b0] sm:$0xff]  }
 0x1d5   : > { %5683 = vmatpush3.bf16.msra.mxu0 %v6050_v37  ;;  %v3763_v37 = vsel %vm1540_vm10, %v3761_v14, %v3762_v18 }
 0x1d6   : > { %5684 = vmatprep.subr.bf16.mxu0 %v6143_v3  ;;  %5779 = vmatpush3.bf16.msra.mxu1 %v6081_v39 }
 0x1d7   : > { %5780 = vmatprep.subr.bf16.mxu1 %v6143_v3 }
 0x1d9   : > { %5685 = vmatpush3.bf16.msra.mxu0 %v6052_v55 }
 0x1da   : > { %5686 = vmatprep.subr.bf16.mxu0 %v6143_v3  ;;  %5781 = vmatpush3.bf16.msra.mxu1 %v6083_v32 }
 0x1db   : > { %5782 = vmatprep.subr.bf16.mxu1 %v6143_v3 }
 0x1dd   : > { %5687 = vmatpush3.bf16.msra.mxu0 %v6054_v41 }
 0x1de   : > { %5688 = vmatprep.subr.bf16.mxu0 %v6143_v3  ;;  %5783 = vmatpush3.bf16.msra.mxu1 %v6085_v63  ;;  %v6095_v63 = vld [vmem:[%s7717_s3 + $0x6a8] sm:$0xff]  }
 0x1df   : > { %5784 = vmatprep.subr.bf16.mxu1 %v6143_v3 }
 0x1e1   : > { %5689 = vmatpush3.bf16.msra.mxu0 %v6056_v13 }
 0x1e2   : > { %5714 = vmatprep.subr.bf16.mxu0 %v6143_v3  ;;  %5785 = vmatpush3.bf16.msra.mxu1 %v6087_v33 }
 0x1e3   : > { %5786 = vmatprep.subr.bf16.mxu1 %v6143_v3 }
 0x1e4   : > { %v1867_v61 = vpop.f32.mrf.mxu0  ;;  %5691 = vmatmul.mubr.bf16.vlgmr.msra.gmra.mxu0 %v3247_v6  ;;  %v6096_v6 = vld [vmem:[%s7717_s3 + $0x6a0] sm:$0xff]  }
 0x1e5   : > { %v1874_v62 = vadd.f32 %v1867_v61, %v1760_v40  ;;  %5715 = vmatpush3.bf16.msra.mxu0 %v6058_v59  ;;  %5730 = vmatprep.mubr.msk.bf16.mxu0 %vm6144_vm3, %v6143_v3  ;;  %v6097_v61 = vld [vmem:[%s7717_s3 + $0x698] sm:$0xff]  }
 0x1e6   : > { %v5452_v7 = vpop.f32.mrf.mxu0  ;;  %5716 = vmatprep.subr.bf16.mxu0 %v6143_v3  ;;  %5787 = vmatpush3.bf16.msra.mxu1 %v6089_v4 }
 0x1e7   : > { %v1990_v10 = vadd.f32 %v7422_v15, %v1874_v62  ;;  %5788 = vmatprep.subr.bf16.mxu1 %v6143_v3  ;;  %v6066_v15 = vld [vmem:[%s7717_s3 + $0x5a0] sm:$0xff]   ;;  %v6098_v7 = vld [vmem:[%s7717_s3 + $0x690] sm:$0xff]  }
 0x1e8   : > { %v1870_v11 = vpop.f32.mrf.mxu0 }
 0x1e9   : > { %v1875_v17 = vadd.f32 %v1870_v11, %v1761_v44  ;;  %5717 = vmatpush3.bf16.msra.mxu0 %v6062_v1  ;;  %v6088_v44 = vld [vmem:[%s7717_s3 + $0x608] sm:$0xff]   ;;  %v4003_v11 = vsel %vm1024_vm15, %v4000_v58, %v4002_v8 }
 0x1ea   : > { %v5453_v60 = vpop.f32.mrf.mxu0  ;;  %5718 = vmatprep.subr.bf16.mxu0 %v6143_v3  ;;  %5789 = vmatpush3.bf16.msra.mxu1 %v6091_v9  ;;  %v6099_v9 = vld [vmem:[%s7717_s3 + $0x688] sm:$0xff]  }
 0x1eb   : > { %v1991_v20 = vadd.f32 %v7434_v2, %v1875_v17 }
 0x1ed   : > { %5719 = vmatpush3.bf16.msra.mxu0 %v6064_v19  ;;  %v7580_v16 = vpop.f32.mrf.mxu1  ;;  %5791 = vmatmul.mubr.bf16.vlgmr.msra.gmra.mxu1 %v3889_v56 }
 0x1ee   : > { %5720 = vmatprep.subr.bf16.mxu0 %v6143_v3 }
 0x1ef   : > { %v5552_v48 = vpop.f32.mrf.mxu1 }
 0x1f1   : > { %5721 = vmatpush3.bf16.msra.mxu0 %v6066_v15  ;;  %v7586_v35 = vpop.f32.mrf.mxu1 }
 0x1f2   : > { %5722 = vmatprep.subr.bf16.mxu0 %v6143_v3 }
 0x1f3   : > { %v5553_v2 = vpop.f32.mrf.mxu1 }
 0x1f5   : > { %5723 = vmatpush3.bf16.msra.mxu0 %v6068_v57 }
 0x1f6   : > { %5724 = vmatprep.subr.bf16.mxu0 %v6143_v3 }
 0x1f9   : > { %5725 = vmatpush3.bf16.msra.mxu0 %v6070_v49 }
 0x1fa   : > { %5726 = vmatprep.subr.bf16.mxu0 %v6143_v3 }
 0x1fd   : > { %5727 = vmatpush3.bf16.msra.mxu0 %v6072_v21 }
 0x1fe   : > { %5728 = vmatprep.subr.bf16.mxu0 %v6143_v3 }
 0x201   : > { %5729 = vmatpush3.bf16.msra.mxu0 %v6074_v0 }
 0x202   : > { %5754 = vmatprep.subr.bf16.mxu0 %v6143_v3 }
 0x204   : > { %v2107_v24 = vpop.f32.mrf.mxu0  ;;  %5731 = vmatmul.mubr.bf16.vlgmr.msra.gmra.mxu0 %v3533_v22 }
 0x205   : > { %v2114_v50 = vadd.f32 %v2107_v24, %v1990_v10  ;;  %5755 = vmatpush3.bf16.msra.mxu0 %v6076_v23  ;;  %5770 = vmatprep.mubr.msk.bf16.mxu0 %vm6144_vm3, %v6143_v3  ;;  %v6100_v10 = vld [vmem:[%s7717_s3 + $0x680] sm:$0xff]  }
 0x206   : > { %v5492_v34 = vpop.f32.mrf.mxu0  ;;  %5756 = vmatprep.subr.bf16.mxu0 %v6143_v3 }
 0x207   : > { %v2228_v25 = vadd.f32 %v7506_v53, %v2114_v50  ;;  %v6090_v53 = vld [vmem:[%s7717_s3 + $0x600] sm:$0xff]  }
 0x208   : > { %v2110_v26 = vpop.f32.mrf.mxu0 }
 0x209   : > { %v2115_v36 = vadd.f32 %v2110_v26, %v1991_v20  ;;  %5757 = vmatpush3.bf16.msra.mxu0 %v6078_v29 }
 0x20a   : > { %v5493_v38 = vpop.f32.mrf.mxu0  ;;  %5758 = vmatprep.subr.bf16.mxu0 %v6143_v3 }
 0x20b   : > { %v2229_v40 = vadd.f32 %v7518_v47, %v2115_v36  ;;  %v6093_v47 = vld [vmem:[%s7717_s3 + $0x6b8] sm:$0xff]  }
 0x20d   : > { %5759 = vmatpush3.bf16.msra.mxu0 %v6080_v5  ;;  %v7623_v43 = vpop.f32.mrf.mxu1 }
 0x20e   : > { %5760 = vmatprep.subr.bf16.mxu0 %v6143_v3 }
 0x20f   : > { %v5592_v45 = vpop.f32.mrf.mxu1 }
 0x211   : > { %5761 = vmatpush3.bf16.msra.mxu0 %v6082_v42  ;;  %v7629_v28 = vpop.f32.mrf.mxu1 }
 0x212   : > { %5762 = vmatprep.subr.bf16.mxu0 %v6143_v3 }
 0x213   : > { %v5593_v31 = vpop.f32.mrf.mxu1 }
 0x215   : > { %5763 = vmatpush3.bf16.msra.mxu0 %v6084_v27 }
 0x216   : > { %5764 = vmatprep.subr.bf16.mxu0 %v6143_v3 }
 0x219   : > { %5765 = vmatpush3.bf16.msra.mxu0 %v6086_v12 }
 0x21a   : > { %5766 = vmatprep.subr.bf16.mxu0 %v6143_v3 }
 0x21d   : > { %5767 = vmatpush3.bf16.msra.mxu0 %v6088_v44 }
 0x21e   : > { %5768 = vmatprep.subr.bf16.mxu0 %v6143_v3 }
 0x221   : > { %5769 = vmatpush3.bf16.msra.mxu0 %v6090_v53 }
 0x222   : > { %5794 = vmatprep.subr.bf16.mxu0 %v6143_v3 }
 0x224   : > { %v2353_v46 = vpop.f32.mrf.mxu0  ;;  %5771 = vmatmul.mubr.bf16.vlgmr.msra.gmra.mxu0 %v3763_v37 }
 0x225   : > { %v2360_v39 = vadd.f32 %v2353_v46, %v2228_v25  ;;  %5795 = vmatpush3.bf16.msra.mxu0 %v6093_v47  ;;  %5810 = vmatprep.mubr.msk.bf16.mxu0 %vm6144_vm3, %v6143_v3 }
 0x226   : > { %v5532_v51 = vpop.f32.mrf.mxu0  ;;  %5796 = vmatprep.subr.bf16.mxu0 %v6143_v3 }
 0x227   : > { %v2514_v55 = vadd.f32 %v7580_v16, %v2360_v39 }
 0x228   : > { %v2356_v32 = vpop.f32.mrf.mxu0 }
 0x229   : > { %v2361_v41 = vadd.f32 %v2356_v32, %v2229_v40  ;;  %5797 = vmatpush3.bf16.msra.mxu0 %v6094_v54 }
 0x22a   : > { %v5533_v13 = vpop.f32.mrf.mxu0  ;;  %5798 = vmatprep.subr.bf16.mxu0 %v6143_v3 }
 0x22b   : > { %v2515_v33 = vadd.f32 %v7586_v35, %v2361_v41 }
 0x22d   : > { %5799 = vmatpush3.bf16.msra.mxu0 %v6095_v63  ;;  %v2977_v59 = vpop.f32.mrf.mxu1 }
 0x22e   : > { %5800 = vmatprep.subr.bf16.mxu0 %v6143_v3 }
 0x22f   : > { %v5632_v4 = vpop.f32.mrf.mxu1 }
 0x231   : > { %5801 = vmatpush3.bf16.msra.mxu0 %v6096_v6  ;;  %v2980_v62 = vpop.f32.mrf.mxu1 }
 0x232   : > { %5802 = vmatprep.subr.bf16.mxu0 %v6143_v3 }
 0x233   : > { %v5633_v1 = vpop.f32.mrf.mxu1 }
 0x235   : > { %5803 = vmatpush3.bf16.msra.mxu0 %v6097_v61 }
 0x236   : > { %5804 = vmatprep.subr.bf16.mxu0 %v6143_v3 }
 0x239   : > { %5805 = vmatpush3.bf16.msra.mxu0 %v6098_v7 }
 0x23a   : > { %5806 = vmatprep.subr.bf16.mxu0 %v6143_v3 }
 0x23d   : > { %5807 = vmatpush3.bf16.msra.mxu0 %v6099_v9 }
 0x23e   : > { %5808 = vmatprep.subr.bf16.mxu0 %v6143_v3 }
 0x241   : > { %5809 = vmatpush3.bf16.msra.mxu0 %v6100_v10 }
 0x244   : > { %v2621_v17 = vpop.f32.mrf.mxu0  ;;  %5811 = vmatmul.mubr.bf16.vlgmr.msra.gmra.mxu0 %v4003_v11 }
 0x245   : > { %v2628_v19 = vadd.f32 %v2621_v17, %v2514_v55 }
 0x246   : > { %v5572_v60 = vpop.f32.mrf.mxu0 }
 0x247   : > { %v2744_v56 = vadd.f32 %v7623_v43, %v2628_v19  ;;  %v5010_v60 = vld [vmem:[%s7718_s4] ss:$0 sm:$0xff] }
 0x248   : > { %v2624_v20 = vpop.f32.mrf.mxu0 }
 0x249   : > { %v2629_v15 = vadd.f32 %v2624_v20, %v2515_v33 }
 0x24a   : > { %v5573_v16 = vpop.f32.mrf.mxu0 }
 0x24b   : > { %v2745_v48 = vadd.f32 %v7629_v28, %v2629_v15 }
 0x24d   : > { %v3217_v57 = vpop.f32.mrf.mxu1 }
 0x24f   : > { %v5672_v35 = vpop.f32.mrf.mxu1 }
 0x251   : > { %v3220_v2 = vpop.f32.mrf.mxu1 }
 0x253   : > { %v5673_v3 = vpop.f32.mrf.mxu1 }
 0x264   : > { %v2863_v49 = vpop.f32.mrf.mxu0 }
 0x265   : > { %v2870_v21 = vadd.f32 %v2863_v49, %v2744_v56 }
 0x266   : > { %v5612_v0 = vpop.f32.mrf.mxu0 }
 0x267   : > { %v2984_v22 = vadd.f32 %v2977_v59, %v2870_v21 }
 0x268   : > { %v2866_v23 = vpop.f32.mrf.mxu0 }
 0x269   : > { %v2871_v24 = vadd.f32 %v2866_v23, %v2745_v48 }
 0x26a   : > { %v5613_v50 = vpop.f32.mrf.mxu0 }
 0x26b   : > { %v2985_v29 = vadd.f32 %v2980_v62, %v2871_v24 }
 0x26d   : > { %v3463_v34 = vpop.f32.mrf.mxu1 }
 0x26f   : > { %v5712_v25 = vpop.f32.mrf.mxu1 }
 0x271   : > { %v3466_v26 = vpop.f32.mrf.mxu1 }
 0x273   : > { %v5713_v36 = vpop.f32.mrf.mxu1 }
 0x284   : > { %v3093_v5 = vpop.f32.mrf.mxu0 }
 0x285   : > { %v3100_v38 = vadd.f32 %v3093_v5, %v2984_v22 }
 0x286   : > { %v5652_v40 = vpop.f32.mrf.mxu0 }
 0x287   : > { %v3224_v42 = vadd.f32 %v3217_v57, %v3100_v38 }
 0x288   : > { %v3096_v43 = vpop.f32.mrf.mxu0 }
 0x289   : > { %v3101_v45 = vadd.f32 %v3096_v43, %v2985_v29 }
 0x28a   : > { %v5653_v27 = vpop.f32.mrf.mxu0 }
 0x28b   : > { %v3225_v28 = vadd.f32 %v3220_v2, %v3101_v45 }
 0x28d   : > { %v3731_v31 = vpop.f32.mrf.mxu1 }
 0x28f   : > { %v5752_v12 = vpop.f32.mrf.mxu1 }
 0x291   : > { %v3734_v30 = vpop.f32.mrf.mxu1 }
 0x293   : > { %v5753_v44 = vpop.f32.mrf.mxu1 }
 0x2a4   : > { %v3331_v52 = vpop.f32.mrf.mxu0 }
 0x2a5   : > { %v3338_v53 = vadd.f32 %v3331_v52, %v3224_v42 }
 0x2a6   : > { %v5692_v14 = vpop.f32.mrf.mxu0 }
 0x2a7   : > { %v3470_v18 = vadd.f32 %v3463_v34, %v3338_v53 }
 0x2a8   : > { %v3334_v37 = vpop.f32.mrf.mxu0 }
 0x2a9   : > { %v3339_v47 = vadd.f32 %v3334_v37, %v3225_v28 }
 0x2aa   : > { %v5693_v46 = vpop.f32.mrf.mxu0 }
 0x2ab   : > { %v3471_v39 = vadd.f32 %v3466_v26, %v3339_v47 }
 0x2ad   : > { %v3973_v54 = vpop.f32.mrf.mxu1 }
 0x2af   : > { %v5792_v51 = vpop.f32.mrf.mxu1 }
 0x2b1   : > { %v3976_v55 = vpop.f32.mrf.mxu1 }
 0x2b3   : > { %v5793_v32 = vpop.f32.mrf.mxu1 }
 0x2c4   : > { %v3617_v41 = vpop.f32.mrf.mxu0 }
 0x2c5   : > { %v3624_v63 = vadd.f32 %v3617_v41, %v3470_v18 }
 0x2c6   : > { %v5732_v13 = vpop.f32.mrf.mxu0 }
 0x2c7   : > { %v3738_v33 = vadd.f32 %v3731_v31, %v3624_v63 }
 0x2c8   : > { %v3620_v6 = vpop.f32.mrf.mxu0 }
 0x2c9   : > { %v3625_v59 = vadd.f32 %v3620_v6, %v3471_v39 }
 0x2ca   : > { %v5733_v4 = vpop.f32.mrf.mxu0 }
 0x2cb   : > { %v3739_v61 = vadd.f32 %v3734_v30, %v3625_v59 }
 0x2e4   : > { %v3847_v62 = vpop.f32.mrf.mxu0 }
 0x2e5   : > { %v3854_v1 = vadd.f32 %v3847_v62, %v3738_v33 }
 0x2e6   : > { %v5772_v7 = vpop.f32.mrf.mxu0 }
 0x2e7   : > { %v3980_v9 = vadd.f32 %v3973_v54, %v3854_v1 }
 0x2e8   : > { %v3850_v10 = vpop.f32.mrf.mxu0 }
 0x2e9   : > { %v3855_v8 = vadd.f32 %v3850_v10, %v3739_v61 }
 0x2ea   : > { %v5773_v58 = vpop.f32.mrf.mxu0 }
 0x2eb   : > { %v3981_v11 = vadd.f32 %v3976_v55, %v3855_v8 }
 0x304   : > { %v4087_v17 = vpop.f32.mrf.mxu0 }
 0x305   : > { %v4094_v19 = vadd.f32 %v4087_v17, %v3980_v9 }
 0x306   : > { %v5812_v56 = vpop.f32.mrf.mxu0 }
 0x307   : > { %v4103_v15 = vadd.f32 %v5010_v60, %v4094_v19 }
 0x308   : > { %v4090_v20 = vpop.f32.mrf.mxu0 }
 0x309   : > { %v4095_v16 = vadd.f32 %v4090_v20, %v3981_v11  ;;  %v4113_v35 = vmul.f32 %v4103_v15, %v4103_v15 }
 0x30a   : > { %v5813_v48 = vpop.f32.mrf.mxu0 }
 0x30b   : > { %v4104_v57 = vadd.f32 %v5010_v60, %v4095_v16 }
 0x30d   : > { %v4105_v2 = vadd.f32 %v4104_v57, %v4103_v15  ;;  %v4114_v3 = vmul.f32 %v4104_v57, %v4104_v57  ;;  %v5029_v49 = vpack.c.bf16 %v4104_v57, %v4103_v15 }
 0x30f   : > { %v4106_v21 = vrot.slane %v4105_v2, 4  ;;  %v4115_v0 = vadd.f32 %v4114_v3, %v4113_v35  ;;  %5030 = vst [vmem:[%s436_s19] sm:$0xff] %v5029_v49  }
 0x311   : > { %v4107_v22 = vadd.f32 %v4106_v21, %v4105_v2  ;;  %v4116_v23 = vrot.slane %v4115_v0, 4 }
 0x313   : > { %v4108_v24 = vrot.slane %v4107_v22, 2  ;;  %v4117_v50 = vadd.f32 %v4116_v23, %v4115_v0 }
 0x315   : > { %v4109_v29 = vadd.f32 %v4108_v24, %v4107_v22  ;;  %v4118_v34 = vrot.slane %v4117_v50, 2 }
 0x317   : > { %v4110_v25 = vrot.slane %v4109_v29, 1  ;;  %v4119_v26 = vadd.f32 %v4118_v34, %v4117_v50 }
 0x319   : > { %v4111_v36 = vadd.f32 %v4110_v25, %v4109_v29  ;;  %v4120_v5 = vrot.slane %v4119_v26, 1 }
 0x31b   : > { %4112 = vst [vmem:[%s444_s21] sm:$0x1] %v4111_v36  ;;  %v4121_v38 = vadd.f32 %v4120_v5, %v4119_v26 }
 0x31d   : > { %4122 = vst [vmem:[%s444_s21 + $0x1] sm:$0x1] %v4121_v38 }
 0x31e PF: > { %s19_s9 = sadd.s32 1, %s6141_s9   ;;  %s7755_s27 = smov %s6133_s29 }
 0x31f   : > { %p16_p5 = scmp.ge.s32.totalorder %s19_s9, 34   ;;  %s7756_s28 = smov %s6137_s30 }
 0x320   : > { %s7757_s29 = smov %s7760_s10  ;;  %s7758_s30 = smov %s7764_s11 }
 0x321   :  { %18 = sbr.rel (!%p16_p5) target bundleno = 3 (0x3), region = 124 }

</bundles_post_ra>
